<compile_context>
chip_gen: v6e
topology: v6e:2x2x1
jax: 0.10.0
libtpu: 0.0.40
codegen_flags: <defaults>
</compile_context>

<pallas_src>
import jax
import jax.numpy as jnp
from jax.experimental import pallas as pl
from jax.experimental.pallas import tpu as pltpu

LANE = 128
SUBLANE = 8


def _round_up(n, m):
    return ((n + m - 1) // m) * m


def _vmem_limit_bytes():
    # Per-generation VMEM budget (v7x: 64 MiB/TC; v5e/v6e: 128 MiB).
    try:
        cap = int(pltpu.get_tpu_info().vmem_capacity_bytes)
    except Exception:
        cap = 64 * 1024 * 1024
    return max(16 * 1024 * 1024, min(cap // 2, 64 * 1024 * 1024))


# ---------------------------------------------------------------------------
# Fused kernel: encoder LSTM + decoder LSTM + output Linear + alpha head.
# Weights are bf16 (lane-padded, gate order [i,f,o,g]); biases, state and all
# accumulation are f32.  Hp / Ap / Op are 128-lane-padded sizes, Bp is the
# 8-sublane-padded batch.
# ---------------------------------------------------------------------------
def mvtae_kernel(x_ref, enc_wih_ref, enc_whh_ref, enc_b_ref,
                 dec_wih_ref, dec_whh_ref, dec_b_ref,
                 dec_wout_ref, dec_bout_ref,
                 a1w_ref, a1b_ref, a3w_ref, a3b_ref,
                 henc_ref, dec_ref, alpha_ref,
                 xtm_scr, xw_scr, hs_scr):
    Bp, Hp = henc_ref.shape
    T = xw_scr.shape[0] // Bp
    B = x_ref.shape[0]
    D = xtm_scr.shape[1]
    H3 = 3 * Hp
    unroll = True if T <= 16 else 8          # bounded unroll at production T

    # ---- one-time reorder: batch-major x (B, T*D) -> time-major (T*Bp, D) ----
    # Keeps the full-size HBM transpose out of the wrapper; only the tiny
    # D-wide input is shuffled once in VMEM, out of the hot recurrence.
    xtm_scr[...] = jnp.zeros(xtm_scr.shape, xtm_scr.dtype)   # padded rows -> 0
    xv = x_ref[...]
    for t in range(T):                                       # static, one-time
        xtm_scr[pl.ds(t * Bp, B), :] = xv[:, t * D:(t + 1) * D]

    # ---- encoder: hoisted x @ W_ih + b for ALL timesteps, one bf16 MXU GEMM --
    xw_scr[...] = (jnp.dot(xtm_scr[...].astype(jnp.bfloat16), enc_wih_ref[...],
                           preferred_element_type=jnp.float32)
                   + enc_b_ref[...])

    enc_whh = enc_whh_ref[...]               # hoisted bf16 weight load
    zeros = jnp.zeros((Bp, Hp), jnp.float32)

    def gate_math(gates, c):
        # gate order [i, f, o | g]: one sigmoid over 3*Hp lanes, one tanh.
        ifo = jax.nn.sigmoid(gates[:, :H3])
        g = jnp.tanh(gates[:, H3:])
        i = ifo[:, 0 * Hp:1 * Hp]
        f = ifo[:, 1 * Hp:2 * Hp]
        o = ifo[:, 2 * Hp:3 * Hp]
        c_new = f * c + i * g
        h_new = o * jnp.tanh(c_new)
        return h_new, c_new

    def enc_step(t, carry):
        h, c = carry
        row = pl.multiple_of(t * Bp, Bp)     # 8-aligned unmasked tile load
        gates = xw_scr[pl.ds(row, Bp), :] + jnp.dot(
            h.astype(jnp.bfloat16), enc_whh,
            preferred_element_type=jnp.float32)
        return gate_math(gates, c)

    h_enc, _ = jax.lax.fori_loop(0, T, enc_step, (zeros, zeros), unroll=unroll)
    henc_ref[...] = h_enc

    # ---- decoder: input at every step is h_enc -> hoist its gate GEMM ----
    dec_gate_x = (jnp.dot(h_enc.astype(jnp.bfloat16), dec_wih_ref[...],
                          preferred_element_type=jnp.float32)
                  + dec_b_ref[...])
    dec_whh = dec_whh_ref[...]

    def dec_step(t, carry):
        h, c = carry
        gates = dec_gate_x + jnp.dot(h.astype(jnp.bfloat16), dec_whh,
                                     preferred_element_type=jnp.float32)
        h_new, c_new = gate_math(gates, c)
        row = pl.multiple_of(t * Bp, Bp)     # 8-aligned unmasked tile store
        hs_scr[pl.ds(row, Bp), :] = h_new
        return (h_new, c_new)

    jax.lax.fori_loop(0, T, dec_step, (zeros, zeros), unroll=unroll)

    # one lane-dense (Op = 128) projection over all T*Bp decoder hidden states
    dec_ref[...] = (jnp.dot(hs_scr[...].astype(jnp.bfloat16), dec_wout_ref[...],
                            preferred_element_type=jnp.float32)
                    + dec_bout_ref[...])

    # ---- alpha head (dead alpha_hidden_2 matmul removed; lane-dense out) ----
    a1 = jnp.maximum(
        jnp.dot(h_enc.astype(jnp.bfloat16), a1w_ref[...],
                preferred_element_type=jnp.float32) + a1b_ref[...], 0.0)
    alpha_ref[...] = (jnp.dot(a1.astype(jnp.bfloat16), a3w_ref[...],
                              preferred_element_type=jnp.float32)
                      + a3b_ref[...])


# ---------------------------------------------------------------------------
# One-time parameter prep: gate reorder [i,f,g,o] -> [i,f,o,g], lane padding
# (gate blocks -> Hp, alpha hidden -> Ap, outputs -> 128), bf16 weight cast.
# Zero padding is mathematically inert: padded h/c lanes provably stay 0.
# ---------------------------------------------------------------------------
def prepare_params(p, hidden):
    H = hidden
    Hp = _round_up(H, LANE)
    A = p['a1_w'].shape[1]
    Ap = _round_up(A, LANE)
    O = p['dec_out_w'].shape[1]
    Op = _round_up(O, LANE)
    bf16 = jnp.bfloat16

    def pad_cols(w, n):
        return jnp.pad(w, ((0, 0), (0, n - w.shape[1])))

    def pad_rows(w, n):
        return jnp.pad(w, ((0, n - w.shape[0]), (0, 0)))

    def gate_cols(w):
        # PyTorch gate order [i, f, g, o] -> kernel order [i, f, o, g],
        # each block padded to Hp lanes.
        blocks = [w[:, k * H:(k + 1) * H] for k in (0, 1, 3, 2)]
        return jnp.concatenate([pad_cols(b, Hp) for b in blocks], axis=1)

    return {
        'enc_wih': gate_cols(p['enc_wih']).astype(bf16),
        'enc_whh': gate_cols(pad_rows(p['enc_whh'], Hp)).astype(bf16),
        'enc_b': gate_cols(p['enc_b']),                       # biases stay f32
        'dec_wih': gate_cols(pad_rows(p['dec_wih'], Hp)).astype(bf16),
        'dec_whh': gate_cols(pad_rows(p['dec_whh'], Hp)).astype(bf16),
        'dec_b': gate_cols(p['dec_b']),
        'dec_out_w': pad_cols(pad_rows(p['dec_out_w'], Hp), Op).astype(bf16),
        'dec_out_b': pad_cols(p['dec_out_b'], Op),
        'a1_w': pad_cols(pad_rows(p['a1_w'], Hp), Ap).astype(bf16),
        'a1_b': pad_cols(p['a1_b'], Ap),
        'a3_w': pad_cols(pad_rows(p['a3_w'], Ap), LANE).astype(bf16),
        'a3_b': pad_cols(p['a3_b'], LANE),
    }


# ---------------------------------------------------------------------------
# Wrapper
# ---------------------------------------------------------------------------
def mvtae_forward(pp, x_btd, hidden, out_dims):
    """x_btd: (B, T, D_in) float32 (matches torch batch_first encoder input)."""
    B, T, D = x_btd.shape
    Bp = _round_up(B, SUBLANE)
    Hp = pp['enc_whh'].shape[0]
    Op = pp['dec_out_w'].shape[1]
    Oa = pp['a3_w'].shape[1]

    # Batch-major; contiguous reshape only (no HBM transpose pass over x).
    x2d = x_btd.reshape(B, T * D)

    henc_p, dec_flat, alpha_p = pl.pallas_call(
        mvtae_kernel,
        out_shape=(jax.ShapeDtypeStruct((Bp, Hp), jnp.float32),
                   jax.ShapeDtypeStruct((T * Bp, Op), jnp.float32),
                   jax.ShapeDtypeStruct((Bp, Oa), jnp.float32)),
        scratch_shapes=[pltpu.VMEM((T * Bp, D), jnp.float32),      # time-major x
                        pltpu.VMEM((T * Bp, 4 * Hp), jnp.float32),  # x @ W_ih
                        pltpu.VMEM((T * Bp, Hp), jnp.float32)],     # dec h_t
        compiler_params=pltpu.CompilerParams(
            vmem_limit_bytes=_vmem_limit_bytes()),
    )(x2d, pp['enc_wih'], pp['enc_whh'], pp['enc_b'],
      pp['dec_wih'], pp['dec_whh'], pp['dec_b'],
      pp['dec_out_w'], pp['dec_out_b'],
      pp['a1_w'], pp['a1_b'], pp['a3_w'], pp['a3_b'])

    h_enc = henc_p[:B, :hidden]                                  # strip padding
    hidden_state_vector = h_enc[None, ...]                       # (1, B, H)
    dec3 = dec_flat.reshape(T, Bp, Op)[:, :B, :out_dims]         # (T, B, O)
    decoder_output = jnp.transpose(dec3, (1, 0, 2))              # (B, T, O)
    alpha_output = jnp.squeeze(alpha_p[:B, :1])                  # (B,)
    return hidden_state_vector, decoder_output, alpha_output


# ---------------------------------------------------------------------------
# Pure-JAX reference (correctness check; unpadded f32 weights, torch gate order)
# ---------------------------------------------------------------------------
def _lstm_step_ref(x, h, c, wih, whh, b):
    H = h.shape[-1]
    gates = x @ wih + h @ whh + b
    i = jax.nn.sigmoid(gates[:, 0 * H:1 * H])
    f = jax.nn.sigmoid(gates[:, 1 * H:2 * H])
    g = jnp.tanh(gates[:, 2 * H:3 * H])
    o = jax.nn.sigmoid(gates[:, 3 * H:4 * H])
    c_new = f * c + i * g
    h_new = o * jnp.tanh(c_new)
    return h_new, c_new


def reference_forward(params, x_btd):
    x_tbd = jnp.transpose(x_btd, (1, 0, 2))
    B = x_btd.shape[0]
    H = params['enc_whh'].shape[0]
    T = x_tbd.shape[0]
    zeros = jnp.zeros((B, H), jnp.float32)

    def enc_step(carry, xt):
        h, c = carry
        h, c = _lstm_step_ref(xt, h, c, params['enc_wih'], params['enc_whh'],
                              params['enc_b'])
        return (h, c), None

    (h_enc, _), _ = jax.lax.scan(enc_step, (zeros, zeros), x_tbd)

    def dec_step(carry, _):
        h, c = carry
        h, c = _lstm_step_ref(h_enc, h, c, params['dec_wih'], params['dec_whh'],
                              params['dec_b'])
        return (h, c), h

    _, hs = jax.lax.scan(dec_step, (zeros, zeros), None, length=T)
    dec_out = jnp.einsum('tbh,ho->tbo', hs, params['dec_out_w']) + params['dec_out_b']
    a1 = jnp.maximum(h_enc @ params['a1_w'] + params['a1_b'], 0.0)
    alpha = a1 @ params['a3_w'] + params['a3_b']
    return h_enc[None], jnp.transpose(dec_out, (1, 0, 2)), jnp.squeeze(alpha)


# ---------------------------------------------------------------------------
# Deterministic parameter init (uniform, PyTorch-style bounds)
# ---------------------------------------------------------------------------
def init_params(key, in_dims, hidden, alpha_hidden, out_dims):
    ks = jax.random.split(key, 16)

    def unif(k, shape, bound):
        return jax.random.uniform(k, shape, jnp.float32, minval=-bound, maxval=bound)

    kb = 1.0 / float(hidden) ** 0.5
    ka = 1.0 / float(alpha_hidden) ** 0.5
    return {
        'enc_wih': unif(ks[0], (in_dims, 4 * hidden), kb),
        'enc_whh': unif(ks[1], (hidden, 4 * hidden), kb),
        'enc_b':   unif(ks[2], (1, 4 * hidden), kb) + unif(ks[3], (1, 4 * hidden), kb),
        'dec_wih': unif(ks[4], (hidden, 4 * hidden), kb),
        'dec_whh': unif(ks[5], (hidden, 4 * hidden), kb),
        'dec_b':   unif(ks[6], (1, 4 * hidden), kb) + unif(ks[7], (1, 4 * hidden), kb),
        'dec_out_w': unif(ks[8], (hidden, out_dims), kb),
        'dec_out_b': unif(ks[9], (1, out_dims), kb),
        'a1_w': unif(ks[10], (hidden, alpha_hidden), kb),
        'a1_b': unif(ks[11], (1, alpha_hidden), kb),
        'a2_w': unif(ks[12], (alpha_hidden, alpha_hidden), ka),   # dead in fwd
        'a2_b': unif(ks[13], (1, alpha_hidden), ka),              # dead in fwd
        'a3_w': unif(ks[14], (alpha_hidden, 1), ka),
        'a3_b': unif(ks[15], (1, 1), ka),
    }


if __name__ == "__main__":
    B, T, D_IN, H, A, D_OUT = 2, 8, 4, 32, 16, 4
    key = jax.random.PRNGKey(0)
    k_par, k_x = jax.random.split(key)
    params = init_params(k_par, D_IN, H, A, D_OUT)
    x = jax.random.normal(k_x, (B, T, D_IN), jnp.float32)

    pp = prepare_params(params, H)            # one-time pad / reorder / bf16
    hsv, dec_out, alpha = mvtae_forward(pp, x, H, D_OUT)
    jax.block_until_ready((hsv, dec_out, alpha))

    hsv_r, dec_r, alpha_r = reference_forward(params, x)
    assert hsv.shape == (1, B, H)
    assert dec_out.shape == (B, T, D_OUT)
    assert alpha.shape == (B,)
    # bf16 weights vs f32 reference: expected ~1e-3..1e-2 deviation (review note)
    TOL = 3e-2
    assert jnp.allclose(hsv, hsv_r, atol=TOL, rtol=TOL)
    assert jnp.allclose(dec_out, dec_r, atol=TOL, rtol=TOL)
    assert jnp.allclose(alpha, alpha_r, atol=TOL, rtol=TOL)

    # TODO(synk): training machinery (Adam, MSE losses, grad clip, TensorBoard)
    # and train-mode dropout RNG are out of scope; dropout is identity in eval.
    print("KERNEL_OK")
</pallas_src>

<mosaic_0001>
module attributes {stable_mosaic.version = 11 : i64} {
  func.func @mvtae_kernel(%arg0: memref<2x32xf32, #tpu.memory_space<vmem>>, %arg1: memref<4x512xbf16, #tpu.memory_space<vmem>>, %arg2: memref<128x512xbf16, #tpu.memory_space<vmem>>, %arg3: memref<1x512xf32, #tpu.memory_space<vmem>>, %arg4: memref<128x512xbf16, #tpu.memory_space<vmem>>, %arg5: memref<128x512xbf16, #tpu.memory_space<vmem>>, %arg6: memref<1x512xf32, #tpu.memory_space<vmem>>, %arg7: memref<128x128xbf16, #tpu.memory_space<vmem>>, %arg8: memref<1x128xf32, #tpu.memory_space<vmem>>, %arg9: memref<128x128xbf16, #tpu.memory_space<vmem>>, %arg10: memref<1x128xf32, #tpu.memory_space<vmem>>, %arg11: memref<128x128xbf16, #tpu.memory_space<vmem>>, %arg12: memref<1x128xf32, #tpu.memory_space<vmem>>, %arg13: memref<8x128xf32, #tpu.memory_space<vmem>>, %arg14: memref<64x128xf32, #tpu.memory_space<vmem>>, %arg15: memref<8x128xf32, #tpu.memory_space<vmem>>, %arg16: memref<64x4xf32, #tpu.memory_space<vmem>>, %arg17: memref<64x512xf32, #tpu.memory_space<vmem>>, %arg18: memref<64x128xf32, #tpu.memory_space<vmem>>) attributes {dimension_semantics = [], scalar_prefetch = 0 : i64, scratch_operands = 3 : i64, tpu.core_type = #tpu.core_type<tc>} {
    %cst = arith.constant 0.000000e+00 : f32
    %0 = vector.broadcast %cst : f32 to vector<64x4xf32>
    %c0 = arith.constant 0 : index
    %c0_0 = arith.constant 0 : index
    %1 = vector.load %arg16[%c0, %c0_0] : memref<64x4xf32, #tpu.memory_space<vmem>>, vector<64x4xf32>
    tpu.vector_store %arg16[%c0, %c0_0], %0 {strides = array<i32>} : memref<64x4xf32, #tpu.memory_space<vmem>>, vector<64x4xf32>,
    %c0_1 = arith.constant 0 : index
    %c0_2 = arith.constant 0 : index
    %2 = vector.load %arg0[%c0_1, %c0_2] : memref<2x32xf32, #tpu.memory_space<vmem>>, vector<2x32xf32>
    %3 = vector.extract_strided_slice %2 {offsets = [0, 0], sizes = [2, 4], strides = [1, 1]} : vector<2x32xf32> to vector<2x4xf32>
    %c0_3 = arith.constant 0 : index
    %c0_4 = arith.constant 0 : index
    %4 = vector.load %arg16[%c0_3, %c0_4] : memref<64x4xf32, #tpu.memory_space<vmem>>, vector<2x4xf32>
    tpu.vector_store %arg16[%c0_3, %c0_4], %3 {strides = array<i32>} : memref<64x4xf32, #tpu.memory_space<vmem>>, vector<2x4xf32>,
    %5 = vector.extract_strided_slice %2 {offsets = [0, 4], sizes = [2, 4], strides = [1, 1]} : vector<2x32xf32> to vector<2x4xf32>
    %c8 = arith.constant 8 : index
    %c0_5 = arith.constant 0 : index
    %6 = vector.load %arg16[%c8, %c0_5] : memref<64x4xf32, #tpu.memory_space<vmem>>, vector<2x4xf32>
    tpu.vector_store %arg16[%c8, %c0_5], %5 {strides = array<i32>} : memref<64x4xf32, #tpu.memory_space<vmem>>, vector<2x4xf32>,
    %7 = vector.extract_strided_slice %2 {offsets = [0, 8], sizes = [2, 4], strides = [1, 1]} : vector<2x32xf32> to vector<2x4xf32>
    %c16 = arith.constant 16 : index
    %c0_6 = arith.constant 0 : index
    %8 = vector.load %arg16[%c16, %c0_6] : memref<64x4xf32, #tpu.memory_space<vmem>>, vector<2x4xf32>
    tpu.vector_store %arg16[%c16, %c0_6], %7 {strides = array<i32>} : memref<64x4xf32, #tpu.memory_space<vmem>>, vector<2x4xf32>,
    %9 = vector.extract_strided_slice %2 {offsets = [0, 12], sizes = [2, 4], strides = [1, 1]} : vector<2x32xf32> to vector<2x4xf32>
    %c24 = arith.constant 24 : index
    %c0_7 = arith.constant 0 : index
    %10 = vector.load %arg16[%c24, %c0_7] : memref<64x4xf32, #tpu.memory_space<vmem>>, vector<2x4xf32>
    tpu.vector_store %arg16[%c24, %c0_7], %9 {strides = array<i32>} : memref<64x4xf32, #tpu.memory_space<vmem>>, vector<2x4xf32>,
    %11 = vector.extract_strided_slice %2 {offsets = [0, 16], sizes = [2, 4], strides = [1, 1]} : vector<2x32xf32> to vector<2x4xf32>
    %c32 = arith.constant 32 : index
    %c0_8 = arith.constant 0 : index
    %12 = vector.load %arg16[%c32, %c0_8] : memref<64x4xf32, #tpu.memory_space<vmem>>, vector<2x4xf32>
    tpu.vector_store %arg16[%c32, %c0_8], %11 {strides = array<i32>} : memref<64x4xf32, #tpu.memory_space<vmem>>, vector<2x4xf32>,
    %13 = vector.extract_strided_slice %2 {offsets = [0, 20], sizes = [2, 4], strides = [1, 1]} : vector<2x32xf32> to vector<2x4xf32>
    %c40 = arith.constant 40 : index
    %c0_9 = arith.constant 0 : index
    %14 = vector.load %arg16[%c40, %c0_9] : memref<64x4xf32, #tpu.memory_space<vmem>>, vector<2x4xf32>
    tpu.vector_store %arg16[%c40, %c0_9], %13 {strides = array<i32>} : memref<64x4xf32, #tpu.memory_space<vmem>>, vector<2x4xf32>,
    %15 = vector.extract_strided_slice %2 {offsets = [0, 24], sizes = [2, 4], strides = [1, 1]} : vector<2x32xf32> to vector<2x4xf32>
    %c48 = arith.constant 48 : index
    %c0_10 = arith.constant 0 : index
    %16 = vector.load %arg16[%c48, %c0_10] : memref<64x4xf32, #tpu.memory_space<vmem>>, vector<2x4xf32>
    tpu.vector_store %arg16[%c48, %c0_10], %15 {strides = array<i32>} : memref<64x4xf32, #tpu.memory_space<vmem>>, vector<2x4xf32>,
    %17 = vector.extract_strided_slice %2 {offsets = [0, 28], sizes = [2, 4], strides = [1, 1]} : vector<2x32xf32> to vector<2x4xf32>
    %c56 = arith.constant 56 : index
    %c0_11 = arith.constant 0 : index
    %18 = vector.load %arg16[%c56, %c0_11] : memref<64x4xf32, #tpu.memory_space<vmem>>, vector<2x4xf32>
    tpu.vector_store %arg16[%c56, %c0_11], %17 {strides = array<i32>} : memref<64x4xf32, #tpu.memory_space<vmem>>, vector<2x4xf32>,
    %c0_12 = arith.constant 0 : index
    %c0_13 = arith.constant 0 : index
    %19 = vector.load %arg16[%c0_12, %c0_13] : memref<64x4xf32, #tpu.memory_space<vmem>>, vector<64x4xf32>
    %20 = arith.truncf %19 : vector<64x4xf32> to vector<64x4xbf16>
    %c0_14 = arith.constant 0 : index
    %c0_15 = arith.constant 0 : index
    %21 = vector.load %arg1[%c0_14, %c0_15] : memref<4x512xbf16, #tpu.memory_space<vmem>>, vector<4x512xbf16>
    %cst_16 = arith.constant dense<0.000000e+00> : vector<64x512xf32>
    %22 = tpu.matmul %20, %21, %cst_16 {dimension_numbers = #tpu.dot_dimension_numbers<[1], [0], [0], [1], [0, 0, 1, 1], [], []>} : vector<64x4xbf16>, vector<4x512xbf16>, vector<64x512xf32> -> vector<64x512xf32>
    %c0_17 = arith.constant 0 : index
    %c0_18 = arith.constant 0 : index
    %23 = vector.load %arg3[%c0_17, %c0_18] : memref<1x512xf32, #tpu.memory_space<vmem>>, vector<1x512xf32>
    %24 = vector.broadcast %23 : vector<1x512xf32> to vector<64x512xf32>
    %25 = arith.addf %22, %24 : vector<64x512xf32>
    %c0_19 = arith.constant 0 : index
    %c0_20 = arith.constant 0 : index
    %26 = vector.load %arg17[%c0_19, %c0_20] : memref<64x512xf32, #tpu.memory_space<vmem>>, vector<64x512xf32>
    tpu.vector_store %arg17[%c0_19, %c0_20], %25 {strides = array<i32>} : memref<64x512xf32, #tpu.memory_space<vmem>>, vector<64x512xf32>,
    %c0_21 = arith.constant 0 : index
    %c0_22 = arith.constant 0 : index
    %27 = vector.load %arg2[%c0_21, %c0_22] : memref<128x512xbf16, #tpu.memory_space<vmem>>, vector<128x512xbf16>
    %cst_23 = arith.constant 0.000000e+00 : f32
    %28 = vector.broadcast %cst_23 : f32 to vector<8x128xf32>
    %c0_i32 = arith.constant 0 : i32
    %c8_i32 = arith.constant 8 : i32
    %29 = arith.muli %c0_i32, %c8_i32 : i32
    %30 = tpu.assume_multiple %29, 8 : i32
    %31 = arith.index_cast %30 : i32 to index
    %c0_24 = arith.constant 0 : index
    %32 = vector.load %arg17[%31, %c0_24] : memref<64x512xf32, #tpu.memory_space<vmem>>, vector<8x512xf32>
    %33 = arith.truncf %28 : vector<8x128xf32> to vector<8x128xbf16>
    %cst_25 = arith.constant dense<0.000000e+00> : vector<8x512xf32>
    %34 = tpu.matmul %33, %27, %cst_25 {dimension_numbers = #tpu.dot_dimension_numbers<[1], [0], [0], [1], [0, 0, 1, 1], [], []>} : vector<8x128xbf16>, vector<128x512xbf16>, vector<8x512xf32> -> vector<8x512xf32>
    %35 = arith.addf %32, %34 : vector<8x512xf32>
    %36 = vector.extract_strided_slice %35 {offsets = [0, 0], sizes = [8, 384], strides = [1, 1]} : vector<8x512xf32> to vector<8x384xf32>
    %37 = arith.negf %36 : vector<8x384xf32>
    %38 = math.exp %37 : vector<8x384xf32>
    %cst_26 = arith.constant 1.000000e+00 : f32
    %39 = vector.broadcast %cst_26 : f32 to vector<8x384xf32>
    %40 = arith.addf %39, %38 : vector<8x384xf32>
    %41 = arith.divf %39, %40 : vector<8x384xf32>
    %42 = vector.extract_strided_slice %35 {offsets = [0, 384], sizes = [8, 128], strides = [1, 1]} : vector<8x512xf32> to vector<8x128xf32>
    %43 = math.tanh %42 : vector<8x128xf32>
    %44 = vector.extract_strided_slice %41 {offsets = [0, 0], sizes = [8, 128], strides = [1, 1]} : vector<8x384xf32> to vector<8x128xf32>
    %45 = vector.extract_strided_slice %41 {offsets = [0, 128], sizes = [8, 128], strides = [1, 1]} : vector<8x384xf32> to vector<8x128xf32>
    %46 = vector.extract_strided_slice %41 {offsets = [0, 256], sizes = [8, 128], strides = [1, 1]} : vector<8x384xf32> to vector<8x128xf32>
    %47 = arith.mulf %45, %28 : vector<8x128xf32>
    %48 = arith.mulf %44, %43 : vector<8x128xf32>
    %49 = arith.addf %47, %48 : vector<8x128xf32>
    %50 = math.tanh %49 : vector<8x128xf32>
    %51 = arith.mulf %46, %50 : vector<8x128xf32>
    %c1_i32 = arith.constant 1 : i32
    %c8_i32_27 = arith.constant 8 : i32
    %52 = arith.muli %c1_i32, %c8_i32_27 : i32
    %53 = tpu.assume_multiple %52, 8 : i32
    %54 = arith.index_cast %53 : i32 to index
    %c0_28 = arith.constant 0 : index
    %55 = vector.load %arg17[%54, %c0_28] : memref<64x512xf32, #tpu.memory_space<vmem>>, vector<8x512xf32>
    %56 = arith.truncf %51 : vector<8x128xf32> to vector<8x128xbf16>
    %cst_29 = arith.constant dense<0.000000e+00> : vector<8x512xf32>
    %57 = tpu.matmul %56, %27, %cst_29 {dimension_numbers = #tpu.dot_dimension_numbers<[1], [0], [0], [1], [0, 0, 1, 1], [], []>} : vector<8x128xbf16>, vector<128x512xbf16>, vector<8x512xf32> -> vector<8x512xf32>
    %58 = arith.addf %55, %57 : vector<8x512xf32>
    %59 = vector.extract_strided_slice %58 {offsets = [0, 0], sizes = [8, 384], strides = [1, 1]} : vector<8x512xf32> to vector<8x384xf32>
    %60 = arith.negf %59 : vector<8x384xf32>
    %61 = math.exp %60 : vector<8x384xf32>
    %cst_30 = arith.constant 1.000000e+00 : f32
    %62 = vector.broadcast %cst_30 : f32 to vector<8x384xf32>
    %63 = arith.addf %62, %61 : vector<8x384xf32>
    %64 = arith.divf %62, %63 : vector<8x384xf32>
    %65 = vector.extract_strided_slice %58 {offsets = [0, 384], sizes = [8, 128], strides = [1, 1]} : vector<8x512xf32> to vector<8x128xf32>
    %66 = math.tanh %65 : vector<8x128xf32>
    %67 = vector.extract_strided_slice %64 {offsets = [0, 0], sizes = [8, 128], strides = [1, 1]} : vector<8x384xf32> to vector<8x128xf32>
    %68 = vector.extract_strided_slice %64 {offsets = [0, 128], sizes = [8, 128], strides = [1, 1]} : vector<8x384xf32> to vector<8x128xf32>
    %69 = vector.extract_strided_slice %64 {offsets = [0, 256], sizes = [8, 128], strides = [1, 1]} : vector<8x384xf32> to vector<8x128xf32>
    %70 = arith.mulf %68, %49 : vector<8x128xf32>
    %71 = arith.mulf %67, %66 : vector<8x128xf32>
    %72 = arith.addf %70, %71 : vector<8x128xf32>
    %73 = math.tanh %72 : vector<8x128xf32>
    %74 = arith.mulf %69, %73 : vector<8x128xf32>
    %c2_i32 = arith.constant 2 : i32
    %c8_i32_31 = arith.constant 8 : i32
    %75 = arith.muli %c2_i32, %c8_i32_31 : i32
    %76 = tpu.assume_multiple %75, 8 : i32
    %77 = arith.index_cast %76 : i32 to index
    %c0_32 = arith.constant 0 : index
    %78 = vector.load %arg17[%77, %c0_32] : memref<64x512xf32, #tpu.memory_space<vmem>>, vector<8x512xf32>
    %79 = arith.truncf %74 : vector<8x128xf32> to vector<8x128xbf16>
    %cst_33 = arith.constant dense<0.000000e+00> : vector<8x512xf32>
    %80 = tpu.matmul %79, %27, %cst_33 {dimension_numbers = #tpu.dot_dimension_numbers<[1], [0], [0], [1], [0, 0, 1, 1], [], []>} : vector<8x128xbf16>, vector<128x512xbf16>, vector<8x512xf32> -> vector<8x512xf32>
    %81 = arith.addf %78, %80 : vector<8x512xf32>
    %82 = vector.extract_strided_slice %81 {offsets = [0, 0], sizes = [8, 384], strides = [1, 1]} : vector<8x512xf32> to vector<8x384xf32>
    %83 = arith.negf %82 : vector<8x384xf32>
    %84 = math.exp %83 : vector<8x384xf32>
    %cst_34 = arith.constant 1.000000e+00 : f32
    %85 = vector.broadcast %cst_34 : f32 to vector<8x384xf32>
    %86 = arith.addf %85, %84 : vector<8x384xf32>
    %87 = arith.divf %85, %86 : vector<8x384xf32>
    %88 = vector.extract_strided_slice %81 {offsets = [0, 384], sizes = [8, 128], strides = [1, 1]} : vector<8x512xf32> to vector<8x128xf32>
    %89 = math.tanh %88 : vector<8x128xf32>
    %90 = vector.extract_strided_slice %87 {offsets = [0, 0], sizes = [8, 128], strides = [1, 1]} : vector<8x384xf32> to vector<8x128xf32>
    %91 = vector.extract_strided_slice %87 {offsets = [0, 128], sizes = [8, 128], strides = [1, 1]} : vector<8x384xf32> to vector<8x128xf32>
    %92 = vector.extract_strided_slice %87 {offsets = [0, 256], sizes = [8, 128], strides = [1, 1]} : vector<8x384xf32> to vector<8x128xf32>
    %93 = arith.mulf %91, %72 : vector<8x128xf32>
    %94 = arith.mulf %90, %89 : vector<8x128xf32>
    %95 = arith.addf %93, %94 : vector<8x128xf32>
    %96 = math.tanh %95 : vector<8x128xf32>
    %97 = arith.mulf %92, %96 : vector<8x128xf32>
    %c3_i32 = arith.constant 3 : i32
    %c8_i32_35 = arith.constant 8 : i32
    %98 = arith.muli %c3_i32, %c8_i32_35 : i32
    %99 = tpu.assume_multiple %98, 8 : i32
    %100 = arith.index_cast %99 : i32 to index
    %c0_36 = arith.constant 0 : index
    %101 = vector.load %arg17[%100, %c0_36] : memref<64x512xf32, #tpu.memory_space<vmem>>, vector<8x512xf32>
    %102 = arith.truncf %97 : vector<8x128xf32> to vector<8x128xbf16>
    %cst_37 = arith.constant dense<0.000000e+00> : vector<8x512xf32>
    %103 = tpu.matmul %102, %27, %cst_37 {dimension_numbers = #tpu.dot_dimension_numbers<[1], [0], [0], [1], [0, 0, 1, 1], [], []>} : vector<8x128xbf16>, vector<128x512xbf16>, vector<8x512xf32> -> vector<8x512xf32>
    %104 = arith.addf %101, %103 : vector<8x512xf32>
    %105 = vector.extract_strided_slice %104 {offsets = [0, 0], sizes = [8, 384], strides = [1, 1]} : vector<8x512xf32> to vector<8x384xf32>
    %106 = arith.negf %105 : vector<8x384xf32>
    %107 = math.exp %106 : vector<8x384xf32>
    %cst_38 = arith.constant 1.000000e+00 : f32
    %108 = vector.broadcast %cst_38 : f32 to vector<8x384xf32>
    %109 = arith.addf %108, %107 : vector<8x384xf32>
    %110 = arith.divf %108, %109 : vector<8x384xf32>
    %111 = vector.extract_strided_slice %104 {offsets = [0, 384], sizes = [8, 128], strides = [1, 1]} : vector<8x512xf32> to vector<8x128xf32>
    %112 = math.tanh %111 : vector<8x128xf32>
    %113 = vector.extract_strided_slice %110 {offsets = [0, 0], sizes = [8, 128], strides = [1, 1]} : vector<8x384xf32> to vector<8x128xf32>
    %114 = vector.extract_strided_slice %110 {offsets = [0, 128], sizes = [8, 128], strides = [1, 1]} : vector<8x384xf32> to vector<8x128xf32>
    %115 = vector.extract_strided_slice %110 {offsets = [0, 256], sizes = [8, 128], strides = [1, 1]} : vector<8x384xf32> to vector<8x128xf32>
    %116 = arith.mulf %114, %95 : vector<8x128xf32>
    %117 = arith.mulf %113, %112 : vector<8x128xf32>
    %118 = arith.addf %116, %117 : vector<8x128xf32>
    %119 = math.tanh %118 : vector<8x128xf32>
    %120 = arith.mulf %115, %119 : vector<8x128xf32>
    %c4_i32 = arith.constant 4 : i32
    %c8_i32_39 = arith.constant 8 : i32
    %121 = arith.muli %c4_i32, %c8_i32_39 : i32
    %122 = tpu.assume_multiple %121, 8 : i32
    %123 = arith.index_cast %122 : i32 to index
    %c0_40 = arith.constant 0 : index
    %124 = vector.load %arg17[%123, %c0_40] : memref<64x512xf32, #tpu.memory_space<vmem>>, vector<8x512xf32>
    %125 = arith.truncf %120 : vector<8x128xf32> to vector<8x128xbf16>
    %cst_41 = arith.constant dense<0.000000e+00> : vector<8x512xf32>
    %126 = tpu.matmul %125, %27, %cst_41 {dimension_numbers = #tpu.dot_dimension_numbers<[1], [0], [0], [1], [0, 0, 1, 1], [], []>} : vector<8x128xbf16>, vector<128x512xbf16>, vector<8x512xf32> -> vector<8x512xf32>
    %127 = arith.addf %124, %126 : vector<8x512xf32>
    %128 = vector.extract_strided_slice %127 {offsets = [0, 0], sizes = [8, 384], strides = [1, 1]} : vector<8x512xf32> to vector<8x384xf32>
    %129 = arith.negf %128 : vector<8x384xf32>
    %130 = math.exp %129 : vector<8x384xf32>
    %cst_42 = arith.constant 1.000000e+00 : f32
    %131 = vector.broadcast %cst_42 : f32 to vector<8x384xf32>
    %132 = arith.addf %131, %130 : vector<8x384xf32>
    %133 = arith.divf %131, %132 : vector<8x384xf32>
    %134 = vector.extract_strided_slice %127 {offsets = [0, 384], sizes = [8, 128], strides = [1, 1]} : vector<8x512xf32> to vector<8x128xf32>
    %135 = math.tanh %134 : vector<8x128xf32>
    %136 = vector.extract_strided_slice %133 {offsets = [0, 0], sizes = [8, 128], strides = [1, 1]} : vector<8x384xf32> to vector<8x128xf32>
    %137 = vector.extract_strided_slice %133 {offsets = [0, 128], sizes = [8, 128], strides = [1, 1]} : vector<8x384xf32> to vector<8x128xf32>
    %138 = vector.extract_strided_slice %133 {offsets = [0, 256], sizes = [8, 128], strides = [1, 1]} : vector<8x384xf32> to vector<8x128xf32>
    %139 = arith.mulf %137, %118 : vector<8x128xf32>
    %140 = arith.mulf %136, %135 : vector<8x128xf32>
    %141 = arith.addf %139, %140 : vector<8x128xf32>
    %142 = math.tanh %141 : vector<8x128xf32>
    %143 = arith.mulf %138, %142 : vector<8x128xf32>
    %c5_i32 = arith.constant 5 : i32
    %c8_i32_43 = arith.constant 8 : i32
    %144 = arith.muli %c5_i32, %c8_i32_43 : i32
    %145 = tpu.assume_multiple %144, 8 : i32
    %146 = arith.index_cast %145 : i32 to index
    %c0_44 = arith.constant 0 : index
    %147 = vector.load %arg17[%146, %c0_44] : memref<64x512xf32, #tpu.memory_space<vmem>>, vector<8x512xf32>
    %148 = arith.truncf %143 : vector<8x128xf32> to vector<8x128xbf16>
    %cst_45 = arith.constant dense<0.000000e+00> : vector<8x512xf32>
    %149 = tpu.matmul %148, %27, %cst_45 {dimension_numbers = #tpu.dot_dimension_numbers<[1], [0], [0], [1], [0, 0, 1, 1], [], []>} : vector<8x128xbf16>, vector<128x512xbf16>, vector<8x512xf32> -> vector<8x512xf32>
    %150 = arith.addf %147, %149 : vector<8x512xf32>
    %151 = vector.extract_strided_slice %150 {offsets = [0, 0], sizes = [8, 384], strides = [1, 1]} : vector<8x512xf32> to vector<8x384xf32>
    %152 = arith.negf %151 : vector<8x384xf32>
    %153 = math.exp %152 : vector<8x384xf32>
    %cst_46 = arith.constant 1.000000e+00 : f32
    %154 = vector.broadcast %cst_46 : f32 to vector<8x384xf32>
    %155 = arith.addf %154, %153 : vector<8x384xf32>
    %156 = arith.divf %154, %155 : vector<8x384xf32>
    %157 = vector.extract_strided_slice %150 {offsets = [0, 384], sizes = [8, 128], strides = [1, 1]} : vector<8x512xf32> to vector<8x128xf32>
    %158 = math.tanh %157 : vector<8x128xf32>
    %159 = vector.extract_strided_slice %156 {offsets = [0, 0], sizes = [8, 128], strides = [1, 1]} : vector<8x384xf32> to vector<8x128xf32>
    %160 = vector.extract_strided_slice %156 {offsets = [0, 128], sizes = [8, 128], strides = [1, 1]} : vector<8x384xf32> to vector<8x128xf32>
    %161 = vector.extract_strided_slice %156 {offsets = [0, 256], sizes = [8, 128], strides = [1, 1]} : vector<8x384xf32> to vector<8x128xf32>
    %162 = arith.mulf %160, %141 : vector<8x128xf32>
    %163 = arith.mulf %159, %158 : vector<8x128xf32>
    %164 = arith.addf %162, %163 : vector<8x128xf32>
    %165 = math.tanh %164 : vector<8x128xf32>
    %166 = arith.mulf %161, %165 : vector<8x128xf32>
    %c6_i32 = arith.constant 6 : i32
    %c8_i32_47 = arith.constant 8 : i32
    %167 = arith.muli %c6_i32, %c8_i32_47 : i32
    %168 = tpu.assume_multiple %167, 8 : i32
    %169 = arith.index_cast %168 : i32 to index
    %c0_48 = arith.constant 0 : index
    %170 = vector.load %arg17[%169, %c0_48] : memref<64x512xf32, #tpu.memory_space<vmem>>, vector<8x512xf32>
    %171 = arith.truncf %166 : vector<8x128xf32> to vector<8x128xbf16>
    %cst_49 = arith.constant dense<0.000000e+00> : vector<8x512xf32>
    %172 = tpu.matmul %171, %27, %cst_49 {dimension_numbers = #tpu.dot_dimension_numbers<[1], [0], [0], [1], [0, 0, 1, 1], [], []>} : vector<8x128xbf16>, vector<128x512xbf16>, vector<8x512xf32> -> vector<8x512xf32>
    %173 = arith.addf %170, %172 : vector<8x512xf32>
    %174 = vector.extract_strided_slice %173 {offsets = [0, 0], sizes = [8, 384], strides = [1, 1]} : vector<8x512xf32> to vector<8x384xf32>
    %175 = arith.negf %174 : vector<8x384xf32>
    %176 = math.exp %175 : vector<8x384xf32>
    %cst_50 = arith.constant 1.000000e+00 : f32
    %177 = vector.broadcast %cst_50 : f32 to vector<8x384xf32>
    %178 = arith.addf %177, %176 : vector<8x384xf32>
    %179 = arith.divf %177, %178 : vector<8x384xf32>
    %180 = vector.extract_strided_slice %173 {offsets = [0, 384], sizes = [8, 128], strides = [1, 1]} : vector<8x512xf32> to vector<8x128xf32>
    %181 = math.tanh %180 : vector<8x128xf32>
    %182 = vector.extract_strided_slice %179 {offsets = [0, 0], sizes = [8, 128], strides = [1, 1]} : vector<8x384xf32> to vector<8x128xf32>
    %183 = vector.extract_strided_slice %179 {offsets = [0, 128], sizes = [8, 128], strides = [1, 1]} : vector<8x384xf32> to vector<8x128xf32>
    %184 = vector.extract_strided_slice %179 {offsets = [0, 256], sizes = [8, 128], strides = [1, 1]} : vector<8x384xf32> to vector<8x128xf32>
    %185 = arith.mulf %183, %164 : vector<8x128xf32>
    %186 = arith.mulf %182, %181 : vector<8x128xf32>
    %187 = arith.addf %185, %186 : vector<8x128xf32>
    %188 = math.tanh %187 : vector<8x128xf32>
    %189 = arith.mulf %184, %188 : vector<8x128xf32>
    %c7_i32 = arith.constant 7 : i32
    %c8_i32_51 = arith.constant 8 : i32
    %190 = arith.muli %c7_i32, %c8_i32_51 : i32
    %191 = tpu.assume_multiple %190, 8 : i32
    %192 = arith.index_cast %191 : i32 to index
    %c0_52 = arith.constant 0 : index
    %193 = vector.load %arg17[%192, %c0_52] : memref<64x512xf32, #tpu.memory_space<vmem>>, vector<8x512xf32>
    %194 = arith.truncf %189 : vector<8x128xf32> to vector<8x128xbf16>
    %cst_53 = arith.constant dense<0.000000e+00> : vector<8x512xf32>
    %195 = tpu.matmul %194, %27, %cst_53 {dimension_numbers = #tpu.dot_dimension_numbers<[1], [0], [0], [1], [0, 0, 1, 1], [], []>} : vector<8x128xbf16>, vector<128x512xbf16>, vector<8x512xf32> -> vector<8x512xf32>
    %196 = arith.addf %193, %195 : vector<8x512xf32>
    %197 = vector.extract_strided_slice %196 {offsets = [0, 0], sizes = [8, 384], strides = [1, 1]} : vector<8x512xf32> to vector<8x384xf32>
    %198 = arith.negf %197 : vector<8x384xf32>
    %199 = math.exp %198 : vector<8x384xf32>
    %cst_54 = arith.constant 1.000000e+00 : f32
    %200 = vector.broadcast %cst_54 : f32 to vector<8x384xf32>
    %201 = arith.addf %200, %199 : vector<8x384xf32>
    %202 = arith.divf %200, %201 : vector<8x384xf32>
    %203 = vector.extract_strided_slice %196 {offsets = [0, 384], sizes = [8, 128], strides = [1, 1]} : vector<8x512xf32> to vector<8x128xf32>
    %204 = math.tanh %203 : vector<8x128xf32>
    %205 = vector.extract_strided_slice %202 {offsets = [0, 0], sizes = [8, 128], strides = [1, 1]} : vector<8x384xf32> to vector<8x128xf32>
    %206 = vector.extract_strided_slice %202 {offsets = [0, 128], sizes = [8, 128], strides = [1, 1]} : vector<8x384xf32> to vector<8x128xf32>
    %207 = vector.extract_strided_slice %202 {offsets = [0, 256], sizes = [8, 128], strides = [1, 1]} : vector<8x384xf32> to vector<8x128xf32>
    %208 = arith.mulf %206, %187 : vector<8x128xf32>
    %209 = arith.mulf %205, %204 : vector<8x128xf32>
    %210 = arith.addf %208, %209 : vector<8x128xf32>
    %211 = math.tanh %210 : vector<8x128xf32>
    %212 = arith.mulf %207, %211 : vector<8x128xf32>
    %c8_i32_55 = arith.constant 8 : i32
    %c0_56 = arith.constant 0 : index
    %c0_57 = arith.constant 0 : index
    %213 = vector.load %arg13[%c0_56, %c0_57] : memref<8x128xf32, #tpu.memory_space<vmem>>, vector<8x128xf32>
    tpu.vector_store %arg13[%c0_56, %c0_57], %212 {strides = array<i32>} : memref<8x128xf32, #tpu.memory_space<vmem>>, vector<8x128xf32>,
    %214 = arith.truncf %212 : vector<8x128xf32> to vector<8x128xbf16>
    %c0_58 = arith.constant 0 : index
    %c0_59 = arith.constant 0 : index
    %215 = vector.load %arg4[%c0_58, %c0_59] : memref<128x512xbf16, #tpu.memory_space<vmem>>, vector<128x512xbf16>
    %cst_60 = arith.constant dense<0.000000e+00> : vector<8x512xf32>
    %216 = tpu.matmul %214, %215, %cst_60 {dimension_numbers = #tpu.dot_dimension_numbers<[1], [0], [0], [1], [0, 0, 1, 1], [], []>} : vector<8x128xbf16>, vector<128x512xbf16>, vector<8x512xf32> -> vector<8x512xf32>
    %c0_61 = arith.constant 0 : index
    %c0_62 = arith.constant 0 : index
    %217 = vector.load %arg6[%c0_61, %c0_62] : memref<1x512xf32, #tpu.memory_space<vmem>>, vector<1x512xf32>
    %218 = vector.broadcast %217 : vector<1x512xf32> to vector<8x512xf32>
    %219 = arith.addf %216, %218 : vector<8x512xf32>
    %c0_63 = arith.constant 0 : index
    %c0_64 = arith.constant 0 : index
    %220 = vector.load %arg5[%c0_63, %c0_64] : memref<128x512xbf16, #tpu.memory_space<vmem>>, vector<128x512xbf16>
    %c0_i32_65 = arith.constant 0 : i32
    %221 = arith.truncf %28 : vector<8x128xf32> to vector<8x128xbf16>
    %cst_66 = arith.constant dense<0.000000e+00> : vector<8x512xf32>
    %222 = tpu.matmul %221, %220, %cst_66 {dimension_numbers = #tpu.dot_dimension_numbers<[1], [0], [0], [1], [0, 0, 1, 1], [], []>} : vector<8x128xbf16>, vector<128x512xbf16>, vector<8x512xf32> -> vector<8x512xf32>
    %223 = arith.addf %219, %222 : vector<8x512xf32>
    %224 = vector.extract_strided_slice %223 {offsets = [0, 0], sizes = [8, 384], strides = [1, 1]} : vector<8x512xf32> to vector<8x384xf32>
    %225 = arith.negf %224 : vector<8x384xf32>
    %226 = math.exp %225 : vector<8x384xf32>
    %cst_67 = arith.constant 1.000000e+00 : f32
    %227 = vector.broadcast %cst_67 : f32 to vector<8x384xf32>
    %228 = arith.addf %227, %226 : vector<8x384xf32>
    %229 = arith.divf %227, %228 : vector<8x384xf32>
    %230 = vector.extract_strided_slice %223 {offsets = [0, 384], sizes = [8, 128], strides = [1, 1]} : vector<8x512xf32> to vector<8x128xf32>
    %231 = math.tanh %230 : vector<8x128xf32>
    %232 = vector.extract_strided_slice %229 {offsets = [0, 0], sizes = [8, 128], strides = [1, 1]} : vector<8x384xf32> to vector<8x128xf32>
    %233 = vector.extract_strided_slice %229 {offsets = [0, 128], sizes = [8, 128], strides = [1, 1]} : vector<8x384xf32> to vector<8x128xf32>
    %234 = vector.extract_strided_slice %229 {offsets = [0, 256], sizes = [8, 128], strides = [1, 1]} : vector<8x384xf32> to vector<8x128xf32>
    %235 = arith.mulf %233, %28 : vector<8x128xf32>
    %236 = arith.mulf %232, %231 : vector<8x128xf32>
    %237 = arith.addf %235, %236 : vector<8x128xf32>
    %238 = math.tanh %237 : vector<8x128xf32>
    %239 = arith.mulf %234, %238 : vector<8x128xf32>
    %c8_i32_68 = arith.constant 8 : i32
    %240 = arith.muli %c0_i32_65, %c8_i32_68 : i32
    %241 = tpu.assume_multiple %240, 8 : i32
    %242 = arith.index_cast %241 : i32 to index
    %c0_69 = arith.constant 0 : index
    %243 = vector.load %arg18[%242, %c0_69] : memref<64x128xf32, #tpu.memory_space<vmem>>, vector<8x128xf32>
    tpu.vector_store %arg18[%242, %c0_69], %239 {strides = array<i32>} : memref<64x128xf32, #tpu.memory_space<vmem>>, vector<8x128xf32>,
    %c1_i32_70 = arith.constant 1 : i32
    %244 = arith.truncf %239 : vector<8x128xf32> to vector<8x128xbf16>
    %cst_71 = arith.constant dense<0.000000e+00> : vector<8x512xf32>
    %245 = tpu.matmul %244, %220, %cst_71 {dimension_numbers = #tpu.dot_dimension_numbers<[1], [0], [0], [1], [0, 0, 1, 1], [], []>} : vector<8x128xbf16>, vector<128x512xbf16>, vector<8x512xf32> -> vector<8x512xf32>
    %246 = arith.addf %219, %245 : vector<8x512xf32>
    %247 = vector.extract_strided_slice %246 {offsets = [0, 0], sizes = [8, 384], strides = [1, 1]} : vector<8x512xf32> to vector<8x384xf32>
    %248 = arith.negf %247 : vector<8x384xf32>
    %249 = math.exp %248 : vector<8x384xf32>
    %cst_72 = arith.constant 1.000000e+00 : f32
    %250 = vector.broadcast %cst_72 : f32 to vector<8x384xf32>
    %251 = arith.addf %250, %249 : vector<8x384xf32>
    %252 = arith.divf %250, %251 : vector<8x384xf32>
    %253 = vector.extract_strided_slice %246 {offsets = [0, 384], sizes = [8, 128], strides = [1, 1]} : vector<8x512xf32> to vector<8x128xf32>
    %254 = math.tanh %253 : vector<8x128xf32>
    %255 = vector.extract_strided_slice %252 {offsets = [0, 0], sizes = [8, 128], strides = [1, 1]} : vector<8x384xf32> to vector<8x128xf32>
    %256 = vector.extract_strided_slice %252 {offsets = [0, 128], sizes = [8, 128], strides = [1, 1]} : vector<8x384xf32> to vector<8x128xf32>
    %257 = vector.extract_strided_slice %252 {offsets = [0, 256], sizes = [8, 128], strides = [1, 1]} : vector<8x384xf32> to vector<8x128xf32>
    %258 = arith.mulf %256, %237 : vector<8x128xf32>
    %259 = arith.mulf %255, %254 : vector<8x128xf32>
    %260 = arith.addf %258, %259 : vector<8x128xf32>
    %261 = math.tanh %260 : vector<8x128xf32>
    %262 = arith.mulf %257, %261 : vector<8x128xf32>
    %c8_i32_73 = arith.constant 8 : i32
    %263 = arith.muli %c1_i32_70, %c8_i32_73 : i32
    %264 = tpu.assume_multiple %263, 8 : i32
    %265 = arith.index_cast %264 : i32 to index
    %c0_74 = arith.constant 0 : index
    %266 = vector.load %arg18[%265, %c0_74] : memref<64x128xf32, #tpu.memory_space<vmem>>, vector<8x128xf32>
    tpu.vector_store %arg18[%265, %c0_74], %262 {strides = array<i32>} : memref<64x128xf32, #tpu.memory_space<vmem>>, vector<8x128xf32>,
    %c2_i32_75 = arith.constant 2 : i32
    %267 = arith.truncf %262 : vector<8x128xf32> to vector<8x128xbf16>
    %cst_76 = arith.constant dense<0.000000e+00> : vector<8x512xf32>
    %268 = tpu.matmul %267, %220, %cst_76 {dimension_numbers = #tpu.dot_dimension_numbers<[1], [0], [0], [1], [0, 0, 1, 1], [], []>} : vector<8x128xbf16>, vector<128x512xbf16>, vector<8x512xf32> -> vector<8x512xf32>
    %269 = arith.addf %219, %268 : vector<8x512xf32>
    %270 = vector.extract_strided_slice %269 {offsets = [0, 0], sizes = [8, 384], strides = [1, 1]} : vector<8x512xf32> to vector<8x384xf32>
    %271 = arith.negf %270 : vector<8x384xf32>
    %272 = math.exp %271 : vector<8x384xf32>
    %cst_77 = arith.constant 1.000000e+00 : f32
    %273 = vector.broadcast %cst_77 : f32 to vector<8x384xf32>
    %274 = arith.addf %273, %272 : vector<8x384xf32>
    %275 = arith.divf %273, %274 : vector<8x384xf32>
    %276 = vector.extract_strided_slice %269 {offsets = [0, 384], sizes = [8, 128], strides = [1, 1]} : vector<8x512xf32> to vector<8x128xf32>
    %277 = math.tanh %276 : vector<8x128xf32>
    %278 = vector.extract_strided_slice %275 {offsets = [0, 0], sizes = [8, 128], strides = [1, 1]} : vector<8x384xf32> to vector<8x128xf32>
    %279 = vector.extract_strided_slice %275 {offsets = [0, 128], sizes = [8, 128], strides = [1, 1]} : vector<8x384xf32> to vector<8x128xf32>
    %280 = vector.extract_strided_slice %275 {offsets = [0, 256], sizes = [8, 128], strides = [1, 1]} : vector<8x384xf32> to vector<8x128xf32>
    %281 = arith.mulf %279, %260 : vector<8x128xf32>
    %282 = arith.mulf %278, %277 : vector<8x128xf32>
    %283 = arith.addf %281, %282 : vector<8x128xf32>
    %284 = math.tanh %283 : vector<8x128xf32>
    %285 = arith.mulf %280, %284 : vector<8x128xf32>
    %c8_i32_78 = arith.constant 8 : i32
    %286 = arith.muli %c2_i32_75, %c8_i32_78 : i32
    %287 = tpu.assume_multiple %286, 8 : i32
    %288 = arith.index_cast %287 : i32 to index
    %c0_79 = arith.constant 0 : index
    %289 = vector.load %arg18[%288, %c0_79] : memref<64x128xf32, #tpu.memory_space<vmem>>, vector<8x128xf32>
    tpu.vector_store %arg18[%288, %c0_79], %285 {strides = array<i32>} : memref<64x128xf32, #tpu.memory_space<vmem>>, vector<8x128xf32>,
    %c3_i32_80 = arith.constant 3 : i32
    %290 = arith.truncf %285 : vector<8x128xf32> to vector<8x128xbf16>
    %cst_81 = arith.constant dense<0.000000e+00> : vector<8x512xf32>
    %291 = tpu.matmul %290, %220, %cst_81 {dimension_numbers = #tpu.dot_dimension_numbers<[1], [0], [0], [1], [0, 0, 1, 1], [], []>} : vector<8x128xbf16>, vector<128x512xbf16>, vector<8x512xf32> -> vector<8x512xf32>
    %292 = arith.addf %219, %291 : vector<8x512xf32>
    %293 = vector.extract_strided_slice %292 {offsets = [0, 0], sizes = [8, 384], strides = [1, 1]} : vector<8x512xf32> to vector<8x384xf32>
    %294 = arith.negf %293 : vector<8x384xf32>
    %295 = math.exp %294 : vector<8x384xf32>
    %cst_82 = arith.constant 1.000000e+00 : f32
    %296 = vector.broadcast %cst_82 : f32 to vector<8x384xf32>
    %297 = arith.addf %296, %295 : vector<8x384xf32>
    %298 = arith.divf %296, %297 : vector<8x384xf32>
    %299 = vector.extract_strided_slice %292 {offsets = [0, 384], sizes = [8, 128], strides = [1, 1]} : vector<8x512xf32> to vector<8x128xf32>
    %300 = math.tanh %299 : vector<8x128xf32>
    %301 = vector.extract_strided_slice %298 {offsets = [0, 0], sizes = [8, 128], strides = [1, 1]} : vector<8x384xf32> to vector<8x128xf32>
    %302 = vector.extract_strided_slice %298 {offsets = [0, 128], sizes = [8, 128], strides = [1, 1]} : vector<8x384xf32> to vector<8x128xf32>
    %303 = vector.extract_strided_slice %298 {offsets = [0, 256], sizes = [8, 128], strides = [1, 1]} : vector<8x384xf32> to vector<8x128xf32>
    %304 = arith.mulf %302, %283 : vector<8x128xf32>
    %305 = arith.mulf %301, %300 : vector<8x128xf32>
    %306 = arith.addf %304, %305 : vector<8x128xf32>
    %307 = math.tanh %306 : vector<8x128xf32>
    %308 = arith.mulf %303, %307 : vector<8x128xf32>
    %c8_i32_83 = arith.constant 8 : i32
    %309 = arith.muli %c3_i32_80, %c8_i32_83 : i32
    %310 = tpu.assume_multiple %309, 8 : i32
    %311 = arith.index_cast %310 : i32 to index
    %c0_84 = arith.constant 0 : index
    %312 = vector.load %arg18[%311, %c0_84] : memref<64x128xf32, #tpu.memory_space<vmem>>, vector<8x128xf32>
    tpu.vector_store %arg18[%311, %c0_84], %308 {strides = array<i32>} : memref<64x128xf32, #tpu.memory_space<vmem>>, vector<8x128xf32>,
    %c4_i32_85 = arith.constant 4 : i32
    %313 = arith.truncf %308 : vector<8x128xf32> to vector<8x128xbf16>
    %cst_86 = arith.constant dense<0.000000e+00> : vector<8x512xf32>
    %314 = tpu.matmul %313, %220, %cst_86 {dimension_numbers = #tpu.dot_dimension_numbers<[1], [0], [0], [1], [0, 0, 1, 1], [], []>} : vector<8x128xbf16>, vector<128x512xbf16>, vector<8x512xf32> -> vector<8x512xf32>
    %315 = arith.addf %219, %314 : vector<8x512xf32>
    %316 = vector.extract_strided_slice %315 {offsets = [0, 0], sizes = [8, 384], strides = [1, 1]} : vector<8x512xf32> to vector<8x384xf32>
    %317 = arith.negf %316 : vector<8x384xf32>
    %318 = math.exp %317 : vector<8x384xf32>
    %cst_87 = arith.constant 1.000000e+00 : f32
    %319 = vector.broadcast %cst_87 : f32 to vector<8x384xf32>
    %320 = arith.addf %319, %318 : vector<8x384xf32>
    %321 = arith.divf %319, %320 : vector<8x384xf32>
    %322 = vector.extract_strided_slice %315 {offsets = [0, 384], sizes = [8, 128], strides = [1, 1]} : vector<8x512xf32> to vector<8x128xf32>
    %323 = math.tanh %322 : vector<8x128xf32>
    %324 = vector.extract_strided_slice %321 {offsets = [0, 0], sizes = [8, 128], strides = [1, 1]} : vector<8x384xf32> to vector<8x128xf32>
    %325 = vector.extract_strided_slice %321 {offsets = [0, 128], sizes = [8, 128], strides = [1, 1]} : vector<8x384xf32> to vector<8x128xf32>
    %326 = vector.extract_strided_slice %321 {offsets = [0, 256], sizes = [8, 128], strides = [1, 1]} : vector<8x384xf32> to vector<8x128xf32>
    %327 = arith.mulf %325, %306 : vector<8x128xf32>
    %328 = arith.mulf %324, %323 : vector<8x128xf32>
    %329 = arith.addf %327, %328 : vector<8x128xf32>
    %330 = math.tanh %329 : vector<8x128xf32>
    %331 = arith.mulf %326, %330 : vector<8x128xf32>
    %c8_i32_88 = arith.constant 8 : i32
    %332 = arith.muli %c4_i32_85, %c8_i32_88 : i32
    %333 = tpu.assume_multiple %332, 8 : i32
    %334 = arith.index_cast %333 : i32 to index
    %c0_89 = arith.constant 0 : index
    %335 = vector.load %arg18[%334, %c0_89] : memref<64x128xf32, #tpu.memory_space<vmem>>, vector<8x128xf32>
    tpu.vector_store %arg18[%334, %c0_89], %331 {strides = array<i32>} : memref<64x128xf32, #tpu.memory_space<vmem>>, vector<8x128xf32>,
    %c5_i32_90 = arith.constant 5 : i32
    %336 = arith.truncf %331 : vector<8x128xf32> to vector<8x128xbf16>
    %cst_91 = arith.constant dense<0.000000e+00> : vector<8x512xf32>
    %337 = tpu.matmul %336, %220, %cst_91 {dimension_numbers = #tpu.dot_dimension_numbers<[1], [0], [0], [1], [0, 0, 1, 1], [], []>} : vector<8x128xbf16>, vector<128x512xbf16>, vector<8x512xf32> -> vector<8x512xf32>
    %338 = arith.addf %219, %337 : vector<8x512xf32>
    %339 = vector.extract_strided_slice %338 {offsets = [0, 0], sizes = [8, 384], strides = [1, 1]} : vector<8x512xf32> to vector<8x384xf32>
    %340 = arith.negf %339 : vector<8x384xf32>
    %341 = math.exp %340 : vector<8x384xf32>
    %cst_92 = arith.constant 1.000000e+00 : f32
    %342 = vector.broadcast %cst_92 : f32 to vector<8x384xf32>
    %343 = arith.addf %342, %341 : vector<8x384xf32>
    %344 = arith.divf %342, %343 : vector<8x384xf32>
    %345 = vector.extract_strided_slice %338 {offsets = [0, 384], sizes = [8, 128], strides = [1, 1]} : vector<8x512xf32> to vector<8x128xf32>
    %346 = math.tanh %345 : vector<8x128xf32>
    %347 = vector.extract_strided_slice %344 {offsets = [0, 0], sizes = [8, 128], strides = [1, 1]} : vector<8x384xf32> to vector<8x128xf32>
    %348 = vector.extract_strided_slice %344 {offsets = [0, 128], sizes = [8, 128], strides = [1, 1]} : vector<8x384xf32> to vector<8x128xf32>
    %349 = vector.extract_strided_slice %344 {offsets = [0, 256], sizes = [8, 128], strides = [1, 1]} : vector<8x384xf32> to vector<8x128xf32>
    %350 = arith.mulf %348, %329 : vector<8x128xf32>
    %351 = arith.mulf %347, %346 : vector<8x128xf32>
    %352 = arith.addf %350, %351 : vector<8x128xf32>
    %353 = math.tanh %352 : vector<8x128xf32>
    %354 = arith.mulf %349, %353 : vector<8x128xf32>
    %c8_i32_93 = arith.constant 8 : i32
    %355 = arith.muli %c5_i32_90, %c8_i32_93 : i32
    %356 = tpu.assume_multiple %355, 8 : i32
    %357 = arith.index_cast %356 : i32 to index
    %c0_94 = arith.constant 0 : index
    %358 = vector.load %arg18[%357, %c0_94] : memref<64x128xf32, #tpu.memory_space<vmem>>, vector<8x128xf32>
    tpu.vector_store %arg18[%357, %c0_94], %354 {strides = array<i32>} : memref<64x128xf32, #tpu.memory_space<vmem>>, vector<8x128xf32>,
    %c6_i32_95 = arith.constant 6 : i32
    %359 = arith.truncf %354 : vector<8x128xf32> to vector<8x128xbf16>
    %cst_96 = arith.constant dense<0.000000e+00> : vector<8x512xf32>
    %360 = tpu.matmul %359, %220, %cst_96 {dimension_numbers = #tpu.dot_dimension_numbers<[1], [0], [0], [1], [0, 0, 1, 1], [], []>} : vector<8x128xbf16>, vector<128x512xbf16>, vector<8x512xf32> -> vector<8x512xf32>
    %361 = arith.addf %219, %360 : vector<8x512xf32>
    %362 = vector.extract_strided_slice %361 {offsets = [0, 0], sizes = [8, 384], strides = [1, 1]} : vector<8x512xf32> to vector<8x384xf32>
    %363 = arith.negf %362 : vector<8x384xf32>
    %364 = math.exp %363 : vector<8x384xf32>
    %cst_97 = arith.constant 1.000000e+00 : f32
    %365 = vector.broadcast %cst_97 : f32 to vector<8x384xf32>
    %366 = arith.addf %365, %364 : vector<8x384xf32>
    %367 = arith.divf %365, %366 : vector<8x384xf32>
    %368 = vector.extract_strided_slice %361 {offsets = [0, 384], sizes = [8, 128], strides = [1, 1]} : vector<8x512xf32> to vector<8x128xf32>
    %369 = math.tanh %368 : vector<8x128xf32>
    %370 = vector.extract_strided_slice %367 {offsets = [0, 0], sizes = [8, 128], strides = [1, 1]} : vector<8x384xf32> to vector<8x128xf32>
    %371 = vector.extract_strided_slice %367 {offsets = [0, 128], sizes = [8, 128], strides = [1, 1]} : vector<8x384xf32> to vector<8x128xf32>
    %372 = vector.extract_strided_slice %367 {offsets = [0, 256], sizes = [8, 128], strides = [1, 1]} : vector<8x384xf32> to vector<8x128xf32>
    %373 = arith.mulf %371, %352 : vector<8x128xf32>
    %374 = arith.mulf %370, %369 : vector<8x128xf32>
    %375 = arith.addf %373, %374 : vector<8x128xf32>
    %376 = math.tanh %375 : vector<8x128xf32>
    %377 = arith.mulf %372, %376 : vector<8x128xf32>
    %c8_i32_98 = arith.constant 8 : i32
    %378 = arith.muli %c6_i32_95, %c8_i32_98 : i32
    %379 = tpu.assume_multiple %378, 8 : i32
    %380 = arith.index_cast %379 : i32 to index
    %c0_99 = arith.constant 0 : index
    %381 = vector.load %arg18[%380, %c0_99] : memref<64x128xf32, #tpu.memory_space<vmem>>, vector<8x128xf32>
    tpu.vector_store %arg18[%380, %c0_99], %377 {strides = array<i32>} : memref<64x128xf32, #tpu.memory_space<vmem>>, vector<8x128xf32>,
    %c7_i32_100 = arith.constant 7 : i32
    %382 = arith.truncf %377 : vector<8x128xf32> to vector<8x128xbf16>
    %cst_101 = arith.constant dense<0.000000e+00> : vector<8x512xf32>
    %383 = tpu.matmul %382, %220, %cst_101 {dimension_numbers = #tpu.dot_dimension_numbers<[1], [0], [0], [1], [0, 0, 1, 1], [], []>} : vector<8x128xbf16>, vector<128x512xbf16>, vector<8x512xf32> -> vector<8x512xf32>
    %384 = arith.addf %219, %383 : vector<8x512xf32>
    %385 = vector.extract_strided_slice %384 {offsets = [0, 0], sizes = [8, 384], strides = [1, 1]} : vector<8x512xf32> to vector<8x384xf32>
    %386 = arith.negf %385 : vector<8x384xf32>
    %387 = math.exp %386 : vector<8x384xf32>
    %cst_102 = arith.constant 1.000000e+00 : f32
    %388 = vector.broadcast %cst_102 : f32 to vector<8x384xf32>
    %389 = arith.addf %388, %387 : vector<8x384xf32>
    %390 = arith.divf %388, %389 : vector<8x384xf32>
    %391 = vector.extract_strided_slice %384 {offsets = [0, 384], sizes = [8, 128], strides = [1, 1]} : vector<8x512xf32> to vector<8x128xf32>
    %392 = math.tanh %391 : vector<8x128xf32>
    %393 = vector.extract_strided_slice %390 {offsets = [0, 0], sizes = [8, 128], strides = [1, 1]} : vector<8x384xf32> to vector<8x128xf32>
    %394 = vector.extract_strided_slice %390 {offsets = [0, 128], sizes = [8, 128], strides = [1, 1]} : vector<8x384xf32> to vector<8x128xf32>
    %395 = vector.extract_strided_slice %390 {offsets = [0, 256], sizes = [8, 128], strides = [1, 1]} : vector<8x384xf32> to vector<8x128xf32>
    %396 = arith.mulf %394, %375 : vector<8x128xf32>
    %397 = arith.mulf %393, %392 : vector<8x128xf32>
    %398 = arith.addf %396, %397 : vector<8x128xf32>
    %399 = math.tanh %398 : vector<8x128xf32>
    %400 = arith.mulf %395, %399 : vector<8x128xf32>
    %c8_i32_103 = arith.constant 8 : i32
    %401 = arith.muli %c7_i32_100, %c8_i32_103 : i32
    %402 = tpu.assume_multiple %401, 8 : i32
    %403 = arith.index_cast %402 : i32 to index
    %c0_104 = arith.constant 0 : index
    %404 = vector.load %arg18[%403, %c0_104] : memref<64x128xf32, #tpu.memory_space<vmem>>, vector<8x128xf32>
    tpu.vector_store %arg18[%403, %c0_104], %400 {strides = array<i32>} : memref<64x128xf32, #tpu.memory_space<vmem>>, vector<8x128xf32>,
    %c8_i32_105 = arith.constant 8 : i32
    %c0_106 = arith.constant 0 : index
    %c0_107 = arith.constant 0 : index
    %405 = vector.load %arg18[%c0_106, %c0_107] : memref<64x128xf32, #tpu.memory_space<vmem>>, vector<64x128xf32>
    %406 = arith.truncf %405 : vector<64x128xf32> to vector<64x128xbf16>
    %c0_108 = arith.constant 0 : index
    %c0_109 = arith.constant 0 : index
    %407 = vector.load %arg7[%c0_108, %c0_109] : memref<128x128xbf16, #tpu.memory_space<vmem>>, vector<128x128xbf16>
    %cst_110 = arith.constant dense<0.000000e+00> : vector<64x128xf32>
    %408 = tpu.matmul %406, %407, %cst_110 {dimension_numbers = #tpu.dot_dimension_numbers<[1], [0], [0], [1], [0, 0, 1, 1], [], []>} : vector<64x128xbf16>, vector<128x128xbf16>, vector<64x128xf32> -> vector<64x128xf32>
    %c0_111 = arith.constant 0 : index
    %c0_112 = arith.constant 0 : index
    %409 = vector.load %arg8[%c0_111, %c0_112] : memref<1x128xf32, #tpu.memory_space<vmem>>, vector<1x128xf32>
    %410 = vector.broadcast %409 : vector<1x128xf32> to vector<64x128xf32>
    %411 = arith.addf %408, %410 : vector<64x128xf32>
    %c0_113 = arith.constant 0 : index
    %c0_114 = arith.constant 0 : index
    %412 = vector.load %arg14[%c0_113, %c0_114] : memref<64x128xf32, #tpu.memory_space<vmem>>, vector<64x128xf32>
    tpu.vector_store %arg14[%c0_113, %c0_114], %411 {strides = array<i32>} : memref<64x128xf32, #tpu.memory_space<vmem>>, vector<64x128xf32>,
    %413 = arith.truncf %212 : vector<8x128xf32> to vector<8x128xbf16>
    %c0_115 = arith.constant 0 : index
    %c0_116 = arith.constant 0 : index
    %414 = vector.load %arg9[%c0_115, %c0_116] : memref<128x128xbf16, #tpu.memory_space<vmem>>, vector<128x128xbf16>
    %cst_117 = arith.constant dense<0.000000e+00> : vector<8x128xf32>
    %415 = tpu.matmul %413, %414, %cst_117 {dimension_numbers = #tpu.dot_dimension_numbers<[1], [0], [0], [1], [0, 0, 1, 1], [], []>} : vector<8x128xbf16>, vector<128x128xbf16>, vector<8x128xf32> -> vector<8x128xf32>
    %c0_118 = arith.constant 0 : index
    %c0_119 = arith.constant 0 : index
    %416 = vector.load %arg10[%c0_118, %c0_119] : memref<1x128xf32, #tpu.memory_space<vmem>>, vector<1x128xf32>
    %417 = vector.broadcast %416 : vector<1x128xf32> to vector<8x128xf32>
    %418 = arith.addf %415, %417 : vector<8x128xf32>
    %cst_120 = arith.constant 0.000000e+00 : f32
    %419 = vector.broadcast %cst_120 : f32 to vector<8x128xf32>
    %420 = arith.maximumf %418, %419 : vector<8x128xf32>
    %421 = arith.truncf %420 : vector<8x128xf32> to vector<8x128xbf16>
    %c0_121 = arith.constant 0 : index
    %c0_122 = arith.constant 0 : index
    %422 = vector.load %arg11[%c0_121, %c0_122] : memref<128x128xbf16, #tpu.memory_space<vmem>>, vector<128x128xbf16>
    %cst_123 = arith.constant dense<0.000000e+00> : vector<8x128xf32>
    %423 = tpu.matmul %421, %422, %cst_123 {dimension_numbers = #tpu.dot_dimension_numbers<[1], [0], [0], [1], [0, 0, 1, 1], [], []>} : vector<8x128xbf16>, vector<128x128xbf16>, vector<8x128xf32> -> vector<8x128xf32>
    %c0_124 = arith.constant 0 : index
    %c0_125 = arith.constant 0 : index
    %424 = vector.load %arg12[%c0_124, %c0_125] : memref<1x128xf32, #tpu.memory_space<vmem>>, vector<1x128xf32>
    %425 = vector.broadcast %424 : vector<1x128xf32> to vector<8x128xf32>
    %426 = arith.addf %423, %425 : vector<8x128xf32>
    %c0_126 = arith.constant 0 : index
    %c0_127 = arith.constant 0 : index
    %427 = vector.load %arg15[%c0_126, %c0_127] : memref<8x128xf32, #tpu.memory_space<vmem>>, vector<8x128xf32>
    tpu.vector_store %arg15[%c0_126, %c0_127], %426 {strides = array<i32>} : memref<8x128xf32, #tpu.memory_space<vmem>>, vector<8x128xf32>,
    return
  }
}

</mosaic_0001>

<bundles_post_ra>
// kernel: tpu_custom_call.1
= control target key start
LH: loop header
LB: loop body
LE: loop exit
PB: predicated region body
PF: predicated region fallthrough
CT: control target
= control target key end

     0   :  { %21 = vsyncpa [#allocation6], 0  ;;  %s5620_s0 = inlined_call_operand.hbm [shape: f32[2,32], index: 0, kind: input, shape index: {}]   ;;  %s5621_s1 = inlined_call_operand.hbm [shape: bf16[4,512], index: 1, kind: input, shape index: {}]   ;;  %s5622_s2 = inlined_call_operand.hbm [shape: bf16[128,512], index: 2, kind: input, shape index: {}]   ;;  %s5623_s3 = inlined_call_operand.vmem [shape: f32[1,512], index: 3, kind: input, shape index: {}]   ;;  %s5624_s4 = inlined_call_operand.hbm [shape: bf16[128,512], index: 4, kind: input, shape index: {}]   ;;  %s5625_s5 = inlined_call_operand.hbm [shape: bf16[128,512], index: 5, kind: input, shape index: {}]   ;;  %s5626_s6 = inlined_call_operand.vmem [shape: f32[1,512], index: 6, kind: input, shape index: {}]   ;;  %s5627_s7 = inlined_call_operand.hbm [shape: bf16[128,128], index: 7, kind: input, shape index: {}]   ;;  %s5628_s8 = inlined_call_operand.vmem [shape: f32[1,128], index: 8, kind: input, shape index: {}]   ;;  %s5629_s9 = inlined_call_operand.hbm [shape: bf16[128,128], index: 9, kind: input, shape index: {}]   ;;  %s5630_s10 = inlined_call_operand.vmem [shape: f32[1,128], index: 10, kind: input, shape index: {}]   ;;  %s5631_s11 = inlined_call_operand.hbm [shape: bf16[128,128], index: 11, kind: input, shape index: {}]   ;;  %s5632_s12 = inlined_call_operand.vmem [shape: f32[1,128], index: 12, kind: input, shape index: {}]   ;;  %s5633_s13 = inlined_call_operand.hbm [shape: f32[8,128], index: 13, kind: output, shape index: {0}]   ;;  %s5634_s14 = inlined_call_operand.hbm [shape: f32[64,128], index: 14, kind: output, shape index: {1}]   ;;  %s5635_s15 = inlined_call_operand.hbm [shape: f32[8,128], index: 15, kind: output, shape index: {2}]  }
   0x1   :  { %22 = vsyncpa [#allocation9], 0 }
   0x2   :  { %23 = vsyncpa [#allocation12], 0 }
   0x3   :  { %24 = vsyncpa [#allocation15], 0 }
   0x4   :  { %25 = vsyncpa [#allocation18], 0 }
   0x5   :  { %26 = vsyncpa [#allocation7], 0 }
   0x6   :  { %27 = vsyncpa [#allocation21], 0  ;;  %s4431_s18 = smov [#allocation8]  }
   0x7   :  { %s44_s19 = sshll.u32 %s4431_s18, 4  ;;  %s45_s19 = int_to_ptr.vmem [resolvable:$true] %s44_s19 }
   0x8   :  { %s4205_s20 = scalar_lea.vmem %s45_s19, 128  ;;  %p4210_p1 = scmp.lt.s32.totalorder %s45_s19, %s45_s19 }
   0x9   :  { %p4206_p0 = scmp.ne.s32.totalorder %s45_s19, %s4205_s20  ;;  %p4211_p2 = scmp.lt.s32.totalorder %s4205_s20, %s4205_s20 }
   0xb   :  { %p4212_p3 = por %p4211_p2, %p4210_p1 }
   0xd   :  { %p4213_p4 = pnand %p4212_p3, %p4206_p0 }
   0xf   :  { %4216 = shalt.err (!%p4213_p4)
}
  0x10   :  { %47 = dma.hbm_to_vmem [thread:$0]  %s5621_s1, 128, %s45_s19, [#allocation9]  }
  0x11   :  { %s4432_s23 = smov [#allocation11]   ;;  %s4433_s25 = smov [#allocation14]  }
  0x12   :  { %s67_s24 = sshll.u32 %s4432_s23, 4  ;;  %s93_s26 = sshll.u32 %s4433_s25, 4  ;;  %s68_s24 = int_to_ptr.vmem [resolvable:$true] %s67_s24  ;;  %s94_s26 = int_to_ptr.vmem [resolvable:$true] %s93_s26 }
  0x13   :  { %s4225_s27 = scalar_lea.vmem %s68_s24, 4096  ;;  %p4230_p6 = scmp.lt.s32.totalorder %s68_s24, %s68_s24 }
  0x14   :  { %p4226_p5 = scmp.ne.s32.totalorder %s68_s24, %s4225_s27  ;;  %p4231_p7 = scmp.lt.s32.totalorder %s4225_s27, %s4225_s27 }
  0x16   :  { %p4232_p8 = por %p4231_p7, %p4230_p6 }
  0x18   :  { %p4233_p9 = pnand %p4232_p8, %p4226_p5 }
  0x1a   :  { %4236 = shalt.err (!%p4233_p9)
}
  0x1b   :  { %s4434_s28 = smov 256   ;;  %s4435_s29 = smov 16  }
  0x1c   :  { %73 = dma.hbm_to_vmem [thread:$0]  %s5624_s4, 4096, %s68_s24, [#allocation12], %s4434_s28, %s4434_s28, %s4435_s29  }
  0x1d   :  { %s4245_s1 = scalar_lea.vmem %s94_s26, 1024  ;;  %p4250_p11 = scmp.lt.s32.totalorder %s94_s26, %s94_s26 }
  0x1e   :  { %p4246_p10 = scmp.ne.s32.totalorder %s94_s26, %s4245_s1  ;;  %p4251_p12 = scmp.lt.s32.totalorder %s4245_s1, %s4245_s1 }
  0x20   :  { %p4252_p13 = por %p4251_p12, %p4250_p11 }
  0x22   :  { %p4253_p0 = pnand %p4252_p13, %p4246_p10 }
  0x24   :  { %4256 = shalt.err (!%p4253_p0)
}
  0x25   :  { %s4436_s17 = smov 64   ;;  %s4437_s18 = smov 4  }
  0x26   :  { %99 = dma.hbm_to_vmem [thread:$0]  %s5627_s7, 1024, %s94_s26, [#allocation15], %s4436_s17, %s4436_s17, %s4437_s18  }
  0x27   :  { %s4438_s21 = smov [#allocation5]   ;;  %s4439_s4 = smov [#allocation10]  }
  0x28   :  { %s34_s22 = sshll.u32 %s4438_s21, 4  ;;  %s53_s23 = sshll.u32 %s4439_s4, 4  ;;  %s35_s22 = int_to_ptr.vmem [resolvable:$true] %s34_s22  ;;  %s54_s23 = int_to_ptr.vmem [resolvable:$true] %s53_s23 }
  0x29   :  { %s4265_s24 = scalar_lea.vmem %s35_s22, 32  ;;  %p4270_p2 = scmp.lt.s32.totalorder %s35_s22, %s35_s22 }
  0x2a   :  { %p4266_p1 = scmp.ne.s32.totalorder %s35_s22, %s4265_s24  ;;  %p4271_p3 = scmp.lt.s32.totalorder %s4265_s24, %s4265_s24 }
  0x2c   :  { %p4272_p4 = por %p4271_p3, %p4270_p2 }
  0x2e   :  { %p4273_p5 = pnand %p4272_p4, %p4266_p1 }
  0x30   :  { %4276 = shalt.err (!%p4273_p5)
}
  0x31   :  { %37 = dma.hbm_to_vmem [thread:$0]  %s5620_s0, 32, %s35_s22, [#allocation6]  }
  0x32   :  { %s4285_s30 = scalar_lea.vmem %s54_s23, 4096  ;;  %p4290_p7 = scmp.lt.s32.totalorder %s54_s23, %s54_s23 }
  0x33   :  { %p4286_p6 = scmp.ne.s32.totalorder %s54_s23, %s4285_s30  ;;  %p4291_p8 = scmp.lt.s32.totalorder %s4285_s30, %s4285_s30 }
  0x35   :  { %p4292_p9 = por %p4291_p8, %p4290_p7 }
  0x37   :  { %p4293_p10 = pnand %p4292_p9, %p4286_p6 }
  0x39   :  { %4296 = shalt.err (!%p4293_p10)
}
  0x3a   :  { %59 = dma.hbm_to_vmem [thread:$0]  %s5622_s2, 4096, %s54_s23, [#allocation9], %s4434_s28, %s4434_s28, %s4435_s29  }
  0x3b   :  { %s4440_s16 = smov [#allocation13]   ;;  %s4441_s19 = smov [#allocation16]  }
  0x3c   :  { %s79_s1 = sshll.u32 %s4440_s16, 4  ;;  %s107_s0 = sshll.u32 %s4441_s19, 4  ;;  %s80_s1 = int_to_ptr.vmem [resolvable:$true] %s79_s1  ;;  %s108_s0 = int_to_ptr.vmem [resolvable:$true] %s107_s0 }
  0x3d   :  { %s4305_s20 = scalar_lea.vmem %s80_s1, 4096  ;;  %p4310_p12 = scmp.lt.s32.totalorder %s80_s1, %s80_s1 }
  0x3e   :  { %p4306_p11 = scmp.ne.s32.totalorder %s80_s1, %s4305_s20  ;;  %p4311_p13 = scmp.lt.s32.totalorder %s4305_s20, %s4305_s20 }
  0x40   :  { %p4312_p0 = por %p4311_p13, %p4310_p12 }
  0x42   :  { %p4313_p1 = pnand %p4312_p0, %p4306_p11 }
  0x44   :  { %4316 = shalt.err (!%p4313_p1)
}
  0x45   :  { %85 = dma.hbm_to_vmem [thread:$0]  %s5625_s5, 4096, %s80_s1, [#allocation12], %s4434_s28, %s4434_s28, %s4435_s29  }
  0x46   :  { %s4325_s2 = scalar_lea.vmem %s108_s0, 1024  ;;  %p4330_p3 = scmp.lt.s32.totalorder %s108_s0, %s108_s0 }
  0x47   :  { %p4326_p2 = scmp.ne.s32.totalorder %s108_s0, %s4325_s2  ;;  %p4331_p4 = scmp.lt.s32.totalorder %s4325_s2, %s4325_s2 }
  0x49   :  { %p4332_p5 = por %p4331_p4, %p4330_p3 }
  0x4b   :  { %p4333_p6 = pnand %p4332_p5, %p4326_p2 }
  0x4d   :  { %4336 = shalt.err (!%p4333_p6)
}
  0x4e   :  { %113 = dma.hbm_to_vmem [thread:$0]  %s5629_s9, 1024, %s108_s0, [#allocation15], %s4436_s17, %s4436_s17, %s4437_s18  }
  0x4f   :  { %s4442_s24 = smov [#allocation17]  }
  0x50   :  { %s121_s25 = sshll.u32 %s4442_s24, 4  ;;  %s122_s25 = int_to_ptr.vmem [resolvable:$true] %s121_s25 }
  0x51   :  { %s4345_s27 = scalar_lea.vmem %s122_s25, 1024  ;;  %p4350_p8 = scmp.lt.s32.totalorder %s122_s25, %s122_s25 }
  0x52   :  { %p4346_p7 = scmp.ne.s32.totalorder %s122_s25, %s4345_s27  ;;  %p4351_p9 = scmp.lt.s32.totalorder %s4345_s27, %s4345_s27 }
  0x54   :  { %p4352_p10 = por %p4351_p9, %p4350_p8 }
  0x56   :  { %p4353_p11 = pnand %p4352_p10, %p4346_p7 }
  0x58   :  { %4356 = shalt.err (!%p4353_p11)
}
  0x59   :  { %127 = dma.hbm_to_vmem [thread:$0]  %s5631_s11, 1024, %s122_s25, [#allocation18], %s4436_s17, %s4436_s17, %s4437_s18  }
  0x5a   :  { %4417 = dma.done.wait [#allocation6], 32  }
  0x5b   :  { %4418 = vsyncadd [#allocation6], 4294967264 }
  0x5c   :  { %4419 = dma.done.wait [#allocation9], 4224  }
  0x5d   :  { %4420 = vsyncadd [#allocation9], 4294963072 }
  0x5e   :  { %4421 = dma.done.wait [#allocation12], 8192  }
  0x5f   :  { %4422 = vsyncadd [#allocation12], 4294959104 }
  0x60   :  { %4423 = dma.done.wait [#allocation15], 2048  }
  0x61   :  { %4424 = vsyncadd [#allocation15], 4294965248 }
  0x62   :  { %4425 = dma.done.wait [#allocation18], 1024  }
  0x63   :  { %4426 = vsyncadd [#allocation18], 4294966272  ;;  %vm155_vm0 = vcmask 31744   ;;  %v211_v0 = vlaneseq  ;;  %v5636_v1 = vmov 0.0   ;;  %v4444_v3 = vmov 1983009808  }
  0x64   :  { %156 = vst.msk [vmem:[#allocation2] sm:$0xff] %vm155_vm0, %v5636_v1  ;;  %157 = vst.msk [vmem:[#allocation2 + $0x8] sm:$0xff] %vm155_vm0, %v5636_v1  ;;  %v234_v4 = vunpack.c.l.s4 %v4444_v3  ;;  %v5642_v5 = vmov 0   ;;  %vm165_vm1 = vcmask 25600   ;;  %v164_v8 = vld [vmem:[#allocation5] sm:$0x3] }
  0x65   :  { %158 = vst.msk [vmem:[#allocation2 + $0x10] sm:$0xff] %vm155_vm0, %v5636_v1  ;;  %159 = vst.msk [vmem:[#allocation2 + $0x18] sm:$0xff] %vm155_vm0, %v5636_v1  ;;  %v4597_v2 = vshrl.u32 %v211_v0, 7  ;;  %306 = vmatprep.mubr.bf16.mxu0 %v5642_v5  ;;  %379 = vmatprep.mubr.bf16.mxu1 %v5642_v5  ;;  %v208_v9 = vld [vmem:[#allocation8] sm:$0xff]  ;;  %s4446_s9 = smov 124   ;;  %s4447_s11 = smov 116  }
  0x66   :  { %160 = vst.msk [vmem:[#allocation2 + $0x20] sm:$0xff] %vm155_vm0, %v5636_v1  ;;  %161 = vst.msk [vmem:[#allocation2 + $0x28] sm:$0xff] %vm155_vm0, %v5636_v1  ;;  %v235_v6 = vunpack.c.0.s8 %v234_v4  ;;  %168 = vrot.lane.b32.xlu0 %v164_v8, %s4446_s9  ;;  %176 = vrot.lane.b32.xlu1 %v164_v8, %s4447_s11  ;;  %vm261_vm2 = vcmask 1041408   ;;  %v232_v11 = vcombine.high %v208_v9, %v208_v9  ;;  %v4603_v15 = vld [vmem:[#allocation10 + $0xe4] ss:$16 sps:$4 sm:$0xff]   ;;  %s4448_s29 = smov 120  }
  0x67   :  { %162 = vst.msk [vmem:[#allocation2 + $0x30] sm:$0xff] %vm155_vm0, %v5636_v1  ;;  %163 = vst.msk [vmem:[#allocation2 + $0x38] sm:$0xff] %vm155_vm0, %v5636_v1  ;;  %s4449_s17 = smov 112   ;;  %v4605_v18 = vld [vmem:[#allocation10 + $0xec] ss:$16 sps:$4 sm:$0xff]   ;;  %s4450_s18 = smov 108  }
  0x68   :  { %5646 = vst [vmem:[#allocation30_spill] sm:$0xff] %v4597_v2  ;;  %v238_v7 = vsub.s32 %v235_v6, %v4597_v2  ;;  %166 = vst.msk [vmem:[#allocation2] sm:$0x3] %vm165_vm1, %v164_v8  ;;  %s4451_s30 = smov 104   ;;  %s4452_s7 = smov 100   ;;  %v477_v31 = vld [vmem:[#allocation10 + $0xc8] sm:$0xff] }
  0x69   :  { %v4613_v24 = vld [vmem:[#allocation10 + $0xe0] ss:$16 sps:$4 sm:$0xff]   ;;  %v4615_v26 = vld [vmem:[#allocation10 + $0xe8] ss:$16 sps:$4 sm:$0xff]   ;;  %v4617_v27 = vld [vmem:[#allocation10 + $0xc4] ss:$16 sps:$4 sm:$0xff]  }
  0x6a   :  { %v239_v10 = vrot.slane %v208_v9, %v238_v7  ;;  %v246_v13 = vrot.slane %v232_v11, %v238_v7  ;;  %172 = vrot.lane.b32.xlu0 %v164_v8, %s4448_s29  ;;  %180 = vrot.lane.b32.xlu1 %v164_v8, %s4449_s17  ;;  %v479_v32 = vld [vmem:[#allocation10 + $0xd8] sm:$0xff]  ;;  %v4627_v34 = vld [vmem:[#allocation10 + $0xc0] ss:$16 sps:$4 sm:$0xff]   ;;  %v4633_v39 = vld [vmem:[#allocation10 + $0xa4] ss:$16 sps:$4 sm:$0xff]   ;;  %v5641_v11 = vsub.s32 0, %v4597_v2 }
  0x6b   :  { %v4619_v33 = vld [vmem:[#allocation10 + $0xcc] ss:$16 sps:$4 sm:$0xff]   ;;  %v4629_v35 = vcombine.low %v477_v31, %v479_v32  ;;  %v4642_v42 = vld [vmem:[#allocation10 + $0xa0] ss:$16 sps:$4 sm:$0xff]   ;;  %v4644_v43 = vld [vmem:[#allocation10 + $0xa8] ss:$16 sps:$4 sm:$0xff]  }
  0x6c   :  { %v247_v12 = vcombine.high %v239_v10, %v239_v10  ;;  %v263_v14 = vsel %vm261_vm2, %v239_v10, 0  ;;  %v248_v16 = vcombine.high %v246_v13, %v246_v13  ;;  %v269_v17 = vsel %vm261_vm2, %v246_v13, 0  ;;  %v4635_v40 = vld [vmem:[#allocation10 + $0xac] ss:$16 sps:$4 sm:$0xff]   ;;  %v4646_v44 = vld [vmem:[#allocation10 + $0x84] ss:$16 sps:$4 sm:$0xff]  }
  0x6d   :  { %v469_v45 = vld [vmem:[#allocation10 + $0x88] sm:$0xff]  ;;  %v471_v46 = vld [vmem:[#allocation10 + $0x98] sm:$0xff]  ;;  %v4656_v48 = vld [vmem:[#allocation10 + $0x80] ss:$16 sps:$4 sm:$0xff]   ;;  %vm4453_vm3 = vmmov 0   ;;  %s4454_s20 = smov [#allocation19]  }
  0x6e   :  { %3415 = vmatprep.subr.msk.bf16.mxu0 %vm261_vm2, %v247_v12  ;;  %3420 = vmatprep.subr.msk.bf16.mxu1 %vm261_vm2, %v248_v16  ;;  %v4650_v47 = vld [vmem:[#allocation10 + $0x8c] ss:$16 sps:$4 sm:$0xff]   ;;  %v4658_v49 = vcombine.low %v469_v45, %v471_v46  ;;  %v4662_v52 = vld [vmem:[#allocation10 + $0x64] ss:$16 sps:$4 sm:$0xff]   ;;  %v4670_v55 = vld [vmem:[#allocation10 + $0x60] ss:$16 sps:$4 sm:$0xff]  }
  0x6f   :  { %289 = vmatpush1.bf16.msra.mxu0 %v263_v14  ;;  %362 = vmatpush1.bf16.msra.mxu1 %v269_v17  ;;  %v196_v23 = vld [vmem:[#allocation2] sm:$0xff]  ;;  %v4682_v59 = vld [vmem:[#allocation10 + $0x40] ss:$16 sps:$4 sm:$0xff]   ;;  %v5639_v12 = vsub.s32 2, %v4597_v2  ;;  %v5640_v17 = vsub.s32 1, %v4597_v2  ;;  %s3366_s21 = sshll.u32 %s4454_s20, 4  ;;  %s3367_s21 = int_to_ptr.vmem [resolvable:$true] %s3366_s21 }
  0x70   :  { %651 = vmatprep.subr.bf16.mxu0 %v4603_v15  ;;  %184 = vrot.lane.b32.xlu0 %v164_v8, %s4450_s18  ;;  %v4664_v53 = vld [vmem:[#allocation10 + $0x6c] ss:$16 sps:$4 sm:$0xff]   ;;  %v4672_v56 = vld [vmem:[#allocation10 + $0x68] ss:$16 sps:$4 sm:$0xff]   ;;  %v4676_v57 = vld [vmem:[#allocation10 + $0x44] ss:$16 sps:$4 sm:$0xff]   ;;  %p4362_p13 = scmp.lt.s32.totalorder %s3367_s21, %s3367_s21 }
  0x71   :  { %188 = vrot.lane.b32.xlu1 %v164_v8, %s4451_s30  ;;  %692 = vmatprep.subr.bf16.mxu1 %v4605_v18  ;;  %v4678_v58 = vld [vmem:[#allocation10 + $0x4c] ss:$16 sps:$4 sm:$0xff]   ;;  %v4686_v60 = vld [vmem:[#allocation10 + $0x48] ss:$16 sps:$4 sm:$0xff]   ;;  %v4690_v63 = vld [vmem:[#allocation10 + $0x24] ss:$16 sps:$4 sm:$0xff]  }
  0x72   :  { %v4692_v0 = vld [vmem:[#allocation10 + $0x2c] ss:$16 sps:$4 sm:$0xff]   ;;  %v4698_v4 = vld [vmem:[#allocation10 + $0x20] ss:$16 sps:$4 sm:$0xff]   ;;  %v4700_v6 = vld [vmem:[#allocation10 + $0x28] ss:$16 sps:$4 sm:$0xff]  }
  0x73   :  { %v4704_v7 = vld [vmem:[#allocation10 + $0x4] ss:$16 sps:$4 sm:$0xff]   ;;  %v4712_v9 = vld [vmem:[#allocation10] ss:$16 sps:$4 sm:$0xff]   ;;  %v4714_v10 = vld [vmem:[#allocation10 + $0x8] ss:$16 sps:$4 sm:$0xff]  }
  0x74   :  { %192 = vrot.lane.b32.xlu0 %v164_v8, %s4452_s7  ;;  %v4706_v8 = vld [vmem:[#allocation10 + $0xc] ss:$16 sps:$4 sm:$0xff]   ;;  %v209_v13 = vld [vmem:[%s5623_s3] sm:$0xf]  ;;  %s4357_s22 = scalar_lea.vmem %s3367_s21, 128 }
  0x75   :  { %p4358_p12 = scmp.ne.s32.totalorder %s3367_s21, %s4357_s22  ;;  %p4363_p0 = scmp.lt.s32.totalorder %s4357_s22, %s4357_s22 }
  0x77   :  { %p4364_p1 = por %p4363_p0, %p4362_p13 }
  0x79   :  { %p4365_p2 = pnand %p4364_p1, %p4358_p12 }
  0xd8   :  { %v169_v19 = vpop.permute.xlu0 %168  ;;  %v177_v20 = vpop.permute.xlu1 %176 }
  0xd9   :  { %171 = vst.msk [vmem:[#allocation2 + $0x8] sm:$0x3] %vm165_vm1, %v169_v19  ;;  %179 = vst.msk [vmem:[#allocation2 + $0x18] sm:$0x3] %vm165_vm1, %v177_v20  ;;  %v5638_v19 = vsub.s32 3, %v4597_v2 }
  0xdc   :  { %v173_v21 = vpop.permute.xlu0 %172  ;;  %v181_v22 = vpop.permute.xlu1 %180 }
  0xdd   :  { %175 = vst.msk [vmem:[#allocation2 + $0x10] sm:$0x3] %vm165_vm1, %v173_v21  ;;  %183 = vst.msk [vmem:[#allocation2 + $0x20] sm:$0x3] %vm165_vm1, %v181_v22  ;;  %v214_v22 = vrot.slane %v209_v13, %v5641_v11 }
  0xe0   :  { %v197_v25 = vld [vmem:[#allocation2 + $0x8] sm:$0xff]  ;;  %v199_v37 = vld [vmem:[#allocation2 + $0x18] sm:$0xff] }
  0xe1   :  { %v204_v30 = vpack.c.bf16 %v197_v25, %v196_v23  ;;  %v4779_v23 = vrot.slane %v209_v13, %v5639_v12 }
  0xe2   :  { %v185_v28 = vpop.permute.xlu0 %184 }
  0xe3   :  { %v189_v29 = vpop.permute.xlu1 %188  ;;  %187 = vst.msk [vmem:[#allocation2 + $0x28] sm:$0x3] %vm165_vm1, %v185_v28  ;;  %3416 = vmatmul.mubr.msk.bf16.vlgmr.msra.gmra.mxu0 %vm155_vm0, %v204_v30  ;;  %3421 = vmatmul.mubr.msk.bf16.vlgmr.msra.gmra.mxu1 %vm155_vm0, %v204_v30  ;;  %v4785_v30 = vrot.slane %v209_v13, %v5638_v19 }
  0xe4   :  { %191 = vst.msk [vmem:[#allocation2 + $0x30] sm:$0x3] %vm165_vm1, %v189_v29  ;;  %652 = vmatpush1.bf16.msra.mxu0 %v4613_v24  ;;  %693 = vmatpush1.bf16.msra.mxu1 %v4615_v26  ;;  %v198_v36 = vld [vmem:[#allocation2 + $0x10] sm:$0xff]  ;;  %v200_v50 = vld [vmem:[#allocation2 + $0x20] sm:$0xff]  ;;  %v218_v29 = vrot.slane %v209_v13, %v5640_v17 }
  0xe5   :  { %653 = vmatprep.subr.bf16.mxu0 %v4617_v27  ;;  %694 = vmatprep.subr.bf16.mxu1 %v4619_v33  ;;  %v205_v41 = vpack.c.bf16 %v199_v37, %v198_v36 }
  0xe6   :  { %v193_v38 = vpop.permute.xlu0 %192  ;;  %316 = vmatprep.mubr.bf16.mxu0 %v5642_v5  ;;  %389 = vmatprep.mubr.bf16.mxu1 %v5642_v5 }
  0xe7   :  { %195 = vst.msk [vmem:[#allocation2 + $0x38] sm:$0x3] %vm165_vm1, %v193_v38 }
  0xe8   :  { %654 = vmatpush1.bf16.msra.mxu0 %v4627_v34  ;;  %695 = vmatpush1.bf16.msra.mxu1 %v4629_v35 }
  0xe9   :  { %655 = vmatprep.subr.bf16.mxu0 %v4633_v39  ;;  %696 = vmatprep.subr.bf16.mxu1 %v4635_v40 }
  0xea   :  { %v201_v51 = vld [vmem:[#allocation2 + $0x28] sm:$0xff] }
  0xeb   :  { %3417 = vmatmul.mubr.msk.bf16.gmra.mxu0 %vm155_vm0, %v205_v41  ;;  %3422 = vmatmul.mubr.msk.bf16.gmra.mxu1 %vm155_vm0, %v205_v41  ;;  %v206_v54 = vpack.c.bf16 %v201_v51, %v200_v50  ;;  %v202_v61 = vld [vmem:[#allocation2 + $0x30] sm:$0xff] }
  0xec   :  { %656 = vmatpush1.bf16.msra.mxu0 %v4642_v42  ;;  %697 = vmatpush1.bf16.msra.mxu1 %v4644_v43 }
  0xed   :  { %657 = vmatprep.subr.bf16.mxu0 %v4646_v44  ;;  %698 = vmatprep.subr.bf16.mxu1 %v4650_v47 }
  0xee   :  { %326 = vmatprep.mubr.bf16.mxu0 %v5642_v5  ;;  %399 = vmatprep.mubr.bf16.mxu1 %v5642_v5  ;;  %v203_v62 = vld [vmem:[#allocation2 + $0x38] sm:$0xff] }
  0xef   :  { %v207_v3 = vpack.c.bf16 %v203_v62, %v202_v61 }
  0xf0   :  { %658 = vmatpush1.bf16.msra.mxu0 %v4656_v48  ;;  %699 = vmatpush1.bf16.msra.mxu1 %v4658_v49 }
  0xf1   :  { %659 = vmatprep.subr.bf16.mxu0 %v4662_v52  ;;  %700 = vmatprep.subr.bf16.mxu1 %v4664_v53 }
  0xf3   :  { %3418 = vmatmul.mubr.msk.bf16.gmra.mxu0 %vm155_vm0, %v206_v54  ;;  %3423 = vmatmul.mubr.msk.bf16.gmra.mxu1 %vm155_vm0, %v206_v54 }
  0xf4   :  { %660 = vmatpush1.bf16.msra.mxu0 %v4670_v55  ;;  %701 = vmatpush1.bf16.msra.mxu1 %v4672_v56 }
  0xf5   :  { %661 = vmatprep.subr.bf16.mxu0 %v4676_v57  ;;  %702 = vmatprep.subr.bf16.mxu1 %v4678_v58 }
  0xf6   :  { %336 = vmatprep.mubr.bf16.mxu0 %v5642_v5  ;;  %409 = vmatprep.mubr.bf16.mxu1 %v5642_v5 }
  0xf8   :  { %662 = vmatpush1.bf16.msra.mxu0 %v4682_v59  ;;  %703 = vmatpush1.bf16.msra.mxu1 %v4686_v60 }
  0xf9   :  { %663 = vmatprep.subr.bf16.mxu0 %v4690_v63  ;;  %704 = vmatprep.subr.bf16.mxu1 %v4692_v0 }
  0xfb   :  { %3419 = vmatmul.mubr.msk.bf16.gmra.mxu0 %vm155_vm0, %v207_v3  ;;  %3424 = vmatmul.mubr.msk.bf16.gmra.mxu1 %vm155_vm0, %v207_v3 }
  0xfc   :  { %664 = vmatpush1.bf16.msra.mxu0 %v4698_v4  ;;  %705 = vmatpush1.bf16.msra.mxu1 %v4700_v6 }
  0xfd   :  { %665 = vmatprep.subr.bf16.mxu0 %v4704_v7  ;;  %706 = vmatprep.subr.bf16.mxu1 %v4706_v8 }
  0xfe   :  { %683 = vmatprep.mubr.bf16.mxu0 %v5642_v5  ;;  %724 = vmatprep.mubr.bf16.mxu1 %v5642_v5 }
 0x100   :  { %666 = vmatpush1.bf16.msra.mxu0 %v4712_v9  ;;  %707 = vmatpush1.bf16.msra.mxu1 %v4714_v10 }
 0x101   :  { %769 = vmatprep.subr.bf16.mxu0 %v4603_v15  ;;  %810 = vmatprep.subr.bf16.mxu1 %v4605_v18 }
 0x103   :  { %684 = vmatmul.mubr.bf16.vlgmr.msra.gmra.mxu0 %v5642_v5  ;;  %725 = vmatmul.mubr.bf16.vlgmr.msra.gmra.mxu1 %v5642_v5 }
 0x104   :  { %770 = vmatpush1.bf16.msra.mxu0 %v4613_v24  ;;  %811 = vmatpush1.bf16.msra.mxu1 %v4615_v26 }
 0x105   :  { %771 = vmatprep.subr.bf16.mxu0 %v4617_v27  ;;  %812 = vmatprep.subr.bf16.mxu1 %v4619_v33 }
 0x106   :  { %801 = vmatprep.mubr.bf16.mxu0 %v5642_v5  ;;  %842 = vmatprep.mubr.bf16.mxu1 %v5642_v5 }
 0x108   :  { %772 = vmatpush1.bf16.msra.mxu0 %v4627_v34  ;;  %813 = vmatpush1.bf16.msra.mxu1 %v4629_v35 }
 0x109   :  { %773 = vmatprep.subr.bf16.mxu0 %v4633_v39  ;;  %814 = vmatprep.subr.bf16.mxu1 %v4635_v40 }
 0x10c   :  { %774 = vmatpush1.bf16.msra.mxu0 %v4642_v42  ;;  %815 = vmatpush1.bf16.msra.mxu1 %v4644_v43 }
 0x10d   :  { %775 = vmatprep.subr.bf16.mxu0 %v4646_v44  ;;  %816 = vmatprep.subr.bf16.mxu1 %v4650_v47 }
 0x110   :  { %776 = vmatpush1.bf16.msra.mxu0 %v4656_v48  ;;  %817 = vmatpush1.bf16.msra.mxu1 %v4658_v49 }
 0x111   :  { %777 = vmatprep.subr.bf16.mxu0 %v4662_v52  ;;  %818 = vmatprep.subr.bf16.mxu1 %v4664_v53 }
 0x114   :  { %778 = vmatpush1.bf16.msra.mxu0 %v4670_v55  ;;  %819 = vmatpush1.bf16.msra.mxu1 %v4672_v56 }
 0x115   :  { %779 = vmatprep.subr.bf16.mxu0 %v4676_v57  ;;  %820 = vmatprep.subr.bf16.mxu1 %v4678_v58 }
 0x118   :  { %780 = vmatpush1.bf16.msra.mxu0 %v4682_v59  ;;  %821 = vmatpush1.bf16.msra.mxu1 %v4686_v60 }
 0x119   :  { %781 = vmatprep.subr.bf16.mxu0 %v4690_v63  ;;  %822 = vmatprep.subr.bf16.mxu1 %v4692_v0 }
 0x11c   :  { %782 = vmatpush1.bf16.msra.mxu0 %v4698_v4  ;;  %823 = vmatpush1.bf16.msra.mxu1 %v4700_v6 }
 0x11d   :  { %783 = vmatprep.subr.bf16.mxu0 %v4704_v7  ;;  %824 = vmatprep.subr.bf16.mxu1 %v4706_v8 }
 0x120   :  { %784 = vmatpush1.bf16.msra.mxu0 %v4712_v9  ;;  %825 = vmatpush1.bf16.msra.mxu1 %v4714_v10 }
 0x121   :  { %887 = vmatprep.subr.bf16.mxu0 %v4603_v15  ;;  %928 = vmatprep.subr.bf16.mxu1 %v4605_v18 }
 0x1a3   :  { %v4765_v14 = vpop.f32.mrf.mxu0  ;;  %v4767_v16 = vpop.f32.mrf.mxu1 }
 0x1a5   :  { %v4771_v20 = vpop.f32.mrf.mxu0  ;;  %v4773_v21 = vpop.f32.mrf.mxu1 }
 0x1a7   :  { %v312_v25 = vpop.f32.mrf.mxu0  ;;  %v385_v28 = vpop.f32.mrf.mxu1 }
 0x1a8   :  { %v4787_v31 = vadd.f32 %v312_v25, %v214_v22  ;;  %v4790_v32 = vadd.f32 %v385_v28, %v4779_v23 }
 0x1a9   :  { %v314_v36 = vpop.f32.mrf.mxu0  ;;  %v387_v37 = vpop.f32.mrf.mxu1 }
 0x1aa   :  { %v4792_v38 = vadd.f32 %v314_v36, %v218_v29  ;;  %v4795_v41 = vadd.f32 %v387_v37, %v4785_v30 }
 0x1ab   :  { %v318_v45 = vpop.f32.mrf.mxu0  ;;  %v391_v46 = vpop.f32.mrf.mxu1 }
 0x1ac   :  { %v4797_v50 = vadd.f32 %v318_v45, %v214_v22  ;;  %v4800_v51 = vadd.f32 %v391_v46, %v4779_v23 }
 0x1ad   :  { %v320_v54 = vpop.f32.mrf.mxu0  ;;  %v393_v61 = vpop.f32.mrf.mxu1 }
 0x1ae   :  { %v4802_v62 = vadd.f32 %v320_v54, %v218_v29  ;;  %v4805_v3 = vadd.f32 %v393_v61, %v4785_v30 }
 0x1af   :  { %v322_v13 = vpop.f32.mrf.mxu0  ;;  %v395_v25 = vpop.f32.mrf.mxu1 }
 0x1b0   :  { %5647 = vst [vmem:[#allocation31_spill] sm:$0xff] %v4805_v3  ;;  %v4807_v28 = vadd.f32 %v322_v13, %v214_v22  ;;  %v4810_v36 = vadd.f32 %v395_v25, %v4779_v23 }
 0x1b1   :  { %v324_v37 = vpop.f32.mrf.mxu0  ;;  %v397_v45 = vpop.f32.mrf.mxu1 }
 0x1b2   :  { %5648 = vst [vmem:[#allocation32_spill] sm:$0xff] %v4807_v28  ;;  %5649 = vst [vmem:[#allocation33_spill] sm:$0xff] %v4810_v36  ;;  %v4812_v1 = vadd.f32 %v324_v37, %v218_v29  ;;  %v4815_v46 = vadd.f32 %v397_v45, %v4785_v30 }
 0x1b3   :  { %v328_v19 = vpop.f32.mrf.mxu0  ;;  %v401_v54 = vpop.f32.mrf.mxu1 }
 0x1b4   :  { %5650 = vst [vmem:[#allocation34_spill] sm:$0xff] %v4812_v1  ;;  %5651 = vst [vmem:[#allocation35_spill] sm:$0xff] %v4815_v46  ;;  %v4817_v12 = vadd.f32 %v328_v19, %v214_v22  ;;  %v4820_v61 = vadd.f32 %v401_v54, %v4779_v23 }
 0x1b5   :  { %v330_v17 = vpop.f32.mrf.mxu0  ;;  %v403_v13 = vpop.f32.mrf.mxu1 }
 0x1b6   :  { %5652 = vst [vmem:[#allocation36_spill] sm:$0xff] %v4817_v12  ;;  %5653 = vst [vmem:[#allocation37_spill] sm:$0xff] %v4820_v61  ;;  %v4822_v11 = vadd.f32 %v330_v17, %v218_v29  ;;  %v4825_v25 = vadd.f32 %v403_v13, %v4785_v30 }
 0x1b7   :  { %v332_v5 = vpop.f32.mrf.mxu0  ;;  %v405_v37 = vpop.f32.mrf.mxu1 }
 0x1b8   :  { %5654 = vst [vmem:[#allocation38_spill] sm:$0xff] %v4822_v11  ;;  %5655 = vst [vmem:[#allocation39_spill] sm:$0xff] %v4825_v25  ;;  %v4827_v2 = vadd.f32 %v332_v5, %v214_v22  ;;  %v4830_v45 = vadd.f32 %v405_v37, %v4779_v23 }
 0x1b9   :  { %v334_v46 = vpop.f32.mrf.mxu0  ;;  %v407_v19 = vpop.f32.mrf.mxu1 }
 0x1ba   :  { %5656 = vst [vmem:[#allocation40_spill] sm:$0xff] %v4827_v2  ;;  %5657 = vst [vmem:[#allocation41_spill] sm:$0xff] %v4830_v45  ;;  %v4832_v12 = vadd.f32 %v334_v46, %v218_v29  ;;  %v4835_v54 = vadd.f32 %v407_v19, %v4785_v30 }
 0x1bb   :  { %v338_v61 = vpop.f32.mrf.mxu0  ;;  %v411_v17 = vpop.f32.mrf.mxu1 }
 0x1bc   :  { %5658 = vst [vmem:[#allocation42_spill] sm:$0xff] %v4832_v12  ;;  %5659 = vst [vmem:[#allocation43_spill] sm:$0xff] %v4835_v54  ;;  %v4837_v11 = vadd.f32 %v338_v61, %v214_v22  ;;  %v4840_v13 = vadd.f32 %v411_v17, %v4779_v23 }
 0x1bd   :  { %v340_v25 = vpop.f32.mrf.mxu0  ;;  %v413_v5 = vpop.f32.mrf.mxu1 }
 0x1be   :  { %5660 = vst [vmem:[#allocation44_spill] sm:$0xff] %v4837_v11  ;;  %5661 = vst [vmem:[#allocation45_spill] sm:$0xff] %v4840_v13  ;;  %v4842_v2 = vadd.f32 %v340_v25, %v218_v29  ;;  %v4845_v37 = vadd.f32 %v413_v5, %v4785_v30  ;;  %v309_v11 = vadd.f32 %v4765_v14, %v214_v22 }
 0x1bf   :  { %v342_v45 = vpop.f32.mrf.mxu0  ;;  %v415_v46 = vpop.f32.mrf.mxu1  ;;  %v311_v5 = vadd.f32 %v4771_v20, %v218_v29 }
 0x1c0   :  { %5662 = vst [vmem:[#allocation46_spill] sm:$0xff] %v4842_v2  ;;  %5663 = vst [vmem:[#allocation47_spill] sm:$0xff] %v4845_v37  ;;  %v4847_v12 = vadd.f32 %v342_v45, %v214_v22  ;;  %v4850_v19 = vadd.f32 %v415_v46, %v4779_v23  ;;  %v382_v22 = vadd.f32 %v4767_v16, %v4779_v23 }
 0x1c1   :  { %v344_v54 = vpop.f32.mrf.mxu0  ;;  %v417_v61 = vpop.f32.mrf.mxu1 }
 0x1c2   :  { %5664 = vst [vmem:[#allocation48_spill] sm:$0xff] %v4847_v12  ;;  %5665 = vst [vmem:[#allocation49_spill] sm:$0xff] %v4850_v19  ;;  %v4853_v17 = vadd.f32 %v344_v54, %v218_v29  ;;  %v4856_v13 = vadd.f32 %v417_v61, %v4785_v30  ;;  %v384_v61 = vadd.f32 %v4773_v21, %v4785_v30 }
 0x1c3   :  { %v685_v25 = vpop.f32.mrf.mxu0  ;;  %v726_v2 = vpop.f32.mrf.mxu1 }
 0x1c4   :  { %v733_v37 = vadd.f32 %v685_v25, %v309_v11  ;;  %v735_v54 = vadd.f32 %v726_v2, %v382_v22 }
 0x1c5   :  { %v687_v36 = vpop.f32.mrf.mxu0  ;;  %v728_v45 = vpop.f32.mrf.mxu1 }
 0x1c6   :  { %v3457_v12 = vmul.f32 -1.442695, %v733_v37  ;;  %v734_v1 = vadd.f32 %v687_v36, %v311_v5  ;;  %v3459_v20 = vmul.f32 -1.442695, %v735_v54  ;;  %v736_v29 = vadd.f32 %v728_v45, %v384_v61 }
 0x1c7   :  { %v689_v46 = vpop.f32.mrf.mxu0  ;;  %v730_v19 = vpop.f32.mrf.mxu1 }
 0x1c8   :  { %3885 = vpow2.f32 %v3457_v12  ;;  %v3458_v28 = vmul.f32 -1.442695, %v734_v1  ;;  %v5666_v46 = vmov 0  }
 0x1c9   :  { %v690_v3 = vpop.f32.mrf.mxu0  ;;  %v731_v14 = vpop.f32.mrf.mxu1 }
 0x1ca   :  { %3887 = vpow2.f32 %v3458_v28 }
 0x1cb   :  { %3889 = vpow2.f32 %v3459_v20 }
 0x1d5   :  { %v3886_v11 = vpop.eup %3885 }
 0x1d6   :  { %v746_v25 = vadd.f32 1.0, %v3886_v11 }
 0x1d7   :  { %v3888_v37 = vpop.eup %3887 }
 0x1d8   :  { %3891 = vrcp.f32 %v746_v25  ;;  %v747_v36 = vadd.f32 1.0, %v3888_v37  ;;  %v3890_v1 = vpop.eup %3889 }
 0x1d9   :  { %3893 = vtanh.f32 %v736_v29  ;;  %v748_v19 = vadd.f32 1.0, %v3890_v1 }
 0x1da   :  { %3895 = vrcp.f32 %v747_v36 }
 0x1db   :  { %3897 = vrcp.f32 %v748_v19 }
 0x1e5   :  { %v3892_v12 = vpop.eup %3891 }
 0x1e6   :  { %v3894_v3 = vpop.eup %3893 }
 0x1e7   :  { %v3896_v28 = vpop.eup %3895  ;;  %v757_v2 = vmul.f32 %v3894_v3, %v3892_v12 }
 0x1e8   :  { %v756_v16 = vmul.f32 0.0, %v3896_v28  ;;  %v3898_v21 = vpop.eup %3897 }
 0x1ea   :  { %v4863_v23 = vadd.f32 %v757_v2, %v756_v16 }
 0x1ec   :  { %3899 = vtanh.f32 %v4863_v23 }
 0x1f9   :  { %v3900_v30 = vpop.eup %3899 }
 0x1fa   :  { %v760_v5 = vmul.f32 %v3900_v30, %v3898_v21 }
 0x1fc   :  { %v768_v45 = vpack.c.bf16 %v760_v5, %v760_v5 }
 0x1fe   :  { %802 = vmatmul.mubr.bf16.vlgmr.msra.gmra.mxu0 %v768_v45  ;;  %843 = vmatmul.mubr.bf16.vlgmr.msra.gmra.mxu1 %v768_v45 }
 0x1ff   :  { %888 = vmatpush1.bf16.msra.mxu0 %v4613_v24  ;;  %929 = vmatpush1.bf16.msra.mxu1 %v4615_v26 }
 0x200   :  { %889 = vmatprep.subr.bf16.mxu0 %v4617_v27  ;;  %930 = vmatprep.subr.bf16.mxu1 %v4619_v33 }
 0x201   :  { %919 = vmatprep.mubr.bf16.mxu0 %v5666_v46  ;;  %960 = vmatprep.mubr.bf16.mxu1 %v5666_v46 }
 0x203   :  { %890 = vmatpush1.bf16.msra.mxu0 %v4627_v34  ;;  %931 = vmatpush1.bf16.msra.mxu1 %v4629_v35 }
 0x204   :  { %891 = vmatprep.subr.bf16.mxu0 %v4633_v39  ;;  %932 = vmatprep.subr.bf16.mxu1 %v4635_v40 }
 0x207   :  { %892 = vmatpush1.bf16.msra.mxu0 %v4642_v42  ;;  %933 = vmatpush1.bf16.msra.mxu1 %v4644_v43 }
 0x208   :  { %893 = vmatprep.subr.bf16.mxu0 %v4646_v44  ;;  %934 = vmatprep.subr.bf16.mxu1 %v4650_v47 }
 0x20b   :  { %894 = vmatpush1.bf16.msra.mxu0 %v4656_v48  ;;  %935 = vmatpush1.bf16.msra.mxu1 %v4658_v49 }
 0x20c   :  { %895 = vmatprep.subr.bf16.mxu0 %v4662_v52  ;;  %936 = vmatprep.subr.bf16.mxu1 %v4664_v53 }
 0x20f   :  { %896 = vmatpush1.bf16.msra.mxu0 %v4670_v55  ;;  %937 = vmatpush1.bf16.msra.mxu1 %v4672_v56 }
 0x210   :  { %897 = vmatprep.subr.bf16.mxu0 %v4676_v57  ;;  %938 = vmatprep.subr.bf16.mxu1 %v4678_v58 }
 0x213   :  { %898 = vmatpush1.bf16.msra.mxu0 %v4682_v59  ;;  %939 = vmatpush1.bf16.msra.mxu1 %v4686_v60 }
 0x214   :  { %899 = vmatprep.subr.bf16.mxu0 %v4690_v63  ;;  %940 = vmatprep.subr.bf16.mxu1 %v4692_v0 }
 0x217   :  { %900 = vmatpush1.bf16.msra.mxu0 %v4698_v4  ;;  %941 = vmatpush1.bf16.msra.mxu1 %v4700_v6 }
 0x218   :  { %901 = vmatprep.subr.bf16.mxu0 %v4704_v7  ;;  %942 = vmatprep.subr.bf16.mxu1 %v4706_v8 }
 0x21b   :  { %902 = vmatpush1.bf16.msra.mxu0 %v4712_v9  ;;  %943 = vmatpush1.bf16.msra.mxu1 %v4714_v10 }
 0x21c   :  { %1005 = vmatprep.subr.bf16.mxu0 %v4603_v15  ;;  %1046 = vmatprep.subr.bf16.mxu1 %v4605_v18 }
 0x2be   :  { %v803_v14 = vpop.f32.mrf.mxu0  ;;  %v844_v22 = vpop.f32.mrf.mxu1 }
 0x2bf   :  { %v851_v54 = vadd.f32 %v803_v14, %v4787_v31  ;;  %v853_v15 = vadd.f32 %v844_v22, %v4790_v32 }
 0x2c0   :  { %v805_v61 = vpop.f32.mrf.mxu0  ;;  %v846_v20 = vpop.f32.mrf.mxu1 }
 0x2c1   :  { %v3460_v11 = vmul.f32 -1.442695, %v851_v54  ;;  %v852_v29 = vadd.f32 %v805_v61, %v4792_v38  ;;  %v3462_v3 = vmul.f32 -1.442695, %v853_v15  ;;  %v854_v28 = vadd.f32 %v846_v20, %v4795_v41 }
 0x2c2   :  { %v807_v25 = vpop.f32.mrf.mxu0  ;;  %v848_v37 = vpop.f32.mrf.mxu1 }
 0x2c3   :  { %3901 = vpow2.f32 %v3460_v11  ;;  %v3461_v36 = vmul.f32 -1.442695, %v852_v29 }
 0x2c4   :  { %v808_v1 = vpop.f32.mrf.mxu0  ;;  %v849_v12 = vpop.f32.mrf.mxu1 }
 0x2c5   :  { %3903 = vpow2.f32 %v3461_v36 }
 0x2c6   :  { %3905 = vpow2.f32 %v3462_v3 }
 0x2c7   :  { %3907 = vtanh.f32 %v854_v28 }
 0x2d0   :  { %v3902_v19 = vpop.eup %3901 }
 0x2d1   :  { %v864_v16 = vadd.f32 1.0, %v3902_v19 }
 0x2d2   :  { %v3904_v31 = vpop.eup %3903 }
 0x2d3   :  { %3909 = vrcp.f32 %v864_v16  ;;  %v865_v2 = vadd.f32 1.0, %v3904_v31  ;;  %v3906_v38 = vpop.eup %3905 }
 0x2d4   :  { %v3908_v21 = vpop.eup %3907  ;;  %v866_v14 = vadd.f32 1.0, %v3906_v38 }
 0x2d5   :  { %3911 = vrcp.f32 %v865_v2 }
 0x2d6   :  { %3913 = vrcp.f32 %v866_v14 }
 0x2e0   :  { %v3910_v30 = vpop.eup %3909 }
 0x2e1   :  { %v875_v5 = vmul.f32 %v3910_v30, %v3908_v21 }
 0x2e2   :  { %v3912_v45 = vpop.eup %3911 }
 0x2e3   :  { %v874_v54 = vmul.f32 %v3912_v45, %v4863_v23  ;;  %v3914_v41 = vpop.eup %3913  ;;  %v4940_v23 = vld [vmem:[#allocation10 + $0xe4] ss:$16 sps:$4 sm:$0xff]  }
 0x2e5   :  { %v4905_v32 = vadd.f32 %v875_v5, %v874_v54 }
 0x2e7   :  { %3915 = vtanh.f32 %v4905_v32 }
 0x2f4   :  { %v3916_v22 = vpop.eup %3915 }
 0x2f5   :  { %v878_v61 = vmul.f32 %v3916_v22, %v3914_v41 }
 0x2f7   :  { %v886_v20 = vpack.c.bf16 %v878_v61, %v878_v61 }
 0x2f9   :  { %920 = vmatmul.mubr.bf16.vlgmr.msra.gmra.mxu0 %v886_v20  ;;  %961 = vmatmul.mubr.bf16.vlgmr.msra.gmra.mxu1 %v886_v20 }
 0x2fa   :  { %1006 = vmatpush1.bf16.msra.mxu0 %v4613_v24  ;;  %1047 = vmatpush1.bf16.msra.mxu1 %v4615_v26 }
 0x2fb   :  { %1007 = vmatprep.subr.bf16.mxu0 %v4617_v27  ;;  %1048 = vmatprep.subr.bf16.mxu1 %v4619_v33 }
 0x2fc   :  { %1037 = vmatprep.mubr.bf16.mxu0 %v5666_v46  ;;  %1078 = vmatprep.mubr.bf16.mxu1 %v5666_v46 }
 0x2fe   :  { %1008 = vmatpush1.bf16.msra.mxu0 %v4627_v34  ;;  %1049 = vmatpush1.bf16.msra.mxu1 %v4629_v35 }
 0x2ff   :  { %1009 = vmatprep.subr.bf16.mxu0 %v4633_v39  ;;  %1050 = vmatprep.subr.bf16.mxu1 %v4635_v40 }
 0x302   :  { %1010 = vmatpush1.bf16.msra.mxu0 %v4642_v42  ;;  %1051 = vmatpush1.bf16.msra.mxu1 %v4644_v43 }
 0x303   :  { %1011 = vmatprep.subr.bf16.mxu0 %v4646_v44  ;;  %1052 = vmatprep.subr.bf16.mxu1 %v4650_v47 }
 0x306   :  { %1012 = vmatpush1.bf16.msra.mxu0 %v4656_v48  ;;  %1053 = vmatpush1.bf16.msra.mxu1 %v4658_v49 }
 0x307   :  { %1013 = vmatprep.subr.bf16.mxu0 %v4662_v52  ;;  %1054 = vmatprep.subr.bf16.mxu1 %v4664_v53 }
 0x30a   :  { %1014 = vmatpush1.bf16.msra.mxu0 %v4670_v55  ;;  %1055 = vmatpush1.bf16.msra.mxu1 %v4672_v56 }
 0x30b   :  { %1015 = vmatprep.subr.bf16.mxu0 %v4676_v57  ;;  %1056 = vmatprep.subr.bf16.mxu1 %v4678_v58 }
 0x30e   :  { %1016 = vmatpush1.bf16.msra.mxu0 %v4682_v59  ;;  %1057 = vmatpush1.bf16.msra.mxu1 %v4686_v60 }
 0x30f   :  { %1017 = vmatprep.subr.bf16.mxu0 %v4690_v63  ;;  %1058 = vmatprep.subr.bf16.mxu1 %v4692_v0 }
 0x312   :  { %1018 = vmatpush1.bf16.msra.mxu0 %v4698_v4  ;;  %1059 = vmatpush1.bf16.msra.mxu1 %v4700_v6 }
 0x313   :  { %1019 = vmatprep.subr.bf16.mxu0 %v4704_v7  ;;  %1060 = vmatprep.subr.bf16.mxu1 %v4706_v8 }
 0x316   :  { %1020 = vmatpush1.bf16.msra.mxu0 %v4712_v9  ;;  %1061 = vmatpush1.bf16.msra.mxu1 %v4714_v10 }
 0x317   :  { %1123 = vmatprep.subr.bf16.mxu0 %v4940_v23  ;;  %1164 = vmatprep.subr.bf16.mxu1 %v4605_v18  ;;  %v5667_v18 = vld [vmem:[#allocation31_spill] sm:$0xff] }
 0x3b9   :  { %v921_v11 = vpop.f32.mrf.mxu0  ;;  %v962_v29 = vpop.f32.mrf.mxu1 }
 0x3ba   :  { %v969_v25 = vadd.f32 %v921_v11, %v4797_v50  ;;  %v971_v31 = vadd.f32 %v962_v29, %v4800_v51 }
 0x3bb   :  { %v923_v37 = vpop.f32.mrf.mxu0  ;;  %v964_v36 = vpop.f32.mrf.mxu1 }
 0x3bc   :  { %v3463_v1 = vmul.f32 -1.442695, %v969_v25  ;;  %v970_v12 = vadd.f32 %v923_v37, %v4802_v62  ;;  %v3465_v2 = vmul.f32 -1.442695, %v971_v31  ;;  %v972_v38 = vadd.f32 %v964_v36, %v5667_v18 }
 0x3bd   :  { %v925_v15 = vpop.f32.mrf.mxu0  ;;  %v966_v3 = vpop.f32.mrf.mxu1 }
 0x3be   :  { %3917 = vpow2.f32 %v3463_v1  ;;  %v3464_v28 = vmul.f32 -1.442695, %v970_v12  ;;  %v5668_v1 = vld [vmem:[#allocation32_spill] sm:$0xff] }
 0x3bf   :  { %v926_v19 = vpop.f32.mrf.mxu0  ;;  %v967_v16 = vpop.f32.mrf.mxu1 }
 0x3c0   :  { %3919 = vpow2.f32 %v3464_v28  ;;  %v5669_v19 = vld [vmem:[#allocation34_spill] sm:$0xff] }
 0x3c1   :  { %3921 = vpow2.f32 %v3465_v2 }
 0x3c2   :  { %3923 = vtanh.f32 %v972_v38 }
 0x3cb   :  { %v3918_v21 = vpop.eup %3917 }
 0x3cc   :  { %v982_v30 = vadd.f32 1.0, %v3918_v21 }
 0x3cd   :  { %v3920_v50 = vpop.eup %3919 }
 0x3ce   :  { %3925 = vrcp.f32 %v982_v30  ;;  %v983_v5 = vadd.f32 1.0, %v3920_v50  ;;  %v3922_v62 = vpop.eup %3921  ;;  %v5670_v30 = vld [vmem:[#allocation33_spill] sm:$0xff] }
 0x3cf   :  { %v3924_v45 = vpop.eup %3923  ;;  %v984_v22 = vadd.f32 1.0, %v3922_v62  ;;  %v5671_v62 = vld [vmem:[#allocation35_spill] sm:$0xff] }
 0x3d0   :  { %3927 = vrcp.f32 %v983_v5 }
 0x3d1   :  { %3929 = vrcp.f32 %v984_v22 }
 0x3db   :  { %v3926_v14 = vpop.eup %3925 }
 0x3dc   :  { %v993_v54 = vmul.f32 %v3926_v14, %v3924_v45 }
 0x3dd   :  { %v3928_v41 = vpop.eup %3927 }
 0x3de   :  { %v992_v61 = vmul.f32 %v3928_v41, %v4905_v32  ;;  %v3930_v20 = vpop.eup %3929  ;;  %v4985_v32 = vld [vmem:[#allocation10 + $0xec] ss:$16 sps:$4 sm:$0xff]  }
 0x3e0   :  { %v4949_v51 = vadd.f32 %v993_v54, %v992_v61 }
 0x3e2   :  { %3931 = vtanh.f32 %v4949_v51 }
 0x3ef   :  { %v3932_v11 = vpop.eup %3931 }
 0x3f0   :  { %v996_v29 = vmul.f32 %v3932_v11, %v3930_v20 }
 0x3f2   :  { %v1004_v25 = vpack.c.bf16 %v996_v29, %v996_v29 }
 0x3f4   :  { %1038 = vmatmul.mubr.bf16.vlgmr.msra.gmra.mxu0 %v1004_v25  ;;  %1079 = vmatmul.mubr.bf16.vlgmr.msra.gmra.mxu1 %v1004_v25 }
 0x3f5   :  { %1124 = vmatpush1.bf16.msra.mxu0 %v4613_v24  ;;  %1165 = vmatpush1.bf16.msra.mxu1 %v4615_v26 }
 0x3f6   :  { %1125 = vmatprep.subr.bf16.mxu0 %v4617_v27  ;;  %1166 = vmatprep.subr.bf16.mxu1 %v4619_v33 }
 0x3f7   :  { %1155 = vmatprep.mubr.bf16.mxu0 %v5666_v46  ;;  %1196 = vmatprep.mubr.bf16.mxu1 %v5666_v46 }
 0x3f9   :  { %1126 = vmatpush1.bf16.msra.mxu0 %v4627_v34  ;;  %1167 = vmatpush1.bf16.msra.mxu1 %v4629_v35 }
 0x3fa   :  { %1127 = vmatprep.subr.bf16.mxu0 %v4633_v39  ;;  %1168 = vmatprep.subr.bf16.mxu1 %v4635_v40 }
 0x3fd   :  { %1128 = vmatpush1.bf16.msra.mxu0 %v4642_v42  ;;  %1169 = vmatpush1.bf16.msra.mxu1 %v4644_v43 }
 0x3fe   :  { %1129 = vmatprep.subr.bf16.mxu0 %v4646_v44  ;;  %1170 = vmatprep.subr.bf16.mxu1 %v4650_v47 }
 0x401   :  { %1130 = vmatpush1.bf16.msra.mxu0 %v4656_v48  ;;  %1171 = vmatpush1.bf16.msra.mxu1 %v4658_v49 }
 0x402   :  { %1131 = vmatprep.subr.bf16.mxu0 %v4662_v52  ;;  %1172 = vmatprep.subr.bf16.mxu1 %v4664_v53 }
 0x405   :  { %1132 = vmatpush1.bf16.msra.mxu0 %v4670_v55  ;;  %1173 = vmatpush1.bf16.msra.mxu1 %v4672_v56 }
 0x406   :  { %1133 = vmatprep.subr.bf16.mxu0 %v4676_v57  ;;  %1174 = vmatprep.subr.bf16.mxu1 %v4678_v58 }
 0x409   :  { %1134 = vmatpush1.bf16.msra.mxu0 %v4682_v59  ;;  %1175 = vmatpush1.bf16.msra.mxu1 %v4686_v60 }
 0x40a   :  { %1135 = vmatprep.subr.bf16.mxu0 %v4690_v63  ;;  %1176 = vmatprep.subr.bf16.mxu1 %v4692_v0 }
 0x40d   :  { %1136 = vmatpush1.bf16.msra.mxu0 %v4698_v4  ;;  %1177 = vmatpush1.bf16.msra.mxu1 %v4700_v6 }
 0x40e   :  { %1137 = vmatprep.subr.bf16.mxu0 %v4704_v7  ;;  %1178 = vmatprep.subr.bf16.mxu1 %v4706_v8 }
 0x411   :  { %1138 = vmatpush1.bf16.msra.mxu0 %v4712_v9  ;;  %1179 = vmatpush1.bf16.msra.mxu1 %v4714_v10 }
 0x412   :  { %1241 = vmatprep.subr.bf16.mxu0 %v4940_v23  ;;  %1282 = vmatprep.subr.bf16.mxu1 %v4985_v32 }
 0x4b4   :  { %v1039_v37 = vpop.f32.mrf.mxu0  ;;  %v1080_v36 = vpop.f32.mrf.mxu1 }
 0x4b5   :  { %v1087_v12 = vadd.f32 %v1039_v37, %v5668_v1  ;;  %v1089_v50 = vadd.f32 %v1080_v36, %v5670_v30 }
 0x4b6   :  { %v1041_v15 = vpop.f32.mrf.mxu0  ;;  %v1082_v3 = vpop.f32.mrf.mxu1 }
 0x4b7   :  { %v3466_v28 = vmul.f32 -1.442695, %v1087_v12  ;;  %v1088_v16 = vadd.f32 %v1041_v15, %v5669_v19  ;;  %v3468_v5 = vmul.f32 -1.442695, %v1089_v50  ;;  %v1090_v45 = vadd.f32 %v1082_v3, %v5671_v62 }
 0x4b8   :  { %v1043_v31 = vpop.f32.mrf.mxu0  ;;  %v1084_v2 = vpop.f32.mrf.mxu1 }
 0x4b9   :  { %3933 = vpow2.f32 %v3466_v28  ;;  %v3467_v18 = vmul.f32 -1.442695, %v1088_v16  ;;  %v5675_v31 = vld [vmem:[#allocation39_spill] sm:$0xff] }
 0x4ba   :  { %v1044_v38 = vpop.f32.mrf.mxu0  ;;  %v1085_v21 = vpop.f32.mrf.mxu1 }
 0x4bb   :  { %3935 = vpow2.f32 %v3467_v18 }
 0x4bc   :  { %3937 = vpow2.f32 %v3468_v5 }
 0x4bd   :  { %3939 = vtanh.f32 %v1090_v45 }
 0x4c6   :  { %v3934_v14 = vpop.eup %3933 }
 0x4c7   :  { %v1100_v54 = vadd.f32 1.0, %v3934_v14 }
 0x4c8   :  { %v3936_v41 = vpop.eup %3935 }
 0x4c9   :  { %3941 = vrcp.f32 %v1100_v54  ;;  %v1101_v22 = vadd.f32 1.0, %v3936_v41  ;;  %v3938_v61 = vpop.eup %3937 }
 0x4ca   :  { %v3940_v20 = vpop.eup %3939  ;;  %v1102_v37 = vadd.f32 1.0, %v3938_v61 }
 0x4cb   :  { %3943 = vrcp.f32 %v1101_v22 }
 0x4cc   :  { %3945 = vrcp.f32 %v1102_v37  ;;  %v5041_v37 = vld [vmem:[#allocation10 + $0xe8] ss:$16 sps:$4 sm:$0xff]  }
 0x4d6   :  { %v3942_v11 = vpop.eup %3941 }
 0x4d7   :  { %v1111_v29 = vmul.f32 %v3942_v11, %v3940_v20 }
 0x4d8   :  { %v3944_v25 = vpop.eup %3943 }
 0x4d9   :  { %v1110_v1 = vmul.f32 %v3944_v25, %v4949_v51  ;;  %v3946_v12 = vpop.eup %3945  ;;  %v5674_v51 = vld [vmem:[#allocation37_spill] sm:$0xff]  ;;  %v5038_v25 = vld [vmem:[#allocation10 + $0xe0] ss:$16 sps:$4 sm:$0xff]  }
 0x4db   :  { %v4993_v36 = vadd.f32 %v1111_v29, %v1110_v1  ;;  %v5044_v1 = vld [vmem:[#allocation10 + $0xc4] ss:$16 sps:$4 sm:$0xff]  }
 0x4dd   :  { %3947 = vtanh.f32 %v4993_v36 }
 0x4ea   :  { %v3948_v15 = vpop.eup %3947 }
 0x4eb   :  { %v1114_v3 = vmul.f32 %v3948_v15, %v3946_v12  ;;  %v5052_v12 = vld [vmem:[#allocation10 + $0xc0] ss:$16 sps:$4 sm:$0xff]   ;;  %v5056_v15 = vld [vmem:[#allocation10 + $0xa4] ss:$16 sps:$4 sm:$0xff]  }
 0x4ed   :  { %v1122_v28 = vpack.c.bf16 %v1114_v3, %v1114_v3  ;;  %v5059_v3 = vld [vmem:[#allocation10 + $0xac] ss:$16 sps:$4 sm:$0xff]  }
 0x4ef   :  { %1156 = vmatmul.mubr.bf16.vlgmr.msra.gmra.mxu0 %v1122_v28  ;;  %1197 = vmatmul.mubr.bf16.vlgmr.msra.gmra.mxu1 %v1122_v28  ;;  %v5062_v28 = vld [vmem:[#allocation10 + $0xa0] ss:$16 sps:$4 sm:$0xff]  }
 0x4f0   :  { %1242 = vmatpush1.bf16.msra.mxu0 %v4613_v24  ;;  %1283 = vmatpush1.bf16.msra.mxu1 %v4615_v26 }
 0x4f1   :  { %1243 = vmatprep.subr.bf16.mxu0 %v4617_v27  ;;  %1284 = vmatprep.subr.bf16.mxu1 %v4619_v33  ;;  %v5672_v27 = vld [vmem:[#allocation36_spill] sm:$0xff] }
 0x4f2   :  { %1273 = vmatprep.mubr.bf16.mxu0 %v5666_v46  ;;  %1314 = vmatprep.mubr.bf16.mxu1 %v5666_v46 }
 0x4f4   :  { %1244 = vmatpush1.bf16.msra.mxu0 %v4627_v34  ;;  %1285 = vmatpush1.bf16.msra.mxu1 %v4629_v35 }
 0x4f5   :  { %1245 = vmatprep.subr.bf16.mxu0 %v4633_v39  ;;  %1286 = vmatprep.subr.bf16.mxu1 %v4635_v40 }
 0x4f8   :  { %1246 = vmatpush1.bf16.msra.mxu0 %v4642_v42  ;;  %1287 = vmatpush1.bf16.msra.mxu1 %v4644_v43  ;;  %v5673_v42 = vld [vmem:[#allocation38_spill] sm:$0xff] }
 0x4f9   :  { %1247 = vmatprep.subr.bf16.mxu0 %v4646_v44  ;;  %1288 = vmatprep.subr.bf16.mxu1 %v4650_v47 }
 0x4fc   :  { %1248 = vmatpush1.bf16.msra.mxu0 %v4656_v48  ;;  %1289 = vmatpush1.bf16.msra.mxu1 %v4658_v49 }
 0x4fd   :  { %1249 = vmatprep.subr.bf16.mxu0 %v4662_v52  ;;  %1290 = vmatprep.subr.bf16.mxu1 %v4664_v53 }
 0x500   :  { %1250 = vmatpush1.bf16.msra.mxu0 %v4670_v55  ;;  %1291 = vmatpush1.bf16.msra.mxu1 %v4672_v56 }
 0x501   :  { %1251 = vmatprep.subr.bf16.mxu0 %v4676_v57  ;;  %1292 = vmatprep.subr.bf16.mxu1 %v4678_v58 }
 0x504   :  { %1252 = vmatpush1.bf16.msra.mxu0 %v4682_v59  ;;  %1293 = vmatpush1.bf16.msra.mxu1 %v4686_v60 }
 0x505   :  { %1253 = vmatprep.subr.bf16.mxu0 %v4690_v63  ;;  %1294 = vmatprep.subr.bf16.mxu1 %v4692_v0 }
 0x508   :  { %1254 = vmatpush1.bf16.msra.mxu0 %v4698_v4  ;;  %1295 = vmatpush1.bf16.msra.mxu1 %v4700_v6 }
 0x509   :  { %1255 = vmatprep.subr.bf16.mxu0 %v4704_v7  ;;  %1296 = vmatprep.subr.bf16.mxu1 %v4706_v8 }
 0x50c   :  { %1256 = vmatpush1.bf16.msra.mxu0 %v4712_v9  ;;  %1297 = vmatpush1.bf16.msra.mxu1 %v4714_v10 }
 0x50d   :  { %1359 = vmatprep.subr.bf16.mxu0 %v4940_v23  ;;  %1400 = vmatprep.subr.bf16.mxu1 %v4985_v32 }
 0x5af   :  { %v1157_v24 = vpop.f32.mrf.mxu0  ;;  %v1198_v26 = vpop.f32.mrf.mxu1 }
 0x5b0   :  { %v1205_v33 = vadd.f32 %v1157_v24, %v5672_v27  ;;  %v1207_v19 = vadd.f32 %v1198_v26, %v5674_v51  ;;  %v5065_v24 = vld [vmem:[#allocation10 + $0xa8] ss:$16 sps:$4 sm:$0xff]   ;;  %v5068_v26 = vld [vmem:[#allocation10 + $0x84] ss:$16 sps:$4 sm:$0xff]   ;;  %v5071_v27 = vld [vmem:[#allocation10 + $0x8c] ss:$16 sps:$4 sm:$0xff]  }
 0x5b1   :  { %v1159_v34 = vpop.f32.mrf.mxu0  ;;  %v1200_v39 = vpop.f32.mrf.mxu1 }
 0x5b2   :  { %v3469_v40 = vmul.f32 -1.442695, %v1205_v33  ;;  %v1206_v43 = vadd.f32 %v1159_v34, %v5673_v42  ;;  %v3471_v16 = vmul.f32 -1.442695, %v1207_v19  ;;  %v1208_v2 = vadd.f32 %v1200_v39, %v5675_v31  ;;  %v5074_v33 = vld [vmem:[#allocation10 + $0x80] ss:$16 sps:$4 sm:$0xff]  }
 0x5b3   :  { %v1161_v44 = vpop.f32.mrf.mxu0  ;;  %v1202_v47 = vpop.f32.mrf.mxu1  ;;  %v5078_v34 = vld [vmem:[#allocation10 + $0x64] ss:$16 sps:$4 sm:$0xff]   ;;  %v5081_v39 = vld [vmem:[#allocation10 + $0x6c] ss:$16 sps:$4 sm:$0xff]  }
 0x5b4   :  { %3949 = vpow2.f32 %v3469_v40  ;;  %v3470_v48 = vmul.f32 -1.442695, %v1206_v43 }
 0x5b5   :  { %v1162_v52 = vpop.f32.mrf.mxu0  ;;  %v1203_v53 = vpop.f32.mrf.mxu1 }
 0x5b6   :  { %3951 = vpow2.f32 %v3470_v48 }
 0x5b7   :  { %3953 = vpow2.f32 %v3471_v16 }
 0x5b8   :  { %3955 = vtanh.f32 %v1208_v2 }
 0x5c1   :  { %v3950_v18 = vpop.eup %3949 }
 0x5c2   :  { %v1218_v38 = vadd.f32 1.0, %v3950_v18 }
 0x5c3   :  { %v3952_v21 = vpop.eup %3951 }
 0x5c4   :  { %3957 = vrcp.f32 %v1218_v38  ;;  %v1219_v30 = vadd.f32 1.0, %v3952_v21  ;;  %v3954_v50 = vpop.eup %3953 }
 0x5c5   :  { %v3956_v5 = vpop.eup %3955  ;;  %v1220_v54 = vadd.f32 1.0, %v3954_v50 }
 0x5c6   :  { %3959 = vrcp.f32 %v1219_v30 }
 0x5c7   :  { %3961 = vrcp.f32 %v1220_v54  ;;  %v4161_v54 = vld [vmem:[#allocation10 + $0x40] ss:$16 sps:$4 sm:$0xff]  }
 0x5d1   :  { %v3958_v62 = vpop.eup %3957 }
 0x5d2   :  { %v1229_v45 = vmul.f32 %v3958_v62, %v3956_v5  ;;  %v4158_v62 = vld [vmem:[#allocation10 + $0x68] ss:$16 sps:$4 sm:$0xff]  }
 0x5d3   :  { %v3960_v14 = vpop.eup %3959 }
 0x5d4   :  { %v1228_v41 = vmul.f32 %v3960_v14, %v4993_v36  ;;  %v3962_v61 = vpop.eup %3961  ;;  %v5047_v36 = vld [vmem:[#allocation10 + $0xcc] ss:$16 sps:$4 sm:$0xff]  }
 0x5d5   :  { %v4160_v14 = vld [vmem:[#allocation10 + $0x4c] ss:$16 sps:$4 sm:$0xff]  }
 0x5d6   :  { %v5035_v22 = vadd.f32 %v1229_v45, %v1228_v41  ;;  %v4159_v45 = vld [vmem:[#allocation10 + $0x44] ss:$16 sps:$4 sm:$0xff]   ;;  %v4162_v41 = vld [vmem:[#allocation10 + $0x48] ss:$16 sps:$4 sm:$0xff]  }
 0x5d8   :  { %3963 = vtanh.f32 %v5035_v22 }
 0x5e5   :  { %v3964_v20 = vpop.eup %3963 }
 0x5e6   :  { %v1232_v11 = vmul.f32 %v3964_v20, %v3962_v61  ;;  %v4164_v61 = vld [vmem:[#allocation10 + $0x2c] ss:$16 sps:$4 sm:$0xff]   ;;  %v4166_v20 = vld [vmem:[#allocation10 + $0x28] ss:$16 sps:$4 sm:$0xff]  }
 0x5e8   :  { %v1240_v29 = vpack.c.bf16 %v1232_v11, %v1232_v11  ;;  %v4167_v11 = vld [vmem:[#allocation10 + $0x4] ss:$16 sps:$4 sm:$0xff]  }
 0x5ea   :  { %1274 = vmatmul.mubr.bf16.vlgmr.msra.gmra.mxu0 %v1240_v29  ;;  %1315 = vmatmul.mubr.bf16.vlgmr.msra.gmra.mxu1 %v1240_v29  ;;  %v4168_v29 = vld [vmem:[#allocation10 + $0xc] ss:$16 sps:$4 sm:$0xff]  }
 0x5eb   :  { %1360 = vmatpush1.bf16.msra.mxu0 %v5038_v25  ;;  %1401 = vmatpush1.bf16.msra.mxu1 %v5041_v37 }
 0x5ec   :  { %1361 = vmatprep.subr.bf16.mxu0 %v5044_v1  ;;  %1402 = vmatprep.subr.bf16.mxu1 %v5047_v36 }
 0x5ed   :  { %1391 = vmatprep.mubr.bf16.mxu0 %v5666_v46  ;;  %1432 = vmatprep.mubr.bf16.mxu1 %v5666_v46 }
 0x5ef   :  { %1362 = vmatpush1.bf16.msra.mxu0 %v5052_v12  ;;  %1403 = vmatpush1.bf16.msra.mxu1 %v4629_v35 }
 0x5f0   :  { %1363 = vmatprep.subr.bf16.mxu0 %v5056_v15  ;;  %1404 = vmatprep.subr.bf16.mxu1 %v5059_v3 }
 0x5f3   :  { %1364 = vmatpush1.bf16.msra.mxu0 %v5062_v28  ;;  %1405 = vmatpush1.bf16.msra.mxu1 %v5065_v24 }
 0x5f4   :  { %1365 = vmatprep.subr.bf16.mxu0 %v5068_v26  ;;  %1406 = vmatprep.subr.bf16.mxu1 %v5071_v27 }
 0x5f7   :  { %1366 = vmatpush1.bf16.msra.mxu0 %v5074_v33  ;;  %1407 = vmatpush1.bf16.msra.mxu1 %v4658_v49 }
 0x5f8   :  { %1367 = vmatprep.subr.bf16.mxu0 %v5078_v34  ;;  %1408 = vmatprep.subr.bf16.mxu1 %v5081_v39 }
 0x5fb   :  { %1368 = vmatpush1.bf16.msra.mxu0 %v4670_v55  ;;  %1409 = vmatpush1.bf16.msra.mxu1 %v4672_v56 }
 0x5fc   :  { %1369 = vmatprep.subr.bf16.mxu0 %v4676_v57  ;;  %1410 = vmatprep.subr.bf16.mxu1 %v4678_v58  ;;  %v5676_v57 = vld [vmem:[#allocation40_spill] sm:$0xff] }
 0x5ff   :  { %1370 = vmatpush1.bf16.msra.mxu0 %v4682_v59  ;;  %1411 = vmatpush1.bf16.msra.mxu1 %v4686_v60 }
 0x600   :  { %1371 = vmatprep.subr.bf16.mxu0 %v4690_v63  ;;  %1412 = vmatprep.subr.bf16.mxu1 %v4692_v0  ;;  %v5677_v0 = vld [vmem:[#allocation42_spill] sm:$0xff] }
 0x603   :  { %1372 = vmatpush1.bf16.msra.mxu0 %v4698_v4  ;;  %1413 = vmatpush1.bf16.msra.mxu1 %v4700_v6 }
 0x604   :  { %1373 = vmatprep.subr.bf16.mxu0 %v4704_v7  ;;  %1414 = vmatprep.subr.bf16.mxu1 %v4706_v8 }
 0x607   :  { %1374 = vmatpush1.bf16.msra.mxu0 %v4712_v9  ;;  %1415 = vmatpush1.bf16.msra.mxu1 %v4714_v10  ;;  %v5678_v10 = vld [vmem:[#allocation41_spill] sm:$0xff] }
 0x608   :  { %1477 = vmatprep.subr.bf16.mxu0 %v4940_v23  ;;  %1518 = vmatprep.subr.bf16.mxu1 %v4985_v32  ;;  %v5679_v32 = vld [vmem:[#allocation43_spill] sm:$0xff] }
 0x6aa   :  { %v1275_v55 = vpop.f32.mrf.mxu0  ;;  %v1316_v56 = vpop.f32.mrf.mxu1 }
 0x6ab   :  { %v1323_v58 = vadd.f32 %v1275_v55, %v5676_v57  ;;  %v1325_v23 = vadd.f32 %v1316_v56, %v5678_v10  ;;  %v5682_v57 = vld [vmem:[#allocation45_spill] sm:$0xff] }
 0x6ac   :  { %v1277_v59 = vpop.f32.mrf.mxu0  ;;  %v1318_v60 = vpop.f32.mrf.mxu1 }
 0x6ad   :  { %v3472_v63 = vmul.f32 -1.442695, %v1323_v58  ;;  %v1324_v4 = vadd.f32 %v1277_v59, %v5677_v0  ;;  %v3474_v42 = vmul.f32 -1.442695, %v1325_v23  ;;  %v1326_v43 = vadd.f32 %v1318_v60, %v5679_v32  ;;  %v5683_v60 = vld [vmem:[#allocation47_spill] sm:$0xff] }
 0x6ae   :  { %v1279_v6 = vpop.f32.mrf.mxu0  ;;  %v1320_v7 = vpop.f32.mrf.mxu1 }
 0x6af   :  { %3965 = vpow2.f32 %v3472_v63  ;;  %v3473_v8 = vmul.f32 -1.442695, %v1324_v4 }
 0x6b0   :  { %v1280_v9 = vpop.f32.mrf.mxu0  ;;  %v1321_v40 = vpop.f32.mrf.mxu1 }
 0x6b1   :  { %3967 = vpow2.f32 %v3473_v8 }
 0x6b2   :  { %3969 = vpow2.f32 %v3474_v42 }
 0x6b3   :  { %3971 = vtanh.f32 %v1326_v43 }
 0x6bc   :  { %v3966_v44 = vpop.eup %3965 }
 0x6bd   :  { %v1336_v47 = vadd.f32 1.0, %v3966_v44 }
 0x6be   :  { %v3968_v48 = vpop.eup %3967 }
 0x6bf   :  { %3973 = vrcp.f32 %v1336_v47  ;;  %v1337_v52 = vadd.f32 1.0, %v3968_v48  ;;  %v3970_v53 = vpop.eup %3969 }
 0x6c0   :  { %v3972_v51 = vpop.eup %3971  ;;  %v1338_v2 = vadd.f32 1.0, %v3970_v53  ;;  %v3767_v53 = vld [vmem:[#allocation11 + $0xe4] ss:$16 sps:$4 sm:$0xff]  }
 0x6c1   :  { %3975 = vrcp.f32 %v1337_v52 }
 0x6c2   :  { %3977 = vrcp.f32 %v1338_v2  ;;  %v3776_v2 = vld [vmem:[#allocation11 + $0xcc] ss:$16 sps:$4 sm:$0xff]  }
 0x6cc   :  { %v3974_v19 = vpop.eup %3973 }
 0x6cd   :  { %v1347_v16 = vmul.f32 %v3974_v19, %v3972_v51  ;;  %v3770_v51 = vld [vmem:[#allocation11 + $0xec] ss:$16 sps:$4 sm:$0xff]   ;;  %v3765_v19 = vld [vmem:[#allocation11 + $0xe0] ss:$16 sps:$4 sm:$0xff]  }
 0x6ce   :  { %v3976_v31 = vpop.eup %3975 }
 0x6cf   :  { %v1346_v18 = vmul.f32 %v3976_v31, %v5035_v22  ;;  %v3978_v21 = vpop.eup %3977  ;;  %v4163_v22 = vld [vmem:[#allocation10 + $0x24] ss:$16 sps:$4 sm:$0xff]  }
 0x6d0   :  { %v3773_v31 = vld [vmem:[#allocation11 + $0xc4] ss:$16 sps:$4 sm:$0xff]  }
 0x6d1   :  { %v5105_v38 = vadd.f32 %v1347_v16, %v1346_v18  ;;  %v3768_v16 = vld [vmem:[#allocation11 + $0xe8] ss:$16 sps:$4 sm:$0xff]   ;;  %v3771_v18 = vld [vmem:[#allocation11 + $0xc0] ss:$16 sps:$4 sm:$0xff]  }
 0x6d3   :  { %3979 = vtanh.f32 %v5105_v38 }
 0x6e0   :  { %v3980_v30 = vpop.eup %3979 }
 0x6e1   :  { %v1350_v50 = vmul.f32 %v3980_v30, %v3978_v21  ;;  %v3779_v21 = vld [vmem:[#allocation11 + $0xa4] ss:$16 sps:$4 sm:$0xff]   ;;  %v3782_v30 = vld [vmem:[#allocation11 + $0xac] ss:$16 sps:$4 sm:$0xff]  }
 0x6e3   :  { %v1358_v5 = vpack.c.bf16 %v1350_v50, %v1350_v50  ;;  %v3777_v50 = vld [vmem:[#allocation11 + $0xa0] ss:$16 sps:$4 sm:$0xff]  }
 0x6e5   :  { %1392 = vmatmul.mubr.bf16.vlgmr.msra.gmra.mxu0 %v1358_v5  ;;  %1433 = vmatmul.mubr.bf16.vlgmr.msra.gmra.mxu1 %v1358_v5  ;;  %v3780_v5 = vld [vmem:[#allocation11 + $0xa8] ss:$16 sps:$4 sm:$0xff]  }
 0x6e6   :  { %1478 = vmatpush1.bf16.msra.mxu0 %v5038_v25  ;;  %1519 = vmatpush1.bf16.msra.mxu1 %v5041_v37  ;;  %v4169_v25 = vld [vmem:[#allocation10] ss:$16 sps:$4 sm:$0xff]   ;;  %v4170_v37 = vld [vmem:[#allocation10 + $0x8] ss:$16 sps:$4 sm:$0xff]  }
 0x6e7   :  { %1479 = vmatprep.subr.bf16.mxu0 %v5044_v1  ;;  %1520 = vmatprep.subr.bf16.mxu1 %v5047_v36 }
 0x6e8   :  { %1509 = vmatprep.mubr.bf16.mxu0 %v5666_v46  ;;  %1550 = vmatprep.mubr.bf16.mxu1 %v5666_v46 }
 0x6ea   :  { %1480 = vmatpush1.bf16.msra.mxu0 %v5052_v12  ;;  %1521 = vmatpush1.bf16.msra.mxu1 %v4629_v35  ;;  %v4157_v35 = vld [vmem:[#allocation10 + $0x60] ss:$16 sps:$4 sm:$0xff]  }
 0x6eb   :  { %1481 = vmatprep.subr.bf16.mxu0 %v5056_v15  ;;  %1522 = vmatprep.subr.bf16.mxu1 %v5059_v3  ;;  %v5680_v12 = vld [vmem:[#allocation44_spill] sm:$0xff] }
 0x6ee   :  { %1482 = vmatpush1.bf16.msra.mxu0 %v5062_v28  ;;  %1523 = vmatpush1.bf16.msra.mxu1 %v5065_v24 }
 0x6ef   :  { %1483 = vmatprep.subr.bf16.mxu0 %v5068_v26  ;;  %1524 = vmatprep.subr.bf16.mxu1 %v5071_v27  ;;  %v5681_v26 = vld [vmem:[#allocation46_spill] sm:$0xff] }
 0x6f2   :  { %1484 = vmatpush1.bf16.msra.mxu0 %v5074_v33  ;;  %1525 = vmatpush1.bf16.msra.mxu1 %v4658_v49  ;;  %v4165_v49 = vld [vmem:[#allocation10 + $0x20] ss:$16 sps:$4 sm:$0xff]  }
 0x6f3   :  { %1485 = vmatprep.subr.bf16.mxu0 %v5078_v34  ;;  %1526 = vmatprep.subr.bf16.mxu1 %v5081_v39 }
 0x6f6   :  { %1486 = vmatpush1.bf16.msra.mxu0 %v4157_v35  ;;  %1527 = vmatpush1.bf16.msra.mxu1 %v4158_v62  ;;  %v3785_v35 = vld [vmem:[#allocation11 + $0x84] ss:$16 sps:$4 sm:$0xff]   ;;  %v3788_v62 = vld [vmem:[#allocation11 + $0x8c] ss:$16 sps:$4 sm:$0xff]  }
 0x6f7   :  { %1487 = vmatprep.subr.bf16.mxu0 %v4159_v45  ;;  %1528 = vmatprep.subr.bf16.mxu1 %v4160_v14  ;;  %v3783_v45 = vld [vmem:[#allocation11 + $0x80] ss:$16 sps:$4 sm:$0xff]   ;;  %v3786_v14 = vld [vmem:[#allocation11 + $0x88] ss:$16 sps:$4 sm:$0xff]  }
 0x6fa   :  { %1488 = vmatpush1.bf16.msra.mxu0 %v4161_v54  ;;  %1529 = vmatpush1.bf16.msra.mxu1 %v4162_v41  ;;  %v3791_v54 = vld [vmem:[#allocation11 + $0x64] ss:$16 sps:$4 sm:$0xff]   ;;  %v3789_v41 = vld [vmem:[#allocation11 + $0x60] ss:$16 sps:$4 sm:$0xff]  }
 0x6fb   :  { %1489 = vmatprep.subr.bf16.mxu0 %v4163_v22  ;;  %1530 = vmatprep.subr.bf16.mxu1 %v4164_v61  ;;  %v3792_v22 = vld [vmem:[#allocation11 + $0x68] ss:$16 sps:$4 sm:$0xff]   ;;  %v3794_v61 = vld [vmem:[#allocation11 + $0x6c] ss:$16 sps:$4 sm:$0xff]  }
 0x6fe   :  { %1490 = vmatpush1.bf16.msra.mxu0 %v4165_v49  ;;  %1531 = vmatpush1.bf16.msra.mxu1 %v4166_v20  ;;  %v3797_v49 = vld [vmem:[#allocation11 + $0x44] ss:$16 sps:$4 sm:$0xff]   ;;  %v3800_v20 = vld [vmem:[#allocation11 + $0x4c] ss:$16 sps:$4 sm:$0xff]  }
 0x6ff   :  { %1491 = vmatprep.subr.bf16.mxu0 %v4167_v11  ;;  %1532 = vmatprep.subr.bf16.mxu1 %v4168_v29  ;;  %v3795_v11 = vld [vmem:[#allocation11 + $0x40] ss:$16 sps:$4 sm:$0xff]   ;;  %v3798_v29 = vld [vmem:[#allocation11 + $0x48] ss:$16 sps:$4 sm:$0xff]  }
 0x702   :  { %1492 = vmatpush1.bf16.msra.mxu0 %v4169_v25  ;;  %1533 = vmatpush1.bf16.msra.mxu1 %v4170_v37  ;;  %v3803_v25 = vld [vmem:[#allocation11 + $0x24] ss:$16 sps:$4 sm:$0xff]   ;;  %v3806_v37 = vld [vmem:[#allocation11 + $0x2c] ss:$16 sps:$4 sm:$0xff]  }
 0x703   :  { %1803 = vmatprep.subr.bf16.mxu0 %v3767_v53  ;;  %1844 = vmatprep.subr.bf16.mxu1 %v3770_v51 }
 0x7a5   :  { %v1393_v1 = vpop.f32.mrf.mxu0  ;;  %v1434_v36 = vpop.f32.mrf.mxu1 }
 0x7a6   :  { %v1441_v15 = vadd.f32 %v1393_v1, %v5680_v12  ;;  %v1443_v58 = vadd.f32 %v1434_v36, %v5682_v57  ;;  %v3801_v1 = vld [vmem:[#allocation11 + $0x20] ss:$16 sps:$4 sm:$0xff]   ;;  %v3804_v36 = vld [vmem:[#allocation11 + $0x28] ss:$16 sps:$4 sm:$0xff]   ;;  %v3809_v12 = vld [vmem:[#allocation11 + $0x4] ss:$16 sps:$4 sm:$0xff]  }
 0x7a7   :  { %v1395_v3 = vpop.f32.mrf.mxu0  ;;  %v1436_v28 = vpop.f32.mrf.mxu1 }
 0x7a8   :  { %v3475_v24 = vmul.f32 -1.442695, %v1441_v15  ;;  %v1442_v27 = vadd.f32 %v1395_v3, %v5681_v26  ;;  %v3477_v59 = vmul.f32 -1.442695, %v1443_v58  ;;  %v1444_v63 = vadd.f32 %v1436_v28, %v5683_v60  ;;  %v3812_v15 = vld [vmem:[#allocation11 + $0xc] ss:$16 sps:$4 sm:$0xff]  }
 0x7a9   :  { %v1397_v33 = vpop.f32.mrf.mxu0  ;;  %v1438_v34 = vpop.f32.mrf.mxu1  ;;  %v3807_v3 = vld [vmem:[#allocation11] ss:$16 sps:$4 sm:$0xff]   ;;  %v3810_v28 = vld [vmem:[#allocation11 + $0x8] ss:$16 sps:$4 sm:$0xff]   ;;  %v5138_v26 = vld [vmem:[#allocation13 + $0xec] ss:$16 sps:$4 sm:$0xff]  }
 0x7aa   :  { %3981 = vpow2.f32 %v3475_v24  ;;  %v3476_v39 = vmul.f32 -1.442695, %v1442_v27  ;;  %v5136_v24 = vld [vmem:[#allocation13 + $0xe4] ss:$16 sps:$4 sm:$0xff]  }
 0x7ab   :  { %v1398_v55 = vpop.f32.mrf.mxu0  ;;  %v1439_v56 = vpop.f32.mrf.mxu1  ;;  %v5684_v34 = vld [vmem:[#allocation48_spill] sm:$0xff] }
 0x7ac   :  { %3983 = vpow2.f32 %v3476_v39 }
 0x7ad   :  { %3985 = vpow2.f32 %v3477_v59 }
 0x7ae   :  { %3987 = vtanh.f32 %v1444_v63 }
 0x7b7   :  { %v3982_v0 = vpop.eup %3981 }
 0x7b8   :  { %v1454_v4 = vadd.f32 1.0, %v3982_v0 }
 0x7b9   :  { %v3984_v6 = vpop.eup %3983 }
 0x7ba   :  { %3989 = vrcp.f32 %v1454_v4  ;;  %v1455_v7 = vadd.f32 1.0, %v3984_v6  ;;  %v3986_v8 = vpop.eup %3985  ;;  %v5685_v6 = vld [vmem:[#allocation49_spill] sm:$0xff] }
 0x7bb   :  { %v3988_v9 = vpop.eup %3987  ;;  %v1456_v42 = vadd.f32 1.0, %v3986_v8 }
 0x7bc   :  { %3991 = vrcp.f32 %v1455_v7 }
 0x7bd   :  { %3993 = vrcp.f32 %v1456_v42 }
 0x7c7   :  { %v3990_v40 = vpop.eup %3989 }
 0x7c8   :  { %v1465_v10 = vmul.f32 %v3990_v40, %v3988_v9 }
 0x7c9   :  { %v3992_v23 = vpop.eup %3991 }
 0x7ca   :  { %v1464_v32 = vmul.f32 %v3992_v23, %v5105_v38  ;;  %v3994_v44 = vpop.eup %3993  ;;  %v3774_v38 = vld [vmem:[#allocation11 + $0xc8] ss:$16 sps:$4 sm:$0xff]  }
 0x7cc   :  { %v5131_v43 = vadd.f32 %v1465_v10, %v1464_v32 }
 0x7ce   :  { %3995 = vtanh.f32 %v5131_v43 }
 0x7db   :  { %v3996_v47 = vpop.eup %3995 }
 0x7dc   :  { %v1468_v48 = vmul.f32 %v3996_v47, %v3994_v44 }
 0x7de   :  { %v1476_v52 = vpack.c.bf16 %v1468_v48, %v1468_v48 }
 0x7e0   :  { %1510 = vmatmul.mubr.bf16.vlgmr.msra.gmra.mxu0 %v1476_v52  ;;  %1551 = vmatmul.mubr.bf16.vlgmr.msra.gmra.mxu1 %v1476_v52 }
 0x7e1   :  { %1835 = vmatprep.mubr.bf16.mxu0 %v5666_v46  ;;  %1876 = vmatprep.mubr.bf16.mxu1 %v5666_v46 }
 0x7e2   :  { %1804 = vmatpush1.bf16.msra.mxu0 %v3765_v19  ;;  %1845 = vmatpush1.bf16.msra.mxu1 %v3768_v16 }
 0x7e3   :  { %1805 = vmatprep.subr.bf16.mxu0 %v3773_v31  ;;  %1846 = vmatprep.subr.bf16.mxu1 %v3776_v2  ;;  %v5147_v31 = vld [vmem:[#allocation13 + $0xe0] ss:$16 sps:$4 sm:$0xff]   ;;  %v5149_v2 = vld [vmem:[#allocation13 + $0xe8] ss:$16 sps:$4 sm:$0xff]  }
 0x7e6   :  { %1806 = vmatpush1.bf16.msra.mxu0 %v3771_v18  ;;  %1847 = vmatpush1.bf16.msra.mxu1 %v3774_v38  ;;  %v5153_v38 = vld [vmem:[#allocation13 + $0xc4] ss:$16 sps:$4 sm:$0xff]  }
 0x7e7   :  { %1807 = vmatprep.subr.bf16.mxu0 %v3779_v21  ;;  %1848 = vmatprep.subr.bf16.mxu1 %v3782_v30  ;;  %v5155_v21 = vld [vmem:[#allocation13 + $0xcc] ss:$16 sps:$4 sm:$0xff]   ;;  %v5163_v30 = vld [vmem:[#allocation13 + $0xc8] ss:$16 sps:$4 sm:$0xff]  }
 0x7ea   :  { %1808 = vmatpush1.bf16.msra.mxu0 %v3777_v50  ;;  %1849 = vmatpush1.bf16.msra.mxu1 %v3780_v5  ;;  %v5167_v50 = vld [vmem:[#allocation13 + $0xa4] ss:$16 sps:$4 sm:$0xff]   ;;  %v5169_v5 = vld [vmem:[#allocation13 + $0xac] ss:$16 sps:$4 sm:$0xff]  }
 0x7eb   :  { %1809 = vmatprep.subr.bf16.mxu0 %v3785_v35  ;;  %1850 = vmatprep.subr.bf16.mxu1 %v3788_v62  ;;  %v5175_v35 = vld [vmem:[#allocation13 + $0xa0] ss:$16 sps:$4 sm:$0xff]   ;;  %v5177_v62 = vld [vmem:[#allocation13 + $0xa8] ss:$16 sps:$4 sm:$0xff]  }
 0x7ee   :  { %1810 = vmatpush1.bf16.msra.mxu0 %v3783_v45  ;;  %1851 = vmatpush1.bf16.msra.mxu1 %v3786_v14  ;;  %v5181_v45 = vld [vmem:[#allocation13 + $0x84] ss:$16 sps:$4 sm:$0xff]   ;;  %v5183_v14 = vld [vmem:[#allocation13 + $0x8c] ss:$16 sps:$4 sm:$0xff]  }
 0x7ef   :  { %1811 = vmatprep.subr.bf16.mxu0 %v3791_v54  ;;  %1852 = vmatprep.subr.bf16.mxu1 %v3794_v61  ;;  %v5187_v54 = vld [vmem:[#allocation13 + $0x80] ss:$16 sps:$4 sm:$0xff]   ;;  %v5195_v61 = vld [vmem:[#allocation13 + $0x6c] ss:$16 sps:$4 sm:$0xff]  }
 0x7f2   :  { %1812 = vmatpush1.bf16.msra.mxu0 %v3789_v41  ;;  %1853 = vmatpush1.bf16.msra.mxu1 %v3792_v22  ;;  %v5189_v41 = vld [vmem:[#allocation13 + $0x88] ss:$16 sps:$4 sm:$0xff]   ;;  %v5193_v22 = vld [vmem:[#allocation13 + $0x64] ss:$16 sps:$4 sm:$0xff]  }
 0x7f3   :  { %1813 = vmatprep.subr.bf16.mxu0 %v3797_v49  ;;  %1854 = vmatprep.subr.bf16.mxu1 %v3800_v20  ;;  %v5199_v49 = vld [vmem:[#allocation13 + $0x60] ss:$16 sps:$4 sm:$0xff]   ;;  %v5201_v20 = vld [vmem:[#allocation13 + $0x68] ss:$16 sps:$4 sm:$0xff]  }
 0x7f6   :  { %1814 = vmatpush1.bf16.msra.mxu0 %v3795_v11  ;;  %1855 = vmatpush1.bf16.msra.mxu1 %v3798_v29  ;;  %v5205_v11 = vld [vmem:[#allocation13 + $0x44] ss:$16 sps:$4 sm:$0xff]   ;;  %v5207_v29 = vld [vmem:[#allocation13 + $0x4c] ss:$16 sps:$4 sm:$0xff]  }
 0x7f7   :  { %1815 = vmatprep.subr.bf16.mxu0 %v3803_v25  ;;  %1856 = vmatprep.subr.bf16.mxu1 %v3806_v37  ;;  %v5211_v25 = vld [vmem:[#allocation13 + $0x40] ss:$16 sps:$4 sm:$0xff]   ;;  %v5213_v37 = vld [vmem:[#allocation13 + $0x48] ss:$16 sps:$4 sm:$0xff]  }
 0x7fa   :  { %1816 = vmatpush1.bf16.msra.mxu0 %v3801_v1  ;;  %1857 = vmatpush1.bf16.msra.mxu1 %v3804_v36  ;;  %v5217_v1 = vld [vmem:[#allocation13 + $0x24] ss:$16 sps:$4 sm:$0xff]   ;;  %v5219_v36 = vld [vmem:[#allocation13 + $0x2c] ss:$16 sps:$4 sm:$0xff]  }
 0x7fb   :  { %1817 = vmatprep.subr.bf16.mxu0 %v3809_v12  ;;  %1858 = vmatprep.subr.bf16.mxu1 %v3812_v15  ;;  %v5223_v12 = vld [vmem:[#allocation13 + $0x20] ss:$16 sps:$4 sm:$0xff]   ;;  %v5225_v15 = vld [vmem:[#allocation13 + $0x28] ss:$16 sps:$4 sm:$0xff]  }
 0x7fe   :  { %1818 = vmatpush1.bf16.msra.mxu0 %v3807_v3  ;;  %1859 = vmatpush1.bf16.msra.mxu1 %v3810_v28  ;;  %v5229_v3 = vld [vmem:[#allocation13 + $0x4] ss:$16 sps:$4 sm:$0xff]   ;;  %v5231_v28 = vld [vmem:[#allocation13 + $0xc] ss:$16 sps:$4 sm:$0xff]  }
 0x7ff   :  { %2077 = vmatprep.subr.bf16.mxu0 %v5136_v24  ;;  %2118 = vmatprep.subr.bf16.mxu1 %v5138_v26 }
 0x8a0   :  { %v1511_v27 = vpop.f32.mrf.mxu0  ;;  %v1552_v33 = vpop.f32.mrf.mxu1 }
 0x8a1   :  { %v1559_v39 = vadd.f32 %v1511_v27, %v5684_v34  ;;  %v1561_v7 = vadd.f32 %v1552_v33, %v5685_v6  ;;  %v5235_v27 = vld [vmem:[#allocation13] ss:$16 sps:$4 sm:$0xff]   ;;  %v5237_v33 = vld [vmem:[#allocation13 + $0x8] ss:$16 sps:$4 sm:$0xff]  }
 0x8a2   :  { %v1513_v55 = vpop.f32.mrf.mxu0  ;;  %v1554_v56 = vpop.f32.mrf.mxu1 }
 0x8a3   :  { %v3478_v57 = vmul.f32 -1.442695, %v1559_v39  ;;  %v1560_v58 = vadd.f32 %v1513_v55, %v4853_v17  ;;  %v3480_v8 = vmul.f32 -1.442695, %v1561_v7  ;;  %v1562_v9 = vadd.f32 %v1554_v56, %v4856_v13 }
 0x8a4   :  { %v1515_v59 = vpop.f32.mrf.mxu0  ;;  %v1556_v60 = vpop.f32.mrf.mxu1 }
 0x8a5   :  { %3997 = vpow2.f32 %v3478_v57  ;;  %v3479_v63 = vmul.f32 -1.442695, %v1560_v58 }
 0x8a6   :  { %v1516_v0 = vpop.f32.mrf.mxu0  ;;  %v1557_v4 = vpop.f32.mrf.mxu1 }
 0x8a7   :  { %3999 = vpow2.f32 %v3479_v63  ;;  %v1621_v63 = vld [vmem:[%s5626_s6] sm:$0xf] }
 0x8a8   :  { %4001 = vpow2.f32 %v3480_v8  ;;  %v5686_v0 = vld [vmem:[#allocation30_spill] sm:$0xff] }
 0x8a9   :  { %4003 = vtanh.f32 %v1562_v9  ;;  %v5687_v4 = vsub.s32 0, %v5686_v0  ;;  %v5688_v7 = vsub.s32 1, %v5686_v0 }
 0x8ab   :  { %v1626_v6 = vrot.slane %v1621_v63, %v5687_v4  ;;  %v1630_v8 = vrot.slane %v1621_v63, %v5688_v7 }
 0x8b2   :  { %v3998_v40 = vpop.eup %3997 }
 0x8b3   :  { %v1572_v10 = vadd.f32 1.0, %v3998_v40 }
 0x8b4   :  { %v4000_v23 = vpop.eup %3999 }
 0x8b5   :  { %4005 = vrcp.f32 %v1572_v10  ;;  %v1573_v42 = vadd.f32 1.0, %v4000_v23  ;;  %v4002_v17 = vpop.eup %4001 }
 0x8b6   :  { %v4004_v32 = vpop.eup %4003  ;;  %v1574_v52 = vadd.f32 1.0, %v4002_v17 }
 0x8b7   :  { %4007 = vrcp.f32 %v1573_v42 }
 0x8b8   :  { %4009 = vrcp.f32 %v1574_v52 }
 0x8c2   :  { %v4006_v44 = vpop.eup %4005 }
 0x8c3   :  { %v1583_v47 = vmul.f32 %v4006_v44, %v4004_v32 }
 0x8c4   :  { %v4008_v48 = vpop.eup %4007 }
 0x8c5   :  { %v1582_v53 = vmul.f32 %v4008_v48, %v5131_v43  ;;  %v4010_v13 = vpop.eup %4009  ;;  %v5161_v43 = vld [vmem:[#allocation13 + $0xc0] ss:$16 sps:$4 sm:$0xff]  }
 0x8c7   :  { %v1584_v51 = vadd.f32 %v1583_v47, %v1582_v53 }
 0x8c9   :  { %4011 = vtanh.f32 %v1584_v51  ;;  %v5689_v51 = vsub.s32 2, %v5686_v0 }
 0x8d6   :  { %v4012_v19 = vpop.eup %4011 }
 0x8d7   :  { %v1586_v16 = vmul.f32 %v4012_v19, %v4010_v13  ;;  %v1634_v13 = vrot.slane %v1621_v63, %v5689_v51 }
 0x8d9   :  { %v5151_v18 = vpack.c.bf16 %v1586_v16, %v1586_v16  ;;  %1587 = vst [vmem:[#allocation19] sm:$0xff] %v1586_v16 }
 0x8db   :  { %1836 = vmatmul.mubr.bf16.vlgmr.msra.gmra.mxu0 %v5151_v18  ;;  %1877 = vmatmul.mubr.bf16.vlgmr.msra.gmra.mxu1 %v5151_v18 }
 0x8dc   :  { %2078 = vmatpush1.bf16.msra.mxu0 %v5147_v31  ;;  %2119 = vmatpush1.bf16.msra.mxu1 %v5149_v2 }
 0x8dd   :  { %2079 = vmatprep.subr.bf16.mxu0 %v5153_v38  ;;  %2120 = vmatprep.subr.bf16.mxu1 %v5155_v21 }
 0x8de   :  { %2109 = vmatprep.mubr.bf16.mxu0 %v5666_v46  ;;  %2150 = vmatprep.mubr.bf16.mxu1 %v5666_v46 }
 0x8e0   :  { %2080 = vmatpush1.bf16.msra.mxu0 %v5161_v43  ;;  %2121 = vmatpush1.bf16.msra.mxu1 %v5163_v30 }
 0x8e1   :  { %2081 = vmatprep.subr.bf16.mxu0 %v5167_v50  ;;  %2122 = vmatprep.subr.bf16.mxu1 %v5169_v5 }
 0x8e4   :  { %2082 = vmatpush1.bf16.msra.mxu0 %v5175_v35  ;;  %2123 = vmatpush1.bf16.msra.mxu1 %v5177_v62 }
 0x8e5   :  { %2083 = vmatprep.subr.bf16.mxu0 %v5181_v45  ;;  %2124 = vmatprep.subr.bf16.mxu1 %v5183_v14 }
 0x8e8   :  { %2084 = vmatpush1.bf16.msra.mxu0 %v5187_v54  ;;  %2125 = vmatpush1.bf16.msra.mxu1 %v5189_v41 }
 0x8e9   :  { %2085 = vmatprep.subr.bf16.mxu0 %v5193_v22  ;;  %2126 = vmatprep.subr.bf16.mxu1 %v5195_v61 }
 0x8ec   :  { %2086 = vmatpush1.bf16.msra.mxu0 %v5199_v49  ;;  %2127 = vmatpush1.bf16.msra.mxu1 %v5201_v20 }
 0x8ed   :  { %2087 = vmatprep.subr.bf16.mxu0 %v5205_v11  ;;  %2128 = vmatprep.subr.bf16.mxu1 %v5207_v29 }
 0x8f0   :  { %2088 = vmatpush1.bf16.msra.mxu0 %v5211_v25  ;;  %2129 = vmatpush1.bf16.msra.mxu1 %v5213_v37 }
 0x8f1   :  { %2089 = vmatprep.subr.bf16.mxu0 %v5217_v1  ;;  %2130 = vmatprep.subr.bf16.mxu1 %v5219_v36 }
 0x8f4   :  { %2090 = vmatpush1.bf16.msra.mxu0 %v5223_v12  ;;  %2131 = vmatpush1.bf16.msra.mxu1 %v5225_v15 }
 0x8f5   :  { %2091 = vmatprep.subr.bf16.mxu0 %v5229_v3  ;;  %2132 = vmatprep.subr.bf16.mxu1 %v5231_v28 }
 0x8f8   :  { %2092 = vmatpush1.bf16.msra.mxu0 %v5235_v27  ;;  %2133 = vmatpush1.bf16.msra.mxu1 %v5237_v33 }
 0x8f9   :  { %2189 = vmatprep.subr.bf16.mxu0 %v5136_v24  ;;  %2230 = vmatprep.subr.bf16.mxu1 %v5138_v26 }
 0x8fb   :  { %2110 = vmatmul.mubr.bf16.vlgmr.msra.gmra.mxu0 %v5666_v46  ;;  %2151 = vmatmul.mubr.bf16.vlgmr.msra.gmra.mxu1 %v5666_v46 }
 0x8fc   :  { %2190 = vmatpush1.bf16.msra.mxu0 %v5147_v31  ;;  %2231 = vmatpush1.bf16.msra.mxu1 %v5149_v2 }
 0x8fd   :  { %2191 = vmatprep.subr.bf16.mxu0 %v5153_v38  ;;  %2232 = vmatprep.subr.bf16.mxu1 %v5155_v21 }
 0x8fe   :  { %2221 = vmatprep.mubr.bf16.mxu0 %v5666_v46  ;;  %2262 = vmatprep.mubr.bf16.mxu1 %v5666_v46 }
 0x900   :  { %2192 = vmatpush1.bf16.msra.mxu0 %v5161_v43  ;;  %2233 = vmatpush1.bf16.msra.mxu1 %v5163_v30 }
 0x901   :  { %2193 = vmatprep.subr.bf16.mxu0 %v5167_v50  ;;  %2234 = vmatprep.subr.bf16.mxu1 %v5169_v5 }
 0x904   :  { %2194 = vmatpush1.bf16.msra.mxu0 %v5175_v35  ;;  %2235 = vmatpush1.bf16.msra.mxu1 %v5177_v62 }
 0x905   :  { %2195 = vmatprep.subr.bf16.mxu0 %v5181_v45  ;;  %2236 = vmatprep.subr.bf16.mxu1 %v5183_v14 }
 0x908   :  { %2196 = vmatpush1.bf16.msra.mxu0 %v5187_v54  ;;  %2237 = vmatpush1.bf16.msra.mxu1 %v5189_v41 }
 0x909   :  { %2197 = vmatprep.subr.bf16.mxu0 %v5193_v22  ;;  %2238 = vmatprep.subr.bf16.mxu1 %v5195_v61 }
 0x90c   :  { %2198 = vmatpush1.bf16.msra.mxu0 %v5199_v49  ;;  %2239 = vmatpush1.bf16.msra.mxu1 %v5201_v20 }
 0x90d   :  { %2199 = vmatprep.subr.bf16.mxu0 %v5205_v11  ;;  %2240 = vmatprep.subr.bf16.mxu1 %v5207_v29 }
 0x910   :  { %2200 = vmatpush1.bf16.msra.mxu0 %v5211_v25  ;;  %2241 = vmatpush1.bf16.msra.mxu1 %v5213_v37 }
 0x911   :  { %2201 = vmatprep.subr.bf16.mxu0 %v5217_v1  ;;  %2242 = vmatprep.subr.bf16.mxu1 %v5219_v36 }
 0x914   :  { %2202 = vmatpush1.bf16.msra.mxu0 %v5223_v12  ;;  %2243 = vmatpush1.bf16.msra.mxu1 %v5225_v15 }
 0x915   :  { %2203 = vmatprep.subr.bf16.mxu0 %v5229_v3  ;;  %2244 = vmatprep.subr.bf16.mxu1 %v5231_v28 }
 0x918   :  { %2204 = vmatpush1.bf16.msra.mxu0 %v5235_v27  ;;  %2245 = vmatpush1.bf16.msra.mxu1 %v5237_v33 }
 0x919   :  { %2302 = vmatprep.subr.bf16.mxu0 %v5136_v24  ;;  %2343 = vmatprep.subr.bf16.mxu1 %v5138_v26 }
 0x99b   :  { %v1837_v34 = vpop.f32.mrf.mxu0  ;;  %v1878_v39 = vpop.f32.mrf.mxu1 }
 0x99c   :  { %v5288_v9 = vadd.f32 %v1837_v34, %v1626_v6  ;;  %v5296_v34 = vadd.f32 %v1878_v39, %v1634_v13 }
 0x99d   :  { %v1839_v55 = vpop.f32.mrf.mxu0  ;;  %v1880_v56 = vpop.f32.mrf.mxu1 }
 0x99e   :  { %v5290_v23 = vadd.f32 %v1839_v55, %v1630_v8  ;;  %v5690_v55 = vsub.s32 3, %v5686_v0 }
 0x99f   :  { %v1841_v57 = vpop.f32.mrf.mxu0  ;;  %v1882_v58 = vpop.f32.mrf.mxu1 }
 0x9a0   :  { %v1638_v57 = vrot.slane %v1621_v63, %v5690_v55 }
 0x9a1   :  { %v1842_v59 = vpop.f32.mrf.mxu0  ;;  %v1883_v60 = vpop.f32.mrf.mxu1 }
 0x9a2   :  { %v5301_v59 = vadd.f32 %v1880_v56, %v1638_v57 }
 0x9bb   :  { %v2111_v40 = vpop.f32.mrf.mxu0  ;;  %v2152_v10 = vpop.f32.mrf.mxu1 }
 0x9bc   :  { %v2159_v42 = vadd.f32 %v2111_v40, %v5288_v9  ;;  %v2161_v58 = vadd.f32 %v2152_v10, %v5296_v34 }
 0x9bd   :  { %v2113_v17 = vpop.f32.mrf.mxu0  ;;  %v2154_v32 = vpop.f32.mrf.mxu1 }
 0x9be   :  { %v3545_v44 = vmul.f32 -1.442695, %v2159_v42  ;;  %v2160_v47 = vadd.f32 %v2113_v17, %v5290_v23  ;;  %v3547_v60 = vmul.f32 -1.442695, %v2161_v58  ;;  %v2162_v6 = vadd.f32 %v2154_v32, %v5301_v59 }
 0x9bf   :  { %v2115_v48 = vpop.f32.mrf.mxu0  ;;  %v2156_v52 = vpop.f32.mrf.mxu1 }
 0x9c0   :  { %4013 = vpow2.f32 %v3545_v44  ;;  %v3546_v53 = vmul.f32 -1.442695, %v2160_v47 }
 0x9c1   :  { %v2116_v19 = vpop.f32.mrf.mxu0  ;;  %v2157_v16 = vpop.f32.mrf.mxu1 }
 0x9c2   :  { %4015 = vpow2.f32 %v3546_v53 }
 0x9c3   :  { %4017 = vpow2.f32 %v3547_v60 }
 0x9cd   :  { %v4014_v4 = vpop.eup %4013 }
 0x9ce   :  { %v2172_v7 = vadd.f32 1.0, %v4014_v4 }
 0x9cf   :  { %v4016_v8 = vpop.eup %4015 }
 0x9d0   :  { %4019 = vrcp.f32 %v2172_v7  ;;  %v2173_v40 = vadd.f32 1.0, %v4016_v8  ;;  %v4018_v39 = vpop.eup %4017 }
 0x9d1   :  { %4021 = vtanh.f32 %v2162_v6  ;;  %v2174_v63 = vadd.f32 1.0, %v4018_v39 }
 0x9d2   :  { %4023 = vrcp.f32 %v2173_v40 }
 0x9d3   :  { %4025 = vrcp.f32 %v2174_v63 }
 0x9dd   :  { %v4020_v42 = vpop.eup %4019 }
 0x9de   :  { %v4022_v17 = vpop.eup %4021 }
 0x9df   :  { %v4024_v0 = vpop.eup %4023  ;;  %v2183_v10 = vmul.f32 %v4022_v17, %v4020_v42 }
 0x9e0   :  { %v2182_v44 = vmul.f32 0.0, %v4024_v0  ;;  %v4026_v32 = vpop.eup %4025 }
 0x9e2   :  { %v5304_v56 = vadd.f32 %v2183_v10, %v2182_v44 }
 0x9e4   :  { %4027 = vtanh.f32 %v5304_v56 }
 0x9f1   :  { %v4028_v47 = vpop.eup %4027 }
 0x9f2   :  { %v5307_v48 = vmul.f32 %v4028_v47, %v4026_v32 }
 0x9f4   :  { %v2188_v52 = vpack.c.bf16 %v5307_v48, %v5307_v48 }
 0x9f6   :  { %2222 = vmatmul.mubr.bf16.vlgmr.msra.gmra.mxu0 %v2188_v52  ;;  %2263 = vmatmul.mubr.bf16.vlgmr.msra.gmra.mxu1 %v2188_v52 }
 0x9f7   :  { %2303 = vmatpush1.bf16.msra.mxu0 %v5147_v31  ;;  %2344 = vmatpush1.bf16.msra.mxu1 %v5149_v2 }
 0x9f8   :  { %2304 = vmatprep.subr.bf16.mxu0 %v5153_v38  ;;  %2345 = vmatprep.subr.bf16.mxu1 %v5155_v21 }
 0x9f9   :  { %2334 = vmatprep.mubr.bf16.mxu0 %v5666_v46  ;;  %2375 = vmatprep.mubr.bf16.mxu1 %v5666_v46 }
 0x9fb   :  { %2305 = vmatpush1.bf16.msra.mxu0 %v5161_v43  ;;  %2346 = vmatpush1.bf16.msra.mxu1 %v5163_v30 }
 0x9fc   :  { %2306 = vmatprep.subr.bf16.mxu0 %v5167_v50  ;;  %2347 = vmatprep.subr.bf16.mxu1 %v5169_v5 }
 0x9ff   :  { %2307 = vmatpush1.bf16.msra.mxu0 %v5175_v35  ;;  %2348 = vmatpush1.bf16.msra.mxu1 %v5177_v62 }
 0xa00   :  { %2308 = vmatprep.subr.bf16.mxu0 %v5181_v45  ;;  %2349 = vmatprep.subr.bf16.mxu1 %v5183_v14 }
 0xa03   :  { %2309 = vmatpush1.bf16.msra.mxu0 %v5187_v54  ;;  %2350 = vmatpush1.bf16.msra.mxu1 %v5189_v41 }
 0xa04   :  { %2310 = vmatprep.subr.bf16.mxu0 %v5193_v22  ;;  %2351 = vmatprep.subr.bf16.mxu1 %v5195_v61 }
 0xa07   :  { %2311 = vmatpush1.bf16.msra.mxu0 %v5199_v49  ;;  %2352 = vmatpush1.bf16.msra.mxu1 %v5201_v20 }
 0xa08   :  { %2312 = vmatprep.subr.bf16.mxu0 %v5205_v11  ;;  %2353 = vmatprep.subr.bf16.mxu1 %v5207_v29 }
 0xa0b   :  { %2313 = vmatpush1.bf16.msra.mxu0 %v5211_v25  ;;  %2354 = vmatpush1.bf16.msra.mxu1 %v5213_v37 }
 0xa0c   :  { %2314 = vmatprep.subr.bf16.mxu0 %v5217_v1  ;;  %2355 = vmatprep.subr.bf16.mxu1 %v5219_v36 }
 0xa0f   :  { %2315 = vmatpush1.bf16.msra.mxu0 %v5223_v12  ;;  %2356 = vmatpush1.bf16.msra.mxu1 %v5225_v15 }
 0xa10   :  { %2316 = vmatprep.subr.bf16.mxu0 %v5229_v3  ;;  %2357 = vmatprep.subr.bf16.mxu1 %v5231_v28 }
 0xa13   :  { %2317 = vmatpush1.bf16.msra.mxu0 %v5235_v27  ;;  %2358 = vmatpush1.bf16.msra.mxu1 %v5237_v33 }
 0xa14   :  { %2415 = vmatprep.subr.bf16.mxu0 %v5136_v24  ;;  %2456 = vmatprep.subr.bf16.mxu1 %v5138_v26 }
 0xab6   :  { %v2223_v53 = vpop.f32.mrf.mxu0  ;;  %v2264_v51 = vpop.f32.mrf.mxu1 }
 0xab7   :  { %v2271_v13 = vadd.f32 %v2223_v53, %v5288_v9  ;;  %v2273_v8 = vadd.f32 %v2264_v51, %v5296_v34 }
 0xab8   :  { %v2225_v19 = vpop.f32.mrf.mxu0  ;;  %v2266_v16 = vpop.f32.mrf.mxu1 }
 0xab9   :  { %v3548_v55 = vmul.f32 -1.442695, %v2271_v13  ;;  %v2272_v57 = vadd.f32 %v2225_v19, %v5290_v23  ;;  %v3550_v40 = vmul.f32 -1.442695, %v2273_v8  ;;  %v2274_v42 = vadd.f32 %v2266_v16, %v5301_v59 }
 0xaba   :  { %v2227_v58 = vpop.f32.mrf.mxu0  ;;  %v2268_v60 = vpop.f32.mrf.mxu1 }
 0xabb   :  { %4029 = vpow2.f32 %v3548_v55  ;;  %v3549_v4 = vmul.f32 -1.442695, %v2272_v57 }
 0xabc   :  { %v2228_v6 = vpop.f32.mrf.mxu0  ;;  %v2269_v7 = vpop.f32.mrf.mxu1 }
 0xabd   :  { %4031 = vpow2.f32 %v3549_v4 }
 0xabe   :  { %4033 = vpow2.f32 %v3550_v40 }
 0xac8   :  { %v4030_v39 = vpop.eup %4029 }
 0xac9   :  { %v2284_v17 = vadd.f32 1.0, %v4030_v39 }
 0xaca   :  { %v4032_v0 = vpop.eup %4031 }
 0xacb   :  { %4035 = vrcp.f32 %v2284_v17  ;;  %v2285_v63 = vadd.f32 1.0, %v4032_v0  ;;  %v4034_v44 = vpop.eup %4033 }
 0xacc   :  { %4037 = vtanh.f32 %v2274_v42  ;;  %v2286_v52 = vadd.f32 1.0, %v4034_v44 }
 0xacd   :  { %4039 = vrcp.f32 %v2285_v63 }
 0xace   :  { %4041 = vrcp.f32 %v2286_v52 }
 0xad8   :  { %v4036_v10 = vpop.eup %4035 }
 0xad9   :  { %v4038_v32 = vpop.eup %4037 }
 0xada   :  { %v4040_v47 = vpop.eup %4039  ;;  %v2295_v13 = vmul.f32 %v4038_v32, %v4036_v10 }
 0xadb   :  { %v2294_v53 = vmul.f32 %v4040_v47, %v5304_v56  ;;  %v4042_v19 = vpop.eup %4041 }
 0xadd   :  { %v5350_v51 = vadd.f32 %v2295_v13, %v2294_v53 }
 0xadf   :  { %4043 = vtanh.f32 %v5350_v51 }
 0xaec   :  { %v4044_v16 = vpop.eup %4043 }
 0xaed   :  { %v5353_v55 = vmul.f32 %v4044_v16, %v4042_v19 }
 0xaef   :  { %v2301_v57 = vpack.c.bf16 %v5353_v55, %v5353_v55 }
 0xaf1   :  { %2335 = vmatmul.mubr.bf16.vlgmr.msra.gmra.mxu0 %v2301_v57  ;;  %2376 = vmatmul.mubr.bf16.vlgmr.msra.gmra.mxu1 %v2301_v57 }
 0xaf2   :  { %2416 = vmatpush1.bf16.msra.mxu0 %v5147_v31  ;;  %2457 = vmatpush1.bf16.msra.mxu1 %v5149_v2 }
 0xaf3   :  { %2417 = vmatprep.subr.bf16.mxu0 %v5153_v38  ;;  %2458 = vmatprep.subr.bf16.mxu1 %v5155_v21 }
 0xaf4   :  { %2447 = vmatprep.mubr.bf16.mxu0 %v5666_v46  ;;  %2488 = vmatprep.mubr.bf16.mxu1 %v5666_v46 }
 0xaf6   :  { %2418 = vmatpush1.bf16.msra.mxu0 %v5161_v43  ;;  %2459 = vmatpush1.bf16.msra.mxu1 %v5163_v30 }
 0xaf7   :  { %2419 = vmatprep.subr.bf16.mxu0 %v5167_v50  ;;  %2460 = vmatprep.subr.bf16.mxu1 %v5169_v5 }
 0xafa   :  { %2420 = vmatpush1.bf16.msra.mxu0 %v5175_v35  ;;  %2461 = vmatpush1.bf16.msra.mxu1 %v5177_v62 }
 0xafb   :  { %2421 = vmatprep.subr.bf16.mxu0 %v5181_v45  ;;  %2462 = vmatprep.subr.bf16.mxu1 %v5183_v14 }
 0xafe   :  { %2422 = vmatpush1.bf16.msra.mxu0 %v5187_v54  ;;  %2463 = vmatpush1.bf16.msra.mxu1 %v5189_v41 }
 0xaff   :  { %2423 = vmatprep.subr.bf16.mxu0 %v5193_v22  ;;  %2464 = vmatprep.subr.bf16.mxu1 %v5195_v61 }
 0xb02   :  { %2424 = vmatpush1.bf16.msra.mxu0 %v5199_v49  ;;  %2465 = vmatpush1.bf16.msra.mxu1 %v5201_v20 }
 0xb03   :  { %2425 = vmatprep.subr.bf16.mxu0 %v5205_v11  ;;  %2466 = vmatprep.subr.bf16.mxu1 %v5207_v29 }
 0xb06   :  { %2426 = vmatpush1.bf16.msra.mxu0 %v5211_v25  ;;  %2467 = vmatpush1.bf16.msra.mxu1 %v5213_v37 }
 0xb07   :  { %2427 = vmatprep.subr.bf16.mxu0 %v5217_v1  ;;  %2468 = vmatprep.subr.bf16.mxu1 %v5219_v36 }
 0xb0a   :  { %2428 = vmatpush1.bf16.msra.mxu0 %v5223_v12  ;;  %2469 = vmatpush1.bf16.msra.mxu1 %v5225_v15 }
 0xb0b   :  { %2429 = vmatprep.subr.bf16.mxu0 %v5229_v3  ;;  %2470 = vmatprep.subr.bf16.mxu1 %v5231_v28 }
 0xb0e   :  { %2430 = vmatpush1.bf16.msra.mxu0 %v5235_v27  ;;  %2471 = vmatpush1.bf16.msra.mxu1 %v5237_v33 }
 0xb0f   :  { %2528 = vmatprep.subr.bf16.mxu0 %v5136_v24  ;;  %2569 = vmatprep.subr.bf16.mxu1 %v5138_v26 }
 0xbb1   :  { %v2336_v56 = vpop.f32.mrf.mxu0  ;;  %v2377_v58 = vpop.f32.mrf.mxu1 }
 0xbb2   :  { %v2384_v60 = vadd.f32 %v2336_v56, %v5288_v9  ;;  %v2386_v63 = vadd.f32 %v2377_v58, %v5296_v34 }
 0xbb3   :  { %v2338_v4 = vpop.f32.mrf.mxu0  ;;  %v2379_v6 = vpop.f32.mrf.mxu1 }
 0xbb4   :  { %v3551_v7 = vmul.f32 -1.442695, %v2384_v60  ;;  %v2385_v8 = vadd.f32 %v2338_v4, %v5290_v23  ;;  %v3553_v44 = vmul.f32 -1.442695, %v2386_v63  ;;  %v2387_v32 = vadd.f32 %v2379_v6, %v5301_v59 }
 0xbb5   :  { %v2340_v40 = vpop.f32.mrf.mxu0  ;;  %v2381_v39 = vpop.f32.mrf.mxu1 }
 0xbb6   :  { %4045 = vpow2.f32 %v3551_v7  ;;  %v3552_v42 = vmul.f32 -1.442695, %v2385_v8 }
 0xbb7   :  { %v2341_v17 = vpop.f32.mrf.mxu0  ;;  %v2382_v0 = vpop.f32.mrf.mxu1 }
 0xbb8   :  { %4047 = vpow2.f32 %v3552_v42 }
 0xbb9   :  { %4049 = vpow2.f32 %v3553_v44 }
 0xbc3   :  { %v4046_v10 = vpop.eup %4045 }
 0xbc4   :  { %v2397_v47 = vadd.f32 1.0, %v4046_v10 }
 0xbc5   :  { %v4048_v52 = vpop.eup %4047 }
 0xbc6   :  { %4051 = vrcp.f32 %v2397_v47  ;;  %v2398_v53 = vadd.f32 1.0, %v4048_v52  ;;  %v4050_v13 = vpop.eup %4049 }
 0xbc7   :  { %4053 = vtanh.f32 %v2387_v32  ;;  %v2399_v56 = vadd.f32 1.0, %v4050_v13 }
 0xbc8   :  { %4055 = vrcp.f32 %v2398_v53 }
 0xbc9   :  { %4057 = vrcp.f32 %v2399_v56 }
 0xbd3   :  { %v4052_v19 = vpop.eup %4051 }
 0xbd4   :  { %v4054_v16 = vpop.eup %4053 }
 0xbd5   :  { %v4056_v57 = vpop.eup %4055  ;;  %v2408_v4 = vmul.f32 %v4054_v16, %v4052_v19 }
 0xbd6   :  { %v2407_v60 = vmul.f32 %v4056_v57, %v5350_v51  ;;  %v4058_v6 = vpop.eup %4057 }
 0xbd8   :  { %v5396_v58 = vadd.f32 %v2408_v4, %v2407_v60 }
 0xbda   :  { %4059 = vtanh.f32 %v5396_v58 }
 0xbe7   :  { %v4060_v7 = vpop.eup %4059 }
 0xbe8   :  { %v5399_v8 = vmul.f32 %v4060_v7, %v4058_v6 }
 0xbea   :  { %v2414_v40 = vpack.c.bf16 %v5399_v8, %v5399_v8 }
 0xbec   :  { %2448 = vmatmul.mubr.bf16.vlgmr.msra.gmra.mxu0 %v2414_v40  ;;  %2489 = vmatmul.mubr.bf16.vlgmr.msra.gmra.mxu1 %v2414_v40 }
 0xbed   :  { %2529 = vmatpush1.bf16.msra.mxu0 %v5147_v31  ;;  %2570 = vmatpush1.bf16.msra.mxu1 %v5149_v2 }
 0xbee   :  { %2530 = vmatprep.subr.bf16.mxu0 %v5153_v38  ;;  %2571 = vmatprep.subr.bf16.mxu1 %v5155_v21 }
 0xbef   :  { %2560 = vmatprep.mubr.bf16.mxu0 %v5666_v46  ;;  %2601 = vmatprep.mubr.bf16.mxu1 %v5666_v46 }
 0xbf1   :  { %2531 = vmatpush1.bf16.msra.mxu0 %v5161_v43  ;;  %2572 = vmatpush1.bf16.msra.mxu1 %v5163_v30 }
 0xbf2   :  { %2532 = vmatprep.subr.bf16.mxu0 %v5167_v50  ;;  %2573 = vmatprep.subr.bf16.mxu1 %v5169_v5 }
 0xbf5   :  { %2533 = vmatpush1.bf16.msra.mxu0 %v5175_v35  ;;  %2574 = vmatpush1.bf16.msra.mxu1 %v5177_v62 }
 0xbf6   :  { %2534 = vmatprep.subr.bf16.mxu0 %v5181_v45  ;;  %2575 = vmatprep.subr.bf16.mxu1 %v5183_v14 }
 0xbf9   :  { %2535 = vmatpush1.bf16.msra.mxu0 %v5187_v54  ;;  %2576 = vmatpush1.bf16.msra.mxu1 %v5189_v41 }
 0xbfa   :  { %2536 = vmatprep.subr.bf16.mxu0 %v5193_v22  ;;  %2577 = vmatprep.subr.bf16.mxu1 %v5195_v61 }
 0xbfd   :  { %2537 = vmatpush1.bf16.msra.mxu0 %v5199_v49  ;;  %2578 = vmatpush1.bf16.msra.mxu1 %v5201_v20 }
 0xbfe   :  { %2538 = vmatprep.subr.bf16.mxu0 %v5205_v11  ;;  %2579 = vmatprep.subr.bf16.mxu1 %v5207_v29 }
 0xc01   :  { %2539 = vmatpush1.bf16.msra.mxu0 %v5211_v25  ;;  %2580 = vmatpush1.bf16.msra.mxu1 %v5213_v37 }
 0xc02   :  { %2540 = vmatprep.subr.bf16.mxu0 %v5217_v1  ;;  %2581 = vmatprep.subr.bf16.mxu1 %v5219_v36 }
 0xc05   :  { %2541 = vmatpush1.bf16.msra.mxu0 %v5223_v12  ;;  %2582 = vmatpush1.bf16.msra.mxu1 %v5225_v15 }
 0xc06   :  { %2542 = vmatprep.subr.bf16.mxu0 %v5229_v3  ;;  %2583 = vmatprep.subr.bf16.mxu1 %v5231_v28 }
 0xc09   :  { %2543 = vmatpush1.bf16.msra.mxu0 %v5235_v27  ;;  %2584 = vmatpush1.bf16.msra.mxu1 %v5237_v33 }
 0xc0a   :  { %2641 = vmatprep.subr.bf16.mxu0 %v5136_v24  ;;  %2682 = vmatprep.subr.bf16.mxu1 %v5138_v26 }
 0xcac   :  { %v2449_v51 = vpop.f32.mrf.mxu0  ;;  %v2490_v39 = vpop.f32.mrf.mxu1 }
 0xcad   :  { %v2497_v42 = vadd.f32 %v2449_v51, %v5288_v9  ;;  %v2499_v13 = vadd.f32 %v2490_v39, %v5296_v34 }
 0xcae   :  { %v2451_v17 = vpop.f32.mrf.mxu0  ;;  %v2492_v0 = vpop.f32.mrf.mxu1 }
 0xcaf   :  { %v3554_v63 = vmul.f32 -1.442695, %v2497_v42  ;;  %v2498_v44 = vadd.f32 %v2451_v17, %v5290_v23  ;;  %v3556_v19 = vmul.f32 -1.442695, %v2499_v13  ;;  %v2500_v57 = vadd.f32 %v2492_v0, %v5301_v59 }
 0xcb0   :  { %v2453_v10 = vpop.f32.mrf.mxu0  ;;  %v2494_v32 = vpop.f32.mrf.mxu1 }
 0xcb1   :  { %4061 = vpow2.f32 %v3554_v63  ;;  %v3555_v47 = vmul.f32 -1.442695, %v2498_v44 }
 0xcb2   :  { %v2454_v52 = vpop.f32.mrf.mxu0  ;;  %v2495_v53 = vpop.f32.mrf.mxu1 }
 0xcb3   :  { %4063 = vpow2.f32 %v3555_v47 }
 0xcb4   :  { %4065 = vpow2.f32 %v3556_v19 }
 0xcbe   :  { %v4062_v16 = vpop.eup %4061 }
 0xcbf   :  { %v2510_v56 = vadd.f32 1.0, %v4062_v16 }
 0xcc0   :  { %v4064_v60 = vpop.eup %4063 }
 0xcc1   :  { %4067 = vrcp.f32 %v2510_v56  ;;  %v2511_v4 = vadd.f32 1.0, %v4064_v60  ;;  %v4066_v6 = vpop.eup %4065 }
 0xcc2   :  { %4069 = vtanh.f32 %v2500_v57  ;;  %v2512_v42 = vadd.f32 1.0, %v4066_v6 }
 0xcc3   :  { %4071 = vrcp.f32 %v2511_v4 }
 0xcc4   :  { %4073 = vrcp.f32 %v2512_v42 }
 0xcce   :  { %v4068_v7 = vpop.eup %4067 }
 0xccf   :  { %v4070_v40 = vpop.eup %4069 }
 0xcd0   :  { %v4072_v51 = vpop.eup %4071  ;;  %v2521_v63 = vmul.f32 %v4070_v40, %v4068_v7 }
 0xcd1   :  { %v2520_v17 = vmul.f32 %v4072_v51, %v5396_v58  ;;  %v4074_v0 = vpop.eup %4073 }
 0xcd3   :  { %v5442_v39 = vadd.f32 %v2521_v63, %v2520_v17 }
 0xcd5   :  { %4075 = vtanh.f32 %v5442_v39 }
 0xce2   :  { %v4076_v44 = vpop.eup %4075 }
 0xce3   :  { %v5445_v10 = vmul.f32 %v4076_v44, %v4074_v0 }
 0xce5   :  { %v2527_v32 = vpack.c.bf16 %v5445_v10, %v5445_v10 }
 0xce7   :  { %2561 = vmatmul.mubr.bf16.vlgmr.msra.gmra.mxu0 %v2527_v32  ;;  %2602 = vmatmul.mubr.bf16.vlgmr.msra.gmra.mxu1 %v2527_v32 }
 0xce8   :  { %2642 = vmatpush1.bf16.msra.mxu0 %v5147_v31  ;;  %2683 = vmatpush1.bf16.msra.mxu1 %v5149_v2 }
 0xce9   :  { %2643 = vmatprep.subr.bf16.mxu0 %v5153_v38  ;;  %2684 = vmatprep.subr.bf16.mxu1 %v5155_v21 }
 0xcea   :  { %2673 = vmatprep.mubr.bf16.mxu0 %v5666_v46  ;;  %2714 = vmatprep.mubr.bf16.mxu1 %v5666_v46 }
 0xcec   :  { %2644 = vmatpush1.bf16.msra.mxu0 %v5161_v43  ;;  %2685 = vmatpush1.bf16.msra.mxu1 %v5163_v30 }
 0xced   :  { %2645 = vmatprep.subr.bf16.mxu0 %v5167_v50  ;;  %2686 = vmatprep.subr.bf16.mxu1 %v5169_v5 }
 0xcf0   :  { %2646 = vmatpush1.bf16.msra.mxu0 %v5175_v35  ;;  %2687 = vmatpush1.bf16.msra.mxu1 %v5177_v62 }
 0xcf1   :  { %2647 = vmatprep.subr.bf16.mxu0 %v5181_v45  ;;  %2688 = vmatprep.subr.bf16.mxu1 %v5183_v14 }
 0xcf4   :  { %2648 = vmatpush1.bf16.msra.mxu0 %v5187_v54  ;;  %2689 = vmatpush1.bf16.msra.mxu1 %v5189_v41 }
 0xcf5   :  { %2649 = vmatprep.subr.bf16.mxu0 %v5193_v22  ;;  %2690 = vmatprep.subr.bf16.mxu1 %v5195_v61 }
 0xcf8   :  { %2650 = vmatpush1.bf16.msra.mxu0 %v5199_v49  ;;  %2691 = vmatpush1.bf16.msra.mxu1 %v5201_v20 }
 0xcf9   :  { %2651 = vmatprep.subr.bf16.mxu0 %v5205_v11  ;;  %2692 = vmatprep.subr.bf16.mxu1 %v5207_v29 }
 0xcfc   :  { %2652 = vmatpush1.bf16.msra.mxu0 %v5211_v25  ;;  %2693 = vmatpush1.bf16.msra.mxu1 %v5213_v37 }
 0xcfd   :  { %2653 = vmatprep.subr.bf16.mxu0 %v5217_v1  ;;  %2694 = vmatprep.subr.bf16.mxu1 %v5219_v36 }
 0xd00   :  { %2654 = vmatpush1.bf16.msra.mxu0 %v5223_v12  ;;  %2695 = vmatpush1.bf16.msra.mxu1 %v5225_v15 }
 0xd01   :  { %2655 = vmatprep.subr.bf16.mxu0 %v5229_v3  ;;  %2696 = vmatprep.subr.bf16.mxu1 %v5231_v28 }
 0xd04   :  { %2656 = vmatpush1.bf16.msra.mxu0 %v5235_v27  ;;  %2697 = vmatpush1.bf16.msra.mxu1 %v5237_v33 }
 0xd05   :  { %2754 = vmatprep.subr.bf16.mxu0 %v5136_v24  ;;  %2795 = vmatprep.subr.bf16.mxu1 %v5138_v26 }
 0xda7   :  { %v2562_v58 = vpop.f32.mrf.mxu0  ;;  %v2603_v47 = vpop.f32.mrf.mxu1 }
 0xda8   :  { %v2610_v52 = vadd.f32 %v2562_v58, %v5288_v9  ;;  %v2612_v24 = vadd.f32 %v2603_v47, %v5296_v34 }
 0xda9   :  { %v2564_v53 = vpop.f32.mrf.mxu0  ;;  %v2605_v13 = vpop.f32.mrf.mxu1 }
 0xdaa   :  { %v3557_v19 = vmul.f32 -1.442695, %v2610_v52  ;;  %v2611_v16 = vadd.f32 %v2564_v53, %v5290_v23  ;;  %v3559_v7 = vmul.f32 -1.442695, %v2612_v24  ;;  %v2613_v40 = vadd.f32 %v2605_v13, %v5301_v59 }
 0xdab   :  { %v2566_v57 = vpop.f32.mrf.mxu0  ;;  %v2607_v56 = vpop.f32.mrf.mxu1 }
 0xdac   :  { %4077 = vpow2.f32 %v3557_v19  ;;  %v3558_v60 = vmul.f32 -1.442695, %v2611_v16 }
 0xdad   :  { %v2567_v4 = vpop.f32.mrf.mxu0  ;;  %v2608_v6 = vpop.f32.mrf.mxu1 }
 0xdae   :  { %4079 = vpow2.f32 %v3558_v60 }
 0xdaf   :  { %4081 = vpow2.f32 %v3559_v7 }
 0xdb9   :  { %v4078_v26 = vpop.eup %4077 }
 0xdba   :  { %v2623_v51 = vadd.f32 1.0, %v4078_v26 }
 0xdbb   :  { %v4080_v42 = vpop.eup %4079 }
 0xdbc   :  { %4083 = vrcp.f32 %v2623_v51  ;;  %v2624_v17 = vadd.f32 1.0, %v4080_v42  ;;  %v4082_v63 = vpop.eup %4081  ;;  %v4173_v51 = vld [vmem:[#allocation13 + $0xe0] ss:$16 sps:$4 sm:$0xff]   ;;  %v4174_v42 = vld [vmem:[#allocation13 + $0xe8] ss:$16 sps:$4 sm:$0xff]  }
 0xdbd   :  { %4085 = vtanh.f32 %v2613_v40  ;;  %v2625_v58 = vadd.f32 1.0, %v4082_v63  ;;  %v4176_v63 = vld [vmem:[#allocation13 + $0xcc] ss:$16 sps:$4 sm:$0xff]  }
 0xdbe   :  { %4087 = vrcp.f32 %v2624_v17  ;;  %v4175_v17 = vld [vmem:[#allocation13 + $0xc4] ss:$16 sps:$4 sm:$0xff]  }
 0xdbf   :  { %4089 = vrcp.f32 %v2625_v58  ;;  %v4180_v58 = vld [vmem:[#allocation13 + $0xac] ss:$16 sps:$4 sm:$0xff]  }
 0xdc9   :  { %v4084_v0 = vpop.eup %4083 }
 0xdca   :  { %v4086_v44 = vpop.eup %4085 }
 0xdcb   :  { %v4088_v32 = vpop.eup %4087  ;;  %v2634_v53 = vmul.f32 %v4086_v44, %v4084_v0  ;;  %v4177_v0 = vld [vmem:[#allocation13 + $0xc0] ss:$16 sps:$4 sm:$0xff]   ;;  %v4178_v44 = vld [vmem:[#allocation13 + $0xc8] ss:$16 sps:$4 sm:$0xff]  }
 0xdcc   :  { %v2633_v52 = vmul.f32 %v4088_v32, %v5442_v39  ;;  %v4090_v13 = vpop.eup %4089  ;;  %v4179_v32 = vld [vmem:[#allocation13 + $0xa4] ss:$16 sps:$4 sm:$0xff]  }
 0xdce   :  { %v5488_v47 = vadd.f32 %v2634_v53, %v2633_v52  ;;  %v4181_v52 = vld [vmem:[#allocation13 + $0xa0] ss:$16 sps:$4 sm:$0xff]   ;;  %v4182_v53 = vld [vmem:[#allocation13 + $0xa8] ss:$16 sps:$4 sm:$0xff]  }
 0xdd0   :  { %4091 = vtanh.f32 %v5488_v47 }
 0xddd   :  { %v4092_v19 = vpop.eup %4091 }
 0xdde   :  { %v5491_v16 = vmul.f32 %v4092_v19, %v4090_v13  ;;  %v4184_v13 = vld [vmem:[#allocation13 + $0x8c] ss:$16 sps:$4 sm:$0xff]   ;;  %v4185_v19 = vld [vmem:[#allocation13 + $0x80] ss:$16 sps:$4 sm:$0xff]  }
 0xde0   :  { %v2640_v57 = vpack.c.bf16 %v5491_v16, %v5491_v16 }
 0xde2   :  { %2674 = vmatmul.mubr.bf16.vlgmr.msra.gmra.mxu0 %v2640_v57  ;;  %2715 = vmatmul.mubr.bf16.vlgmr.msra.gmra.mxu1 %v2640_v57  ;;  %v4186_v57 = vld [vmem:[#allocation13 + $0x88] ss:$16 sps:$4 sm:$0xff]  }
 0xde3   :  { %2755 = vmatpush1.bf16.msra.mxu0 %v5147_v31  ;;  %2796 = vmatpush1.bf16.msra.mxu1 %v5149_v2  ;;  %v4171_v31 = vld [vmem:[#allocation13 + $0xe4] ss:$16 sps:$4 sm:$0xff]   ;;  %v4172_v2 = vld [vmem:[#allocation13 + $0xec] ss:$16 sps:$4 sm:$0xff]  }
 0xde4   :  { %2756 = vmatprep.subr.bf16.mxu0 %v5153_v38  ;;  %2797 = vmatprep.subr.bf16.mxu1 %v5155_v21 }
 0xde5   :  { %2786 = vmatprep.mubr.bf16.mxu0 %v5666_v46  ;;  %2827 = vmatprep.mubr.bf16.mxu1 %v5666_v46 }
 0xde7   :  { %2757 = vmatpush1.bf16.msra.mxu0 %v5161_v43  ;;  %2798 = vmatpush1.bf16.msra.mxu1 %v5163_v30 }
 0xde8   :  { %2758 = vmatprep.subr.bf16.mxu0 %v5167_v50  ;;  %2799 = vmatprep.subr.bf16.mxu1 %v5169_v5 }
 0xdeb   :  { %2759 = vmatpush1.bf16.msra.mxu0 %v5175_v35  ;;  %2800 = vmatpush1.bf16.msra.mxu1 %v5177_v62 }
 0xdec   :  { %2760 = vmatprep.subr.bf16.mxu0 %v5181_v45  ;;  %2801 = vmatprep.subr.bf16.mxu1 %v5183_v14 }
 0xdef   :  { %2761 = vmatpush1.bf16.msra.mxu0 %v5187_v54  ;;  %2802 = vmatpush1.bf16.msra.mxu1 %v5189_v41 }
 0xdf0   :  { %2762 = vmatprep.subr.bf16.mxu0 %v5193_v22  ;;  %2803 = vmatprep.subr.bf16.mxu1 %v5195_v61 }
 0xdf3   :  { %2763 = vmatpush1.bf16.msra.mxu0 %v5199_v49  ;;  %2804 = vmatpush1.bf16.msra.mxu1 %v5201_v20 }
 0xdf4   :  { %2764 = vmatprep.subr.bf16.mxu0 %v5205_v11  ;;  %2805 = vmatprep.subr.bf16.mxu1 %v5207_v29 }
 0xdf7   :  { %2765 = vmatpush1.bf16.msra.mxu0 %v5211_v25  ;;  %2806 = vmatpush1.bf16.msra.mxu1 %v5213_v37 }
 0xdf8   :  { %2766 = vmatprep.subr.bf16.mxu0 %v5217_v1  ;;  %2807 = vmatprep.subr.bf16.mxu1 %v5219_v36 }
 0xdfb   :  { %2767 = vmatpush1.bf16.msra.mxu0 %v5223_v12  ;;  %2808 = vmatpush1.bf16.msra.mxu1 %v5225_v15 }
 0xdfc   :  { %2768 = vmatprep.subr.bf16.mxu0 %v5229_v3  ;;  %2809 = vmatprep.subr.bf16.mxu1 %v5231_v28 }
 0xdff   :  { %2769 = vmatpush1.bf16.msra.mxu0 %v5235_v27  ;;  %2810 = vmatpush1.bf16.msra.mxu1 %v5237_v33 }
 0xe00   :  { %2867 = vmatprep.subr.bf16.mxu0 %v4171_v31  ;;  %2908 = vmatprep.subr.bf16.mxu1 %v4172_v2  ;;  %v4188_v31 = vld [vmem:[#allocation13 + $0x6c] ss:$16 sps:$4 sm:$0xff]   ;;  %v4189_v2 = vld [vmem:[#allocation13 + $0x60] ss:$16 sps:$4 sm:$0xff]  }
 0xea2   :  { %v2675_v38 = vpop.f32.mrf.mxu0  ;;  %v2716_v21 = vpop.f32.mrf.mxu1 }
 0xea3   :  { %v2723_v43 = vadd.f32 %v2675_v38, %v5288_v9  ;;  %v2725_v22 = vadd.f32 %v2716_v21, %v5296_v34  ;;  %v4190_v38 = vld [vmem:[#allocation13 + $0x68] ss:$16 sps:$4 sm:$0xff]   ;;  %v4191_v21 = vld [vmem:[#allocation13 + $0x44] ss:$16 sps:$4 sm:$0xff]  }
 0xea4   :  { %v2677_v30 = vpop.f32.mrf.mxu0  ;;  %v2718_v50 = vpop.f32.mrf.mxu1 }
 0xea5   :  { %v3560_v5 = vmul.f32 -1.442695, %v2723_v43  ;;  %v2724_v35 = vadd.f32 %v2677_v30, %v5290_v23  ;;  %v3562_v61 = vmul.f32 -1.442695, %v2725_v22  ;;  %v2726_v20 = vadd.f32 %v2718_v50, %v5301_v59  ;;  %v4192_v43 = vld [vmem:[#allocation13 + $0x4c] ss:$16 sps:$4 sm:$0xff]  }
 0xea6   :  { %v2679_v62 = vpop.f32.mrf.mxu0  ;;  %v2720_v45 = vpop.f32.mrf.mxu1  ;;  %v4193_v30 = vld [vmem:[#allocation13 + $0x40] ss:$16 sps:$4 sm:$0xff]   ;;  %v4194_v50 = vld [vmem:[#allocation13 + $0x48] ss:$16 sps:$4 sm:$0xff]  }
 0xea7   :  { %4093 = vpow2.f32 %v3560_v5  ;;  %v3561_v14 = vmul.f32 -1.442695, %v2724_v35  ;;  %v4195_v5 = vld [vmem:[#allocation13 + $0x24] ss:$16 sps:$4 sm:$0xff]   ;;  %v4196_v35 = vld [vmem:[#allocation13 + $0x2c] ss:$16 sps:$4 sm:$0xff]  }
 0xea8   :  { %v2680_v54 = vpop.f32.mrf.mxu0  ;;  %v2721_v41 = vpop.f32.mrf.mxu1  ;;  %v5691_v62 = vmov 0.0   ;;  %v3861_v45 = vld [vmem:[#allocation14 + $0x38] sm:$0xff]  }
 0xea9   :  { %4095 = vpow2.f32 %v3561_v14 }
 0xeaa   :  { %4097 = vpow2.f32 %v3562_v61 }
 0xeb4   :  { %v4094_v49 = vpop.eup %4093 }
 0xeb5   :  { %v2736_v11 = vadd.f32 1.0, %v4094_v49 }
 0xeb6   :  { %v4096_v29 = vpop.eup %4095 }
 0xeb7   :  { %4099 = vrcp.f32 %v2736_v11  ;;  %v2737_v25 = vadd.f32 1.0, %v4096_v29  ;;  %v4098_v37 = vpop.eup %4097 }
 0xeb8   :  { %4101 = vtanh.f32 %v2726_v20  ;;  %v2738_v56 = vadd.f32 1.0, %v4098_v37 }
 0xeb9   :  { %4103 = vrcp.f32 %v2737_v25 }
 0xeba   :  { %4105 = vrcp.f32 %v2738_v56 }
 0xec4   :  { %v4100_v1 = vpop.eup %4099 }
 0xec5   :  { %v4102_v36 = vpop.eup %4101 }
 0xec6   :  { %v4104_v39 = vpop.eup %4103  ;;  %v2747_v4 = vmul.f32 %v4102_v36, %v4100_v1 }
 0xec7   :  { %v2746_v60 = vmul.f32 %v4104_v39, %v5488_v47  ;;  %v4106_v24 = vpop.eup %4105  ;;  %v4183_v47 = vld [vmem:[#allocation13 + $0x84] ss:$16 sps:$4 sm:$0xff]  }
 0xec9   :  { %v5532_v6 = vadd.f32 %v2747_v4, %v2746_v60 }
 0xecb   :  { %4107 = vtanh.f32 %v5532_v6 }
 0xed8   :  { %v4108_v7 = vpop.eup %4107 }
 0xed9   :  { %v5535_v26 = vmul.f32 %v4108_v7, %v4106_v24 }
 0xedb   :  { %v2753_v40 = vpack.c.bf16 %v5535_v26, %v5535_v26 }
 0xedd   :  { %2787 = vmatmul.mubr.bf16.vlgmr.msra.gmra.mxu0 %v2753_v40  ;;  %2828 = vmatmul.mubr.bf16.vlgmr.msra.gmra.mxu1 %v2753_v40 }
 0xede   :  { %2868 = vmatpush1.bf16.msra.mxu0 %v4173_v51  ;;  %2909 = vmatpush1.bf16.msra.mxu1 %v4174_v42 }
 0xedf   :  { %2869 = vmatprep.subr.bf16.mxu0 %v4175_v17  ;;  %2910 = vmatprep.subr.bf16.mxu1 %v4176_v63 }
 0xee0   :  { %2899 = vmatprep.mubr.bf16.mxu0 %v5666_v46  ;;  %2940 = vmatprep.mubr.bf16.mxu1 %v5666_v46  ;;  %v4187_v46 = vld [vmem:[#allocation13 + $0x64] ss:$16 sps:$4 sm:$0xff]  }
 0xee2   :  { %2870 = vmatpush1.bf16.msra.mxu0 %v4177_v0  ;;  %2911 = vmatpush1.bf16.msra.mxu1 %v4178_v44  ;;  %v3862_v0 = vld [vmem:[#allocation16 + $0x38] sm:$0xff]  }
 0xee3   :  { %2871 = vmatprep.subr.bf16.mxu0 %v4179_v32  ;;  %2912 = vmatprep.subr.bf16.mxu1 %v4180_v58  ;;  %v3863_v32 = vld [vmem:[#allocation14 + $0x30] sm:$0xff]  }
 0xee4   :  { %v3864_v58 = vld [vmem:[#allocation16 + $0x30] sm:$0xff]  }
 0xee6   :  { %2872 = vmatpush1.bf16.msra.mxu0 %v4181_v52  ;;  %2913 = vmatpush1.bf16.msra.mxu1 %v4182_v53  ;;  %v3865_v52 = vld [vmem:[#allocation14 + $0x28] sm:$0xff]  }
 0xee7   :  { %2873 = vmatprep.subr.bf16.mxu0 %v4183_v47  ;;  %2914 = vmatprep.subr.bf16.mxu1 %v4184_v13  ;;  %v3866_v53 = vld [vmem:[#allocation16 + $0x28] sm:$0xff]   ;;  %v3867_v47 = vld [vmem:[#allocation14 + $0x20] sm:$0xff]   ;;  %v3870_v13 = vld [vmem:[#allocation16 + $0x18] sm:$0xff]  }
 0xeea   :  { %2874 = vmatpush1.bf16.msra.mxu0 %v4185_v19  ;;  %2915 = vmatpush1.bf16.msra.mxu1 %v4186_v57  ;;  %v3871_v19 = vld [vmem:[#allocation14 + $0x10] sm:$0xff]  }
 0xeeb   :  { %2875 = vmatprep.subr.bf16.mxu0 %v4187_v46  ;;  %2916 = vmatprep.subr.bf16.mxu1 %v4188_v31  ;;  %v3872_v57 = vld [vmem:[#allocation16 + $0x10] sm:$0xff]   ;;  %v3873_v46 = vld [vmem:[#allocation14 + $0x8] sm:$0xff]  }
 0xeec   :  { %v3874_v31 = vld [vmem:[#allocation16 + $0x8] sm:$0xff]  }
 0xeee   :  { %2876 = vmatpush1.bf16.msra.mxu0 %v4189_v2  ;;  %2917 = vmatpush1.bf16.msra.mxu1 %v4190_v38  ;;  %v3875_v2 = vld [vmem:[#allocation14] sm:$0xff]  }
 0xeef   :  { %2877 = vmatprep.subr.bf16.mxu0 %v4191_v21  ;;  %2918 = vmatprep.subr.bf16.mxu1 %v4192_v43  ;;  %v3876_v38 = vld [vmem:[#allocation16] sm:$0xff]   ;;  %v2988_v21 = vpack.c.bf16 %v5445_v10, %v5399_v8  ;;  %v2989_v43 = vpack.c.bf16 %v5535_v26, %v5491_v16  ;;  %v3881_v10 = vld [vmem:[#allocation17 + $0x18] sm:$0xff]   ;;  %v3883_v16 = vld [vmem:[#allocation17 + $0x8] sm:$0xff]  }
 0xef0   :  { %v3880_v8 = vld [vmem:[#allocation17 + $0x20] sm:$0xff]  }
 0xef1   :  { %v3884_v26 = vld [vmem:[#allocation17] sm:$0xff]  }
 0xef2   :  { %2878 = vmatpush1.bf16.msra.mxu0 %v4193_v30  ;;  %2919 = vmatpush1.bf16.msra.mxu1 %v4194_v50  ;;  %v3877_v30 = vld [vmem:[#allocation17 + $0x38] sm:$0xff]   ;;  %v3878_v50 = vld [vmem:[#allocation17 + $0x30] sm:$0xff]  }
 0xef3   :  { %2879 = vmatprep.subr.bf16.mxu0 %v4195_v5  ;;  %2920 = vmatprep.subr.bf16.mxu1 %v4196_v35  ;;  %v3879_v5 = vld [vmem:[#allocation17 + $0x28] sm:$0xff]  }
 0xef6   :  { %2880 = vmatpush1.bf16.msra.mxu0 %v5223_v12  ;;  %2921 = vmatpush1.bf16.msra.mxu1 %v5225_v15 }
 0xef7   :  { %2881 = vmatprep.subr.bf16.mxu0 %v5229_v3  ;;  %2922 = vmatprep.subr.bf16.mxu1 %v5231_v28 }
 0xefa   :  { %2882 = vmatpush1.bf16.msra.mxu0 %v5235_v27  ;;  %2923 = vmatpush1.bf16.msra.mxu1 %v5237_v33 }
 0xefb   :  { %3650 = vmatprep.subr.bf16.mxu1 %v5691_v62  ;;  %3626 = vmatprep.subr.bf16.mxu0 %v3861_v45 }
 0xf9d   :  { %v2788_v14 = vpop.f32.mrf.mxu0  ;;  %v2829_v54 = vpop.f32.mrf.mxu1 }
 0xf9e   :  { %v2836_v41 = vadd.f32 %v2788_v14, %v5288_v9  ;;  %v2838_v33 = vadd.f32 %v2829_v54, %v5296_v34 }
 0xf9f   :  { %v2790_v22 = vpop.f32.mrf.mxu0  ;;  %v2831_v12 = vpop.f32.mrf.mxu1 }
 0xfa0   :  { %v3563_v61 = vmul.f32 -1.442695, %v2836_v41  ;;  %v2837_v15 = vadd.f32 %v2790_v22, %v5290_v23  ;;  %v3565_v11 = vmul.f32 -1.442695, %v2838_v33  ;;  %v2839_v25 = vadd.f32 %v2831_v12, %v5301_v59 }
 0xfa1   :  { %v2792_v3 = vpop.f32.mrf.mxu0  ;;  %v2833_v49 = vpop.f32.mrf.mxu1 }
 0xfa2   :  { %4109 = vpow2.f32 %v3563_v61  ;;  %v3564_v28 = vmul.f32 -1.442695, %v2837_v15 }
 0xfa3   :  { %v2793_v27 = vpop.f32.mrf.mxu0  ;;  %v2834_v20 = vpop.f32.mrf.mxu1 }
 0xfa4   :  { %4111 = vpow2.f32 %v3564_v28 }
 0xfa5   :  { %4113 = vpow2.f32 %v3565_v11 }
 0xfaf   :  { %v4110_v29 = vpop.eup %4109 }
 0xfb0   :  { %v2849_v37 = vadd.f32 1.0, %v4110_v29 }
 0xfb1   :  { %v4112_v1 = vpop.eup %4111 }
 0xfb2   :  { %4115 = vrcp.f32 %v2849_v37  ;;  %v2850_v36 = vadd.f32 1.0, %v4112_v1  ;;  %v4114_v39 = vpop.eup %4113 }
 0xfb3   :  { %4117 = vtanh.f32 %v2839_v25  ;;  %v2851_v24 = vadd.f32 1.0, %v4114_v39 }
 0xfb4   :  { %4119 = vrcp.f32 %v2850_v36 }
 0xfb5   :  { %4121 = vrcp.f32 %v2851_v24 }
 0xfbf   :  { %v4116_v56 = vpop.eup %4115 }
 0xfc0   :  { %v4118_v60 = vpop.eup %4117 }
 0xfc1   :  { %v4120_v4 = vpop.eup %4119  ;;  %v2860_v40 = vmul.f32 %v4118_v60, %v4116_v56 }
 0xfc2   :  { %v2859_v7 = vmul.f32 %v4120_v4, %v5532_v6  ;;  %v4122_v42 = vpop.eup %4121  ;;  %v2987_v6 = vpack.c.bf16 %v5353_v55, %v5307_v48  ;;  %v3868_v48 = vld [vmem:[#allocation16 + $0x20] sm:$0xff]   ;;  %v3869_v55 = vld [vmem:[#allocation14 + $0x18] sm:$0xff]  }
 0xfc4   :  { %v5553_v51 = vadd.f32 %v2860_v40, %v2859_v7 }
 0xfc6   :  { %4123 = vtanh.f32 %v5553_v51 }
 0xfd3   :  { %v4124_v17 = vpop.eup %4123 }
 0xfd4   :  { %v5556_v63 = vmul.f32 %v4124_v17, %v4122_v42 }
 0xfd6   :  { %v2866_v44 = vpack.c.bf16 %v5556_v63, %v5556_v63 }
 0xfd8   :  { %2900 = vmatmul.mubr.bf16.vlgmr.msra.gmra.mxu0 %v2866_v44  ;;  %2941 = vmatmul.mubr.bf16.vlgmr.msra.gmra.mxu1 %v2866_v44 }
 0xfd9   :  { %3627 = vmatpush3.bf16.msra.mxu0 %v3861_v45  ;;  %3651 = vmatpush3.bf16.msra.mxu1 %v3862_v0 }
 0xfda   :  { %3642 = vmatprep.mubr.bf16.mxu0 %v2987_v6  ;;  %3628 = vmatprep.subr.bf16.mxu0 %v3863_v32 }
 0xfdb   :  { %3652 = vmatprep.subr.bf16.mxu1 %v5691_v62  ;;  %3666 = vmatprep.mubr.msk.bf16.mxu1 %vm4453_vm3, %v5691_v62 }
 0xfdd   :  { %3629 = vmatpush3.bf16.msra.mxu0 %v3863_v32  ;;  %3653 = vmatpush3.bf16.msra.mxu1 %v3864_v58 }
 0xfde   :  { %3630 = vmatprep.subr.bf16.mxu0 %v3865_v52  ;;  %3654 = vmatprep.subr.bf16.mxu1 %v5691_v62 }
 0xfe1   :  { %3631 = vmatpush3.bf16.msra.mxu0 %v3865_v52  ;;  %3655 = vmatpush3.bf16.msra.mxu1 %v3866_v53 }
 0xfe2   :  { %3632 = vmatprep.subr.bf16.mxu0 %v3867_v47  ;;  %3656 = vmatprep.subr.bf16.mxu1 %v5691_v62 }
 0xfe5   :  { %3633 = vmatpush3.bf16.msra.mxu0 %v3867_v47  ;;  %3657 = vmatpush3.bf16.msra.mxu1 %v3868_v48  ;;  %v3578_v48 = vld [vmem:[%s5630_s10] ss:$0 sm:$0xff] }
 0xfe6   :  { %3634 = vmatprep.subr.bf16.mxu0 %v3869_v55  ;;  %3658 = vmatprep.subr.bf16.mxu1 %v5691_v62 }
 0xfe9   :  { %3635 = vmatpush3.bf16.msra.mxu0 %v3869_v55  ;;  %3659 = vmatpush3.bf16.msra.mxu1 %v3870_v13 }
 0xfea   :  { %3636 = vmatprep.subr.bf16.mxu0 %v3871_v19  ;;  %3660 = vmatprep.subr.bf16.mxu1 %v5691_v62 }
 0xfed   :  { %3637 = vmatpush3.bf16.msra.mxu0 %v3871_v19  ;;  %3661 = vmatpush3.bf16.msra.mxu1 %v3872_v57 }
 0xfee   :  { %3638 = vmatprep.subr.bf16.mxu0 %v3873_v46  ;;  %3662 = vmatprep.subr.bf16.mxu1 %v5691_v62 }
 0xff1   :  { %3639 = vmatpush3.bf16.msra.mxu0 %v3873_v46  ;;  %3663 = vmatpush3.bf16.msra.mxu1 %v3874_v31 }
 0xff2   :  { %3640 = vmatprep.subr.bf16.mxu0 %v3875_v2  ;;  %3664 = vmatprep.subr.bf16.mxu1 %v5691_v62 }
 0xff5   :  { %3641 = vmatpush3.bf16.msra.mxu0 %v3875_v2  ;;  %3665 = vmatpush3.bf16.msra.mxu1 %v3876_v38 }
 0xff6   :  { %3670 = vmatprep.subr.bf16.mxu0 %v5691_v62 }
 0xff8   :  { %3643 = vmatmul.mubr.bf16.vlgmr.msra.gmra.mxu0 %v2988_v21  ;;  %3667 = vmatmul.mubr.bf16.vlgmr.msra.gmra.mxu1 %v5151_v18  ;;  %v3882_v18 = vld [vmem:[#allocation17 + $0x10] sm:$0xff]  }
 0xff9   :  { %3646 = vmatprep.mubr.bf16.mxu0 %v2989_v43  ;;  %3671 = vmatpush3.bf16.msra.mxu0 %v3877_v30 }
 0xffa   :  { %3672 = vmatprep.subr.bf16.mxu0 %v5691_v62 }
 0xffd   :  { %3673 = vmatpush3.bf16.msra.mxu0 %v3878_v50 }
 0xffe   :  { %3674 = vmatprep.subr.bf16.mxu0 %v5691_v62 }
0x1001   :  { %3675 = vmatpush3.bf16.msra.mxu0 %v3879_v5 }
0x1002   :  { %3676 = vmatprep.subr.bf16.mxu0 %v5691_v62 }
0x1005   :  { %3677 = vmatpush3.bf16.msra.mxu0 %v3880_v8 }
0x1006   :  { %3678 = vmatprep.subr.bf16.mxu0 %v5691_v62 }
0x1009   :  { %3679 = vmatpush3.bf16.msra.mxu0 %v3881_v10 }
0x100a   :  { %3680 = vmatprep.subr.bf16.mxu0 %v5691_v62 }
0x100d   :  { %3681 = vmatpush3.bf16.msra.mxu0 %v3882_v18 }
0x100e   :  { %3682 = vmatprep.subr.bf16.mxu0 %v5691_v62 }
0x1011   :  { %3683 = vmatpush3.bf16.msra.mxu0 %v3883_v16 }
0x1012   :  { %3684 = vmatprep.subr.bf16.mxu0 %v5691_v62 }
0x1015   :  { %3685 = vmatpush3.bf16.msra.mxu0 %v3884_v26 }
0x1098   :  { %v2901_v35 = vpop.f32.mrf.mxu0  ;;  %v2942_v45 = vpop.f32.mrf.mxu1 }
0x1099   :  { %v2949_v14 = vadd.f32 %v2901_v35, %v5288_v9  ;;  %v2951_v27 = vadd.f32 %v2942_v45, %v5296_v34 }
0x109a   :  { %v2903_v54 = vpop.f32.mrf.mxu0  ;;  %v2944_v41 = vpop.f32.mrf.mxu1 }
0x109b   :  { %v3566_v22 = vmul.f32 -1.442695, %v2949_v14  ;;  %v2950_v12 = vadd.f32 %v2903_v54, %v5290_v23  ;;  %v3568_v20 = vmul.f32 -1.442695, %v2951_v27  ;;  %v2952_v11 = vadd.f32 %v2944_v41, %v5301_v59  ;;  %v5591_v23 = vld [vmem:[%s5628_s8] ss:$0 sm:$0xff] }
0x109c   :  { %v2905_v61 = vpop.f32.mrf.mxu0  ;;  %v2946_v15 = vpop.f32.mrf.mxu1 }
0x109d   :  { %4125 = vpow2.f32 %v3566_v22  ;;  %v3567_v3 = vmul.f32 -1.442695, %v2950_v12 }
0x109e   :  { %v2906_v49 = vpop.f32.mrf.mxu0  ;;  %v2947_v28 = vpop.f32.mrf.mxu1 }
0x109f   :  { %4127 = vpow2.f32 %v3567_v3 }
0x10a0   :  { %4129 = vpow2.f32 %v3568_v20 }
0x10aa   :  { %v4126_v33 = vpop.eup %4125 }
0x10ab   :  { %v2962_v29 = vadd.f32 1.0, %v4126_v33 }
0x10ac   :  { %v4128_v9 = vpop.eup %4127 }
0x10ad   :  { %4131 = vrcp.f32 %v2962_v29  ;;  %v2963_v25 = vadd.f32 1.0, %v4128_v9  ;;  %v4130_v36 = vpop.eup %4129 }
0x10ae   :  { %4133 = vtanh.f32 %v2952_v11  ;;  %v2964_v7 = vadd.f32 1.0, %v4130_v36 }
0x10af   :  { %4135 = vrcp.f32 %v2963_v25 }
0x10b0   :  { %4137 = vrcp.f32 %v2964_v7 }
0x10b8   :  { %v3644_v37 = vpop.f32.mrf.mxu0  ;;  %v3240_v1 = vpop.f32.mrf.mxu1 }
0x10b9   :  { %v3105_v34 = vadd.f32 %v3644_v37, %v5591_v23  ;;  %v3241_v55 = vadd.f32 %v3578_v48, %v3240_v1 }
0x10ba   :  { %v4132_v39 = vpop.eup %4131  ;;  %v3096_v56 = vpop.f32.mrf.mxu0 }
0x10bb   :  { %v3668_v59 = vpop.f32.mrf.mxu1  ;;  %v4134_v60 = vpop.eup %4133  ;;  %3129 = vst [vmem:[#allocation20 + $0x10] sm:$0xff] %v3105_v34  ;;  %v3097_v4 = vadd.f32 %v5591_v23, %v3096_v56  ;;  %v3246_v19 = vmax.f32 %v3241_v55, 0.0 }
0x10bc   :  { %v4136_v24 = vpop.eup %4135  ;;  %v3645_v40 = vpop.f32.mrf.mxu0  ;;  %v2973_v0 = vmul.f32 %v4134_v60, %v4132_v39 }
0x10bd   :  { %v3243_v42 = vpop.f32.mrf.mxu1  ;;  %v2972_v17 = vmul.f32 %v4136_v24, %v5553_v51  ;;  %3127 = vst [vmem:[#allocation20] sm:$0xff] %v3097_v4  ;;  %v3108_v44 = vadd.f32 %v3645_v40, %v5591_v23  ;;  %v4138_v53 = vpop.eup %4137  ;;  %v3247_v57 = vpack.c.bf16 %v3246_v19, %v3246_v19 }
0x10be   :  { %v3099_v32 = vpop.f32.mrf.mxu0 }
0x10bf   :  { %v3669_v6 = vpop.f32.mrf.mxu1  ;;  %v2974_v58 = vadd.f32 %v2973_v0, %v2972_v17  ;;  %3130 = vst [vmem:[#allocation20 + $0x18] sm:$0xff] %v3108_v44  ;;  %v3100_v52 = vadd.f32 %v5591_v23, %v3099_v32 }
0x10c1   :  { %4139 = vtanh.f32 %v2974_v58  ;;  %3128 = vst [vmem:[#allocation20 + $0x8] sm:$0xff] %v3100_v52 }
0x10ce   :  { %v4140_v47 = vpop.eup %4139 }
0x10cf   :  { %v2976_v51 = vmul.f32 %v4140_v47, %v4138_v53 }
0x10d1   :  { %v2990_v13 = vpack.c.bf16 %v2976_v51, %v5556_v63 }
0x10d3   :  { %3647 = vmatmul.mubr.bf16.gmra.mxu0 %v2990_v13 }
0x10d4   :  { %3686 = vmatprep.mubr.msk.bf16.mxu0 %vm4453_vm3, %v5691_v62 }
0x10db   :  { %3687 = vmatmul.mubr.bf16.vlgmr.msra.gmra.mxu0 %v3247_v57 }
0x10dc   :  { %4368 = shalt.err (!%p4365_p2)
}
0x10dd   :  { %3369 = dma.vmem_to_hbm [thread:$0]  %s3367_s21, 128, %s5633_s13, [#allocation7]   ;;  %v3587_v43 = vld [vmem:[%s5632_s12] ss:$0 sm:$0xff] }
0x10de   :  { %s4455_s4 = smov [#allocation20]   ;;  %s4456_s27 = smov [#allocation22]  }
0x10df   :  { %s3375_s23 = sshll.u32 %s4455_s4, 4  ;;  %s3388_s13 = sshll.u32 %s4456_s27, 4  ;;  %s3376_s23 = int_to_ptr.vmem [resolvable:$true] %s3375_s23  ;;  %s3389_s13 = int_to_ptr.vmem [resolvable:$true] %s3388_s13 }
0x10e0   :  { %s4377_s5 = scalar_lea.vmem %s3376_s23, 1024  ;;  %p4382_p4 = scmp.lt.s32.totalorder %s3376_s23, %s3376_s23 }
0x10e1   :  { %p4378_p3 = scmp.ne.s32.totalorder %s3376_s23, %s4377_s5  ;;  %p4383_p5 = scmp.lt.s32.totalorder %s4377_s5, %s4377_s5 }
0x10e3   :  { %p4384_p6 = por %p4383_p5, %p4382_p4 }
0x10e5   :  { %p4385_p7 = pnand %p4384_p6, %p4378_p3 }
0x1193   :  { %v3648_v63 = vpop.f32.mrf.mxu0 }
0x1194   :  { %v3121_v62 = vadd.f32 %v3648_v63, %v5591_v23 }
0x1195   :  { %v3112_v46 = vpop.f32.mrf.mxu0 }
0x1196   :  { %3133 = vst [vmem:[#allocation20 + $0x30] sm:$0xff] %v3121_v62  ;;  %v3113_v31 = vadd.f32 %v5591_v23, %v3112_v46 }
0x1197   :  { %v3649_v2 = vpop.f32.mrf.mxu0 }
0x1198   :  { %3131 = vst [vmem:[#allocation20 + $0x20] sm:$0xff] %v3113_v31  ;;  %v3124_v38 = vadd.f32 %v3649_v2, %v5591_v23 }
0x1199   :  { %v3115_v21 = vpop.f32.mrf.mxu0 }
0x119a   :  { %3134 = vst [vmem:[#allocation20 + $0x38] sm:$0xff] %v3124_v38  ;;  %v3116_v30 = vadd.f32 %v5591_v23, %v3115_v21 }
0x119b   :  { %v3353_v50 = vpop.f32.mrf.mxu0 }
0x119c   :  { %3132 = vst [vmem:[#allocation20 + $0x28] sm:$0xff] %v3116_v30  ;;  %v3354_v5 = vadd.f32 %v3587_v43, %v3353_v50 }
0x119d   :  { %v3688_v8 = vpop.f32.mrf.mxu0 }
0x119e   :  { %4388 = shalt.err (!%p4385_p7)
}
0x119f   :  { %s4457_s28 = smov 128   ;;  %s4458_s12 = smov 8   ;;  %3359 = vst [vmem:[#allocation22] sm:$0xff] %v3354_v5  ;;  %v3356_v10 = vpop.f32.mrf.mxu0 }
0x11a0   :  { %3381 = dma.vmem_to_hbm [thread:$0]  %s3376_s23, 1024, %s5634_s14, [#allocation21], %s4457_s28, %s4457_s28, %s4458_s12  }
0x11a1   :  { %s4397_s29 = scalar_lea.vmem %s3389_s13, 128  ;;  %p4402_p9 = scmp.lt.s32.totalorder %s3389_s13, %s3389_s13 }
0x11a2   :  { %p4398_p8 = scmp.ne.s32.totalorder %s3389_s13, %s4397_s29  ;;  %p4403_p10 = scmp.lt.s32.totalorder %s4397_s29, %s4397_s29 }
0x11a4   :  { %p4404_p11 = por %p4403_p10, %p4402_p9 }
0x11a6   :  { %p4405_p12 = pnand %p4404_p11, %p4398_p8 }
0x11a8   :  { %4408 = shalt.err (!%p4405_p12)
}
0x11a9   :  { %3391 = dma.vmem_to_hbm [thread:$0]  %s3389_s13, 128, %s5635_s15, [#allocation21]   ;;  %v3689_v18 = vpop.f32.mrf.mxu0 }
0x11aa   :  { %4427 = dma.done.wait [#allocation7], 128  }
0x11ab   :  { %4428 = vsyncadd [#allocation7], 4294967168 }
0x11ac   :  { %4429 = dma.done.wait [#allocation21], 1152  }
0x11ad   :  { %4430 = vsyncadd [#allocation21], 4294966144 }
0x11ae   :  { %3401 = vsyncpa [#allocation6], 1 }
0x11af   :  { %3402 = vsyncpa [#allocation9], 1 }
0x11b0   :  { %3403 = vsyncpa [#allocation12], 1 }
0x11b1   :  { %3404 = vsyncpa [#allocation15], 1 }
0x11b2   :  { %3405 = vsyncpa [#allocation18], 1 }
0x11b3   :  { %3406 = vsyncpa [#allocation7], 1 }
0x11b4   :  { %3407 = vsyncpa [#allocation21], 1 }

</bundles_post_ra>
